<compile_context>
chip_gen: v5e
topology: v5e:2x2
jax: 0.10.0
libtpu: 0.0.40
codegen_flags: <defaults>
</compile_context>

<pallas_src>
import functools

import jax
import jax.numpy as jnp
import numpy as np
from jax.experimental import pallas as pl
from jax.experimental.pallas import tpu as pltpu

LAMDA = 0.5  # deterministic "parameter" from ESD.__init__(lamda, device)


def _round_up(x, m):
    return ((x + m - 1) // m) * m


def _ceil_div(a, b):
    return -(-a // b)


# --------------------------------------------------------------------------
# Kernel 1: per-sample prep (confidence, argmax-correct, val, per-sample CE).
# Tiled along N (lane axis); outputs are written zero-padded, so no wrapper
# padding is needed.  Pure map -> "parallel" grid axis.
# --------------------------------------------------------------------------
def _esd_prep_kernel(logits_ref, tgt_ref, conf_ref, val_ref, ce_ref, *, n, c):
    b = pl.program_id(0)
    tile_n = conf_ref.shape[1]

    logits = logits_ref[...]                       # (C, tile_n) f32
    tgt = tgt_ref[...]                             # (1, tile_n) i32

    # Global sample index of every lane; masks OOB-tail garbage reads.
    col = jax.lax.broadcasted_iota(jnp.int32, (1, tile_n), 1) + b * tile_n
    valid = col < n                                # (1, tile_n)

    # confidence = max over classes (sublane-axis reduction)
    conf = jnp.max(logits, axis=0, keepdims=True)                    # (1, tile_n)

    # argmax (first maximal index, like torch.max / jnp.argmax)
    cls_ids = jax.lax.broadcasted_iota(jnp.int32, (c, tile_n), 0)
    pred = jnp.min(jnp.where(logits == conf, cls_ids, c),
                   axis=0, keepdims=True)                            # (1, tile_n)
    correct = (tgt == pred).astype(jnp.float32)
    val = correct - conf

    # per-sample cross entropy terms (numerically stable logsumexp)
    lse = conf + jnp.log(jnp.sum(jnp.exp(logits - conf), axis=0, keepdims=True))
    onehot = (cls_ids == tgt).astype(jnp.float32)
    picked = jnp.sum(logits * onehot, axis=0, keepdims=True)

    conf_ref[...] = jnp.where(valid, conf, 0.0)
    val_ref[...] = jnp.where(valid, val, 0.0)
    ce_ref[...] = jnp.where(valid, lse - picked, 0.0)


# --------------------------------------------------------------------------
# Kernel 2: tiled O(N^2) pairwise statistic, i on lanes / j on sublanes.
# Grid = (i blocks [parallel], j blocks [arbitrary/reduction]).
# Lane-dense (1, tile_i) accumulators; diagonal removed analytically.
# --------------------------------------------------------------------------
def _esd_pairwise_kernel(conf_col_ref, val_col_ref, conf_row_ref, val_row_ref,
                         dksq_ref, sum_acc, sumsq_acc, *, n):
    j = pl.program_id(1)

    @pl.when(j == 0)
    def _():
        sum_acc[...] = jnp.zeros_like(sum_acc)
        sumsq_acc[...] = jnp.zeros_like(sumsq_acc)

    conf_j = conf_col_ref[...]                     # (tile_j, 1)
    val_j = val_col_ref[...]                       # (tile_j, 1)
    conf_i = conf_row_ref[...]                     # (1, tile_i)

    cond = conf_j <= conf_i                        # (tile_j, tile_i)
    x = jnp.where(cond, val_j, 0.0)                # select, no float mask mul
    xsq = jnp.where(cond, val_j * val_j, 0.0)      # (tile_j,1) square is O(tile_j)

    # Sublane-axis reductions: vreg+vreg adds, lane-dense partials.
    sum_acc[...] += jnp.sum(x, axis=0, keepdims=True)       # (1, tile_i)
    sumsq_acc[...] += jnp.sum(xsq, axis=0, keepdims=True)   # (1, tile_i)

    @pl.when(j == pl.num_programs(1) - 1)
    def _():
        val_i = val_row_ref[...]                             # (1, tile_i)
        row_sum = sum_acc[...] - val_i                       # drop diagonal term
        row_sumsq = sumsq_acc[...] - val_i * val_i
        mean_row = row_sum / (n - 1)
        var = row_sumsq / (n - 2) - ((n - 1) / (n - 2)) * (mean_row * mean_row)
        dksq_ref[...] = mean_row * mean_row - var / (n - 1)  # lane-dense store


# --------------------------------------------------------------------------
# Tile selection
# --------------------------------------------------------------------------
def _choose_tiles(n, max_tile_i, max_tile_j):
    """Return (num_i_blocks, tile_i, num_j_blocks, tile_j) for the pairwise grid."""
    max_tile_i = max(128, (int(max_tile_i) // 128) * 128)   # force legal tiles
    max_tile_j = max(8, (int(max_tile_j) // 8) * 8)

    # i (lane) axis: multiples of 128.  Prefer an even number of row blocks
    # (>= 2) so the "parallel" axis splits evenly across v7x's two TensorCores.
    if _round_up(n, 128) <= 128:
        gi, tile_i = 1, 128
    else:
        gi = 2
        tile_i = _round_up(_ceil_div(n, gi), 128)
        while tile_i > max_tile_i:
            gi += 2
            tile_i = _round_up(_ceil_div(n, gi), 128)

    # j (sublane / reduction) axis: multiples of 8, pad-minimal.
    gj = 1
    tile_j = _round_up(n, 8)
    while tile_j > max_tile_j:
        gj *= 2
        tile_j = _round_up(_ceil_div(n, gj), 8)

    return gi, tile_i, gj, tile_j


def _choose_prep_tile(num_classes):
    """Lane width of one prep block: multiple of 128, <= 1024, and small enough
    that the (C, tile) f32 logits block stays under ~8 MiB."""
    d = 8
    while d > 1 and num_classes * 128 * d * 4 > (8 << 20):
        d //= 2
    return 128 * d


# --------------------------------------------------------------------------
# Wrapper
# --------------------------------------------------------------------------
def esd_loss(logits, target, lamda=LAMDA, max_tile_i=1024, max_tile_j=1024):
    """Pallas implementation of ESD.forward(input, target) -> scalar loss."""
    N, C = logits.shape
    if N <= 2:
        raise ValueError("ESD statistic requires N > 2 (divides by N-1, N-2).")

    gi, tile_i, gj, tile_j = _choose_tiles(N, max_tile_i, max_tile_j)
    cover_i = gi * tile_i          # lane extent visited by the i role
    cover_j = gj * tile_j          # sublane extent visited by the j role

    tile_n = min(_choose_prep_tile(C), _round_up(max(cover_i, cover_j), 128))
    L = _round_up(max(cover_i, cover_j), tile_n)   # padded per-sample length
    nb = L // tile_n                               # prep grid size
    nb_valid = _ceil_div(N, tile_n)                # last block touching real data

    logits_t = jnp.transpose(logits.astype(jnp.float32))    # (C, N), N lane-dense
    tgt_row = target.astype(jnp.int32).reshape(1, N)

    # Grid blocks past the real data re-read the last real block (their outputs
    # are fully masked to zero in-kernel), so no input block is ever fully OOB.
    def in_idx(b):
        return (0, jnp.minimum(b, nb_valid - 1))

    conf_row, val_row, ce_row = pl.pallas_call(
        functools.partial(_esd_prep_kernel, n=N, c=C),
        out_shape=(
            jax.ShapeDtypeStruct((1, L), jnp.float32),
            jax.ShapeDtypeStruct((1, L), jnp.float32),
            jax.ShapeDtypeStruct((1, L), jnp.float32),
        ),
        grid_spec=pltpu.PrefetchScalarGridSpec(
            num_scalar_prefetch=0,
            grid=(nb,),
            in_specs=[pl.BlockSpec((C, tile_n), in_idx),
                      pl.BlockSpec((1, tile_n), in_idx)],
            out_specs=(pl.BlockSpec((1, tile_n), lambda b: (0, b)),
                       pl.BlockSpec((1, tile_n), lambda b: (0, b)),
                       pl.BlockSpec((1, tile_n), lambda b: (0, b))),
        ),
        compiler_params=pltpu.CompilerParams(
            dimension_semantics=("parallel",),
            vmem_limit_bytes=32 * 1024 * 1024),
    )(logits_t, tgt_row)

    # j-role (sublane-major) view of conf/val — the only remaining glue.
    conf_col = conf_row.reshape(L, 1)
    val_col = val_row.reshape(L, 1)

    dksq = pl.pallas_call(
        functools.partial(_esd_pairwise_kernel, n=N),
        out_shape=jax.ShapeDtypeStruct((1, cover_i), jnp.float32),
        grid_spec=pltpu.PrefetchScalarGridSpec(
            num_scalar_prefetch=0,
            grid=(gi, gj),
            in_specs=[
                pl.BlockSpec((tile_j, 1), lambda i, j: (j, 0)),   # conf[j] column
                pl.BlockSpec((tile_j, 1), lambda i, j: (j, 0)),   # val[j]  column
                pl.BlockSpec((1, tile_i), lambda i, j: (0, i)),   # conf[i] row
                pl.BlockSpec((1, tile_i), lambda i, j: (0, i)),   # val[i]  row
            ],
            out_specs=pl.BlockSpec((1, tile_i), lambda i, j: (0, i)),
            scratch_shapes=[pltpu.VMEM((1, tile_i), jnp.float32),
                            pltpu.VMEM((1, tile_i), jnp.float32)],
        ),
        compiler_params=pltpu.CompilerParams(
            dimension_semantics=("parallel", "arbitrary"),
            vmem_limit_bytes=32 * 1024 * 1024),
    )(conf_col, val_col, conf_row, val_row)

    # Finalize in plain jnp: a few scalar ops — cheaper than a kernel launch.
    loss_ce = jnp.sum(ce_row) / N                  # padded tail is exactly zero
    reg = jnp.sum(dksq[0, :N]) / N                 # drop padded-i lanes
    return loss_ce + lamda * jnp.sqrt(jax.nn.relu(reg))


# --------------------------------------------------------------------------
# Pure-JAX reference matching the PyTorch module
# --------------------------------------------------------------------------
def esd_loss_ref(logits, target, lamda=LAMDA):
    N = logits.shape[0]
    conf = jnp.max(logits, axis=1)
    pred = jnp.argmax(logits, axis=1)
    correct = (target == pred).astype(jnp.float32)
    val = correct - conf
    mask = 1.0 - jnp.eye(N, dtype=jnp.float32)
    tri = (conf[None, :] <= conf[:, None]).astype(jnp.float32)
    x = val[None, :] * tri * mask
    mean_row = jnp.sum(x, axis=1) / (N - 1)
    var = jnp.sum(x * x, axis=1) / (N - 2) - ((N - 1) / (N - 2)) * mean_row * mean_row
    d_k_sq = mean_row * mean_row - var / (N - 1)
    reg_loss = jnp.sum(d_k_sq) / N
    lse = jax.scipy.special.logsumexp(logits, axis=1)
    loss_ce = jnp.mean(lse - logits[jnp.arange(N), target])
    return loss_ce + lamda * jnp.sqrt(jax.nn.relu(reg_loss))


if __name__ == "__main__":
    key = jax.random.PRNGKey(0)
    loss_fn = jax.jit(esd_loss)

    # Main test: multi-block "parallel" i grid (2 row blocks) + i/j padding.
    k1, k2 = jax.random.split(key)
    N, C = 640, 10
    logits = jax.random.normal(k1, (N, C), dtype=jnp.float32)
    target = jax.random.randint(k2, (N,), 0, C, dtype=jnp.int32)
    out = jax.block_until_ready(loss_fn(logits, target))
    ref = esd_loss_ref(logits, target, LAMDA)
    np.testing.assert_allclose(np.asarray(out), np.asarray(ref),
                               rtol=1e-4, atol=1e-5)

    # Small-shape test: single-block grid, heavy padding on both axes.
    k3, k4 = jax.random.split(k1)
    N2, C2 = 16, 8
    logits2 = jax.random.normal(k3, (N2, C2), dtype=jnp.float32)
    target2 = jax.random.randint(k4, (N2,), 0, C2, dtype=jnp.int32)
    out2 = jax.block_until_ready(loss_fn(logits2, target2))
    ref2 = esd_loss_ref(logits2, target2, LAMDA)
    np.testing.assert_allclose(np.asarray(out2), np.asarray(ref2),
                               rtol=1e-4, atol=1e-5)

    print("KERNEL_OK")
</pallas_src>

<mosaic_0001>
module attributes {stable_mosaic.version = 11 : i64} {
  func.func @_esd_prep_kernel(%arg0: i32, %arg1: memref<10x768xf32, #tpu.memory_space<vmem>>, %arg2: memref<1x768xi32, #tpu.memory_space<vmem>>, %arg3: memref<1x768xf32, #tpu.memory_space<vmem>>, %arg4: memref<1x768xf32, #tpu.memory_space<vmem>>, %arg5: memref<1x768xf32, #tpu.memory_space<vmem>>) attributes {dimension_semantics = [#tpu.dimension_semantics<parallel>], iteration_bounds = array<i64: 1>, scalar_prefetch = 0 : i64, scratch_operands = 0 : i64, tpu.core_type = #tpu.core_type<tc>, window_params = [{transform_indices = @transform_0, window_bounds = array<i64: 10, 768>}, {transform_indices = @transform_1, window_bounds = array<i64: 1, 768>}, {transform_indices = @transform_2, window_bounds = array<i64: 1, 768>}, {transform_indices = @transform_3, window_bounds = array<i64: 1, 768>}, {transform_indices = @transform_4, window_bounds = array<i64: 1, 768>}]} {
    %c0 = arith.constant 0 : index
    %c0_0 = arith.constant 0 : index
    %0 = vector.load %arg1[%c0, %c0_0] : memref<10x768xf32, #tpu.memory_space<vmem>>, vector<10x768xf32>
    %c0_1 = arith.constant 0 : index
    %c0_2 = arith.constant 0 : index
    %1 = vector.load %arg2[%c0_1, %c0_2] : memref<1x768xi32, #tpu.memory_space<vmem>>, vector<1x768xi32>
    %2 = tpu.iota {dimensions = array<i32: 1>} : vector<1x768xi32>
    %c768_i32 = arith.constant 768 : i32
    %3 = arith.muli %arg0, %c768_i32 : i32
    %4 = vector.broadcast %3 : i32 to vector<1x768xi32>
    %5 = arith.addi %2, %4 : vector<1x768xi32>
    %c640_i32 = arith.constant 640 : i32
    %6 = vector.broadcast %c640_i32 : i32 to vector<1x768xi32>
    %7 = arith.cmpi slt, %5, %6 : vector<1x768xi32>
    %cst = arith.constant dense<0xFF800000> : vector<768xf32>
    %8 = vector.multi_reduction <maximumf>, %0, %cst [0] : vector<10x768xf32> to vector<768xf32>
    %9 = vector.shape_cast %8 : vector<768xf32> to vector<1x768xf32>
    %10 = tpu.iota {dimensions = array<i32: 0>} : vector<10x768xi32>
    %11 = vector.broadcast %9 : vector<1x768xf32> to vector<10x768xf32>
    %12 = arith.cmpf oeq, %0, %11 : vector<10x768xf32>
    %c10_i32 = arith.constant 10 : i32
    %13 = vector.broadcast %c10_i32 : i32 to vector<10x768xi32>
    %14 = arith.select %12, %10, %13 : vector<10x768xi1>, vector<10x768xi32>
    %cst_3 = arith.constant dense<2147483647> : vector<768xi32>
    %15 = vector.multi_reduction <minsi>, %14, %cst_3 [0] : vector<10x768xi32> to vector<768xi32>
    %16 = vector.shape_cast %15 : vector<768xi32> to vector<1x768xi32>
    %17 = arith.cmpi eq, %1, %16 : vector<1x768xi32>
    %18 = arith.extui %17 : vector<1x768xi1> to vector<1x768xi32>
    %19 = arith.sitofp %18 : vector<1x768xi32> to vector<1x768xf32>
    %20 = arith.subf %19, %9 : vector<1x768xf32>
    %21 = vector.broadcast %9 : vector<1x768xf32> to vector<10x768xf32>
    %22 = arith.subf %0, %21 : vector<10x768xf32>
    %23 = math.exp %22 : vector<10x768xf32>
    %cst_4 = arith.constant dense<0.000000e+00> : vector<768xf32>
    %24 = vector.multi_reduction <add>, %23, %cst_4 [0] : vector<10x768xf32> to vector<768xf32>
    %25 = vector.shape_cast %24 : vector<768xf32> to vector<1x768xf32>
    %26 = math.log %25 : vector<1x768xf32>
    %27 = arith.addf %9, %26 : vector<1x768xf32>
    %28 = vector.broadcast %1 : vector<1x768xi32> to vector<10x768xi32>
    %29 = arith.cmpi eq, %10, %28 : vector<10x768xi32>
    %30 = arith.extui %29 : vector<10x768xi1> to vector<10x768xi32>
    %31 = arith.sitofp %30 : vector<10x768xi32> to vector<10x768xf32>
    %32 = arith.mulf %0, %31 : vector<10x768xf32>
    %cst_5 = arith.constant dense<0.000000e+00> : vector<768xf32>
    %33 = vector.multi_reduction <add>, %32, %cst_5 [0] : vector<10x768xf32> to vector<768xf32>
    %34 = vector.shape_cast %33 : vector<768xf32> to vector<1x768xf32>
    %cst_6 = arith.constant 0.000000e+00 : f32
    %35 = vector.broadcast %cst_6 : f32 to vector<1x768xf32>
    %36 = arith.select %7, %9, %35 : vector<1x768xi1>, vector<1x768xf32>
    %c0_7 = arith.constant 0 : index
    %c0_8 = arith.constant 0 : index
    %37 = vector.load %arg3[%c0_7, %c0_8] : memref<1x768xf32, #tpu.memory_space<vmem>>, vector<1x768xf32>
    tpu.vector_store %arg3[%c0_7, %c0_8], %36 {strides = array<i32>} : memref<1x768xf32, #tpu.memory_space<vmem>>, vector<1x768xf32>,
    %cst_9 = arith.constant 0.000000e+00 : f32
    %38 = vector.broadcast %cst_9 : f32 to vector<1x768xf32>
    %39 = arith.select %7, %20, %38 : vector<1x768xi1>, vector<1x768xf32>
    %c0_10 = arith.constant 0 : index
    %c0_11 = arith.constant 0 : index
    %40 = vector.load %arg4[%c0_10, %c0_11] : memref<1x768xf32, #tpu.memory_space<vmem>>, vector<1x768xf32>
    tpu.vector_store %arg4[%c0_10, %c0_11], %39 {strides = array<i32>} : memref<1x768xf32, #tpu.memory_space<vmem>>, vector<1x768xf32>,
    %41 = arith.subf %27, %34 : vector<1x768xf32>
    %cst_12 = arith.constant 0.000000e+00 : f32
    %42 = vector.broadcast %cst_12 : f32 to vector<1x768xf32>
    %43 = arith.select %7, %41, %42 : vector<1x768xi1>, vector<1x768xf32>
    %c0_13 = arith.constant 0 : index
    %c0_14 = arith.constant 0 : index
    %44 = vector.load %arg5[%c0_13, %c0_14] : memref<1x768xf32, #tpu.memory_space<vmem>>, vector<1x768xf32>
    tpu.vector_store %arg5[%c0_13, %c0_14], %43 {strides = array<i32>} : memref<1x768xf32, #tpu.memory_space<vmem>>, vector<1x768xf32>,
    return
  }
  func.func @transform_0(%arg0: i32) -> (i32, i32) {
    %c0_i32 = arith.constant 0 : i32
    %0 = arith.minsi %arg0, %c0_i32 : i32
    %c0_i32_0 = arith.constant 0 : i32
    %c0_i32_1 = arith.constant 0 : i32
    return %c0_i32_0, %0 : i32, i32
  }
  func.func @transform_1(%arg0: i32) -> (i32, i32) {
    %c0_i32 = arith.constant 0 : i32
    %0 = arith.minsi %arg0, %c0_i32 : i32
    %c0_i32_0 = arith.constant 0 : i32
    %c0_i32_1 = arith.constant 0 : i32
    return %c0_i32_0, %0 : i32, i32
  }
  func.func @transform_2(%arg0: i32) -> (i32, i32) {
    %c0_i32 = arith.constant 0 : i32
    %c0_i32_0 = arith.constant 0 : i32
    return %c0_i32, %arg0 : i32, i32
  }
  func.func @transform_3(%arg0: i32) -> (i32, i32) {
    %c0_i32 = arith.constant 0 : i32
    %c0_i32_0 = arith.constant 0 : i32
    return %c0_i32, %arg0 : i32, i32
  }
  func.func @transform_4(%arg0: i32) -> (i32, i32) {
    %c0_i32 = arith.constant 0 : i32
    %c0_i32_0 = arith.constant 0 : i32
    return %c0_i32, %arg0 : i32, i32
  }
}

module attributes {stable_mosaic.version = 11 : i64} {
  func.func @_esd_pairwise_kernel(%arg0: i32, %arg1: i32, %arg2: memref<640x1xf32, #tpu.memory_space<vmem>>, %arg3: memref<640x1xf32, #tpu.memory_space<vmem>>, %arg4: memref<1x384xf32, #tpu.memory_space<vmem>>, %arg5: memref<1x384xf32, #tpu.memory_space<vmem>>, %arg6: memref<1x384xf32, #tpu.memory_space<vmem>>, %arg7: memref<1x384xf32, #tpu.memory_space<vmem>>, %arg8: memref<1x384xf32, #tpu.memory_space<vmem>>) attributes {dimension_semantics = [#tpu.dimension_semantics<parallel>, #tpu.dimension_semantics<arbitrary>], iteration_bounds = array<i64: 2, 1>, scalar_prefetch = 0 : i64, scratch_operands = 2 : i64, tpu.core_type = #tpu.core_type<tc>, window_params = [{transform_indices = @transform_0, window_bounds = array<i64: 640, 1>}, {transform_indices = @transform_1, window_bounds = array<i64: 640, 1>}, {transform_indices = @transform_2, window_bounds = array<i64: 1, 384>}, {transform_indices = @transform_3, window_bounds = array<i64: 1, 384>}, {transform_indices = @transform_4, window_bounds = array<i64: 1, 384>}]} {
    %c0_i32 = arith.constant 0 : i32
    %0 = arith.cmpi eq, %arg1, %c0_i32 : i32
    %1 = arith.extui %0 : i1 to i32
    %c0_i32_0 = arith.constant 0 : i32
    %2 = arith.cmpi ne, %1, %c0_i32_0 : i32
    scf.if %2 {
      %cst_19 = arith.constant 0.000000e+00 : f32
      %31 = vector.broadcast %cst_19 : f32 to vector<1x384xf32>
      %c0_20 = arith.constant 0 : index
      %c0_21 = arith.constant 0 : index
      %32 = vector.load %arg7[%c0_20, %c0_21] : memref<1x384xf32, #tpu.memory_space<vmem>>, vector<1x384xf32>
      tpu.vector_store %arg7[%c0_20, %c0_21], %31 {strides = array<i32>} : memref<1x384xf32, #tpu.memory_space<vmem>>, vector<1x384xf32>,
      %cst_22 = arith.constant 0.000000e+00 : f32
      %33 = vector.broadcast %cst_22 : f32 to vector<1x384xf32>
      %c0_23 = arith.constant 0 : index
      %c0_24 = arith.constant 0 : index
      %34 = vector.load %arg8[%c0_23, %c0_24] : memref<1x384xf32, #tpu.memory_space<vmem>>, vector<1x384xf32>
      tpu.vector_store %arg8[%c0_23, %c0_24], %33 {strides = array<i32>} : memref<1x384xf32, #tpu.memory_space<vmem>>, vector<1x384xf32>,
    } else {
    }
    %c0 = arith.constant 0 : index
    %c0_1 = arith.constant 0 : index
    %3 = vector.load %arg2[%c0, %c0_1] : memref<640x1xf32, #tpu.memory_space<vmem>>, vector<640x1xf32>
    %c0_2 = arith.constant 0 : index
    %c0_3 = arith.constant 0 : index
    %4 = vector.load %arg3[%c0_2, %c0_3] : memref<640x1xf32, #tpu.memory_space<vmem>>, vector<640x1xf32>
    %c0_4 = arith.constant 0 : index
    %c0_5 = arith.constant 0 : index
    %5 = vector.load %arg4[%c0_4, %c0_5] : memref<1x384xf32, #tpu.memory_space<vmem>>, vector<1x384xf32>
    %6 = vector.broadcast %3 : vector<640x1xf32> to vector<640x384xf32>
    %7 = vector.broadcast %5 : vector<1x384xf32> to vector<640x384xf32>
    %8 = arith.cmpf ole, %6, %7 : vector<640x384xf32>
    %cst = arith.constant 0.000000e+00 : f32
    %9 = vector.shape_cast %4 : vector<640x1xf32> to vector<640x1xf32>
    %10 = vector.broadcast %9 : vector<640x1xf32> to vector<640x384xf32>
    %11 = vector.broadcast %cst : f32 to vector<640x384xf32>
    %12 = arith.select %8, %10, %11 : vector<640x384xi1>, vector<640x384xf32>
    %13 = arith.mulf %4, %4 : vector<640x1xf32>
    %cst_6 = arith.constant 0.000000e+00 : f32
    %14 = vector.shape_cast %13 : vector<640x1xf32> to vector<640x1xf32>
    %15 = vector.broadcast %14 : vector<640x1xf32> to vector<640x384xf32>
    %16 = vector.broadcast %cst_6 : f32 to vector<640x384xf32>
    %17 = arith.select %8, %15, %16 : vector<640x384xi1>, vector<640x384xf32>
    %c0_7 = arith.constant 0 : index
    %c0_8 = arith.constant 0 : index
    %18 = vector.load %arg7[%c0_7, %c0_8] : memref<1x384xf32, #tpu.memory_space<vmem>>, vector<1x384xf32>
    %cst_9 = arith.constant dense<0.000000e+00> : vector<384xf32>
    %19 = vector.multi_reduction <add>, %12, %cst_9 [0] : vector<640x384xf32> to vector<384xf32>
    %20 = vector.shape_cast %19 : vector<384xf32> to vector<1x384xf32>
    %21 = arith.addf %18, %20 : vector<1x384xf32>
    %c0_10 = arith.constant 0 : index
    %c0_11 = arith.constant 0 : index
    %22 = vector.load %arg7[%c0_10, %c0_11] : memref<1x384xf32, #tpu.memory_space<vmem>>, vector<1x384xf32>
    tpu.vector_store %arg7[%c0_10, %c0_11], %21 {strides = array<i32>} : memref<1x384xf32, #tpu.memory_space<vmem>>, vector<1x384xf32>,
    %c0_12 = arith.constant 0 : index
    %c0_13 = arith.constant 0 : index
    %23 = vector.load %arg8[%c0_12, %c0_13] : memref<1x384xf32, #tpu.memory_space<vmem>>, vector<1x384xf32>
    %cst_14 = arith.constant dense<0.000000e+00> : vector<384xf32>
    %24 = vector.multi_reduction <add>, %17, %cst_14 [0] : vector<640x384xf32> to vector<384xf32>
    %25 = vector.shape_cast %24 : vector<384xf32> to vector<1x384xf32>
    %26 = arith.addf %23, %25 : vector<1x384xf32>
    %c0_15 = arith.constant 0 : index
    %c0_16 = arith.constant 0 : index
    %27 = vector.load %arg8[%c0_15, %c0_16] : memref<1x384xf32, #tpu.memory_space<vmem>>, vector<1x384xf32>
    tpu.vector_store %arg8[%c0_15, %c0_16], %26 {strides = array<i32>} : memref<1x384xf32, #tpu.memory_space<vmem>>, vector<1x384xf32>,
    %c0_i32_17 = arith.constant 0 : i32
    %28 = arith.cmpi eq, %arg1, %c0_i32_17 : i32
    %29 = arith.extui %28 : i1 to i32
    %c0_i32_18 = arith.constant 0 : i32
    %30 = arith.cmpi ne, %29, %c0_i32_18 : i32
    scf.if %30 {
      %c0_19 = arith.constant 0 : index
      %c0_20 = arith.constant 0 : index
      %31 = vector.load %arg5[%c0_19, %c0_20] : memref<1x384xf32, #tpu.memory_space<vmem>>, vector<1x384xf32>
      %c0_21 = arith.constant 0 : index
      %c0_22 = arith.constant 0 : index
      %32 = vector.load %arg7[%c0_21, %c0_22] : memref<1x384xf32, #tpu.memory_space<vmem>>, vector<1x384xf32>
      %33 = arith.subf %32, %31 : vector<1x384xf32>
      %c0_23 = arith.constant 0 : index
      %c0_24 = arith.constant 0 : index
      %34 = vector.load %arg8[%c0_23, %c0_24] : memref<1x384xf32, #tpu.memory_space<vmem>>, vector<1x384xf32>
      %35 = arith.mulf %31, %31 : vector<1x384xf32>
      %36 = arith.subf %34, %35 : vector<1x384xf32>
      %cst_25 = arith.constant 6.390000e+02 : f32
      %37 = vector.broadcast %cst_25 : f32 to vector<1x384xf32>
      %38 = arith.divf %33, %37 : vector<1x384xf32>
      %cst_26 = arith.constant 6.380000e+02 : f32
      %39 = vector.broadcast %cst_26 : f32 to vector<1x384xf32>
      %40 = arith.divf %36, %39 : vector<1x384xf32>
      %41 = arith.mulf %38, %38 : vector<1x384xf32>
      %cst_27 = arith.constant 1.00156736 : f32
      %42 = vector.broadcast %cst_27 : f32 to vector<1x384xf32>
      %43 = arith.mulf %42, %41 : vector<1x384xf32>
      %44 = arith.subf %40, %43 : vector<1x384xf32>
      %45 = arith.mulf %38, %38 : vector<1x384xf32>
      %cst_28 = arith.constant 6.390000e+02 : f32
      %46 = vector.broadcast %cst_28 : f32 to vector<1x384xf32>
      %47 = arith.divf %44, %46 : vector<1x384xf32>
      %48 = arith.subf %45, %47 : vector<1x384xf32>
      %c0_29 = arith.constant 0 : index
      %c0_30 = arith.constant 0 : index
      %49 = vector.load %arg6[%c0_29, %c0_30] : memref<1x384xf32, #tpu.memory_space<vmem>>, vector<1x384xf32>
      tpu.vector_store %arg6[%c0_29, %c0_30], %48 {strides = array<i32>} : memref<1x384xf32, #tpu.memory_space<vmem>>, vector<1x384xf32>,
    } else {
    }
    return
  }
  func.func @transform_0(%arg0: i32, %arg1: i32) -> (i32, i32) {
    %c0_i32 = arith.constant 0 : i32
    %c0_i32_0 = arith.constant 0 : i32
    return %arg1, %c0_i32 : i32, i32
  }
  func.func @transform_1(%arg0: i32, %arg1: i32) -> (i32, i32) {
    %c0_i32 = arith.constant 0 : i32
    %c0_i32_0 = arith.constant 0 : i32
    return %arg1, %c0_i32 : i32, i32
  }
  func.func @transform_2(%arg0: i32, %arg1: i32) -> (i32, i32) {
    %c0_i32 = arith.constant 0 : i32
    %c0_i32_0 = arith.constant 0 : i32
    return %c0_i32, %arg0 : i32, i32
  }
  func.func @transform_3(%arg0: i32, %arg1: i32) -> (i32, i32) {
    %c0_i32 = arith.constant 0 : i32
    %c0_i32_0 = arith.constant 0 : i32
    return %c0_i32, %arg0 : i32, i32
  }
  func.func @transform_4(%arg0: i32, %arg1: i32) -> (i32, i32) {
    %c0_i32 = arith.constant 0 : i32
    %c0_i32_0 = arith.constant 0 : i32
    return %c0_i32, %arg0 : i32, i32
  }
}

</mosaic_0001>

<bundles_post_ra>
// kernel: esd_loss.2
= control target key start
LH: loop header
LB: loop body
LE: loop exit
PB: predicated region body
PF: predicated region fallthrough
CT: control target
= control target key end

     0   :  { %10 = vsyncpa [#allocation3], 0  ;;  %s931_s0 = inlined_call_operand.hbm [shape: f32[10,640], index: 0, kind: input, shape index: {}]   ;;  %s932_s1 = inlined_call_operand.vmem [shape: s32[1,640], index: 1, kind: input, shape index: {}]   ;;  %s933_s2 = inlined_call_operand.vmem [shape: f32[1,768], index: 2, kind: output, shape index: {0}]   ;;  %s934_s3 = inlined_call_operand.vmem [shape: f32[1,768], index: 3, kind: output, shape index: {1}]   ;;  %s935_s4 = inlined_call_operand.vmem [shape: f32[1,768], index: 4, kind: output, shape index: {2}]  }
   0x1   :  { %14 = vsyncadd [#allocation3], 256  ;;  %s15_s17 = sshll.u32 %s931_s0, 4  ;;  %s633_s18 = smov [#allocation2]   ;;  %s16_s17 = int_to_ptr.hbm [resolvable:$true] %s15_s17 }
   0x2   :  { %s17_s19 = sshll.u32 %s633_s18, 4  ;;  %s634_s20 = smov 640   ;;  %s18_s19 = int_to_ptr.vmem [resolvable:$true] %s17_s19 }
   0x3   :  { %s635_s21 = smov 768   ;;  %s636_s22 = smov 40  }
   0x4   :  { %23 = dma.hbm_to_vmem [thread:$0]  %s16_s17, 1280, %s18_s19, [#allocation3], %s634_s20, %s635_s21, %s636_s22  }
   0x5   :  { %631 = dma.done.wait [#allocation3], 1536  }
   0x6   :  { %632 = vsyncadd [#allocation3], 4294965760  ;;  %v666_v0 = vld [vmem:[#allocation2] sm:$0xff]  ;;  %v668_v1 = vld [vmem:[#allocation2 + $0x8] sm:$0xff]  ;;  %vm64_vm0 = vcmask 1041408   ;;  %v113_v34 = vlaneseq }
   0x7   :  { %v670_v2 = vld [vmem:[#allocation2 + $0x10] sm:$0xff]  ;;  %v672_v3 = vld [vmem:[#allocation2 + $0x18] sm:$0xff]  ;;  %v678_v6 = vld [vmem:[#allocation2 + $0x40] sm:$0x3] }
   0x8   :  { %v674_v4 = vld [vmem:[#allocation2 + $0x30] sm:$0x3]  ;;  %v676_v5 = vld [vmem:[#allocation2 + $0x38] sm:$0x3]  ;;  %v680_v7 = vld [vmem:[#allocation2 + $0x48] sm:$0x3] }
   0x9   :  { %v682_v8 = vld [vmem:[#allocation2 + $0x50] sm:$0x3]  ;;  %v684_v9 = vld [vmem:[#allocation2 + $0x58] sm:$0x3]  ;;  %v65_v10 = vsel %vm64_vm0, %v674_v4, -inf  ;;  %v73_v11 = vsel %vm64_vm0, %v676_v5, -inf }
   0xa   :  { %v81_v12 = vsel %vm64_vm0, %v678_v6, -inf  ;;  %v89_v13 = vsel %vm64_vm0, %v680_v7, -inf  ;;  %v694_v14 = vld [vmem:[#allocation2 + $0x20] sm:$0xff]  ;;  %v696_v15 = vld [vmem:[#allocation2 + $0x28] sm:$0xff]  ;;  %v66_v16 = vmax.f32 %v666_v0, %v65_v10  ;;  %v74_v17 = vmax.f32 %v668_v1, %v73_v11 }
   0xb   :  { %v82_v18 = vmax.f32 %v670_v2, %v81_v12  ;;  %v90_v19 = vmax.f32 %v672_v3, %v89_v13  ;;  %v97_v20 = vsel %vm64_vm0, %v682_v8, -inf  ;;  %v105_v21 = vsel %vm64_vm0, %v684_v9, -inf }
   0xc   :  { %v67_v22 = vrot.slane %v66_v16, 4  ;;  %v75_v23 = vrot.slane %v74_v17, 4  ;;  %v98_v26 = vmax.f32 %v694_v14, %v97_v20  ;;  %v106_v27 = vmax.f32 %v696_v15, %v105_v21 }
   0xd   :  { %v83_v24 = vrot.slane %v82_v18, 4  ;;  %v91_v25 = vrot.slane %v90_v19, 4  ;;  %v709_v47 = vshrl.u32 %v113_v34, 7 }
   0xe   :  { %v68_v28 = vmax.f32 %v66_v16, %v67_v22  ;;  %v76_v29 = vmax.f32 %v74_v17, %v75_v23  ;;  %v99_v32 = vrot.slane %v98_v26, 4  ;;  %v107_v33 = vrot.slane %v106_v27, 4 }
   0xf   :  { %v84_v30 = vmax.f32 %v82_v18, %v83_v24  ;;  %v92_v31 = vmax.f32 %v90_v19, %v91_v25  ;;  %v720_v60 = vadd.s32 8, %v709_v47 }
  0x10   :  { %v69_v35 = vrot.slane %v68_v28, 2  ;;  %v77_v36 = vrot.slane %v76_v29, 2  ;;  %v100_v39 = vmax.f32 %v98_v26, %v99_v32  ;;  %v108_v40 = vmax.f32 %v106_v27, %v107_v33 }
  0x11   :  { %v85_v37 = vrot.slane %v84_v30, 2  ;;  %v93_v38 = vrot.slane %v92_v31, 2 }
  0x12   :  { %v70_v41 = vmax.f32 %v68_v28, %v69_v35  ;;  %v78_v42 = vmax.f32 %v76_v29, %v77_v36  ;;  %v101_v45 = vrot.slane %v100_v39, 2  ;;  %v109_v46 = vrot.slane %v108_v40, 2 }
  0x13   :  { %v86_v43 = vmax.f32 %v84_v30, %v85_v37  ;;  %v94_v44 = vmax.f32 %v92_v31, %v93_v38 }
  0x14   :  { %v71_v48 = vrot.slane %v70_v41, 1  ;;  %v79_v49 = vrot.slane %v78_v42, 1  ;;  %v102_v52 = vmax.f32 %v100_v39, %v101_v45  ;;  %v110_v53 = vmax.f32 %v108_v40, %v109_v46 }
  0x15   :  { %v87_v50 = vrot.slane %v86_v43, 1  ;;  %v95_v51 = vrot.slane %v94_v44, 1 }
  0x16   :  { %v711_v54 = vmax.f32 %v70_v41, %v71_v48  ;;  %v713_v55 = vmax.f32 %v78_v42, %v79_v49  ;;  %v103_v58 = vrot.slane %v102_v52, 1  ;;  %v111_v59 = vrot.slane %v110_v53, 1 }
  0x17   :  { %v715_v56 = vmax.f32 %v86_v43, %v87_v50  ;;  %v717_v57 = vmax.f32 %v94_v44, %v95_v51 }
  0x18   :  { %vm116_vm1 = vcmp.eq.f32.partialorder %v666_v0, %v711_v54  ;;  %vm117_vm2 = vcmp.eq.f32.partialorder %v668_v1, %v713_v55  ;;  %v730_v61 = vmax.f32 %v102_v52, %v103_v58  ;;  %v732_v62 = vmax.f32 %v110_v53, %v111_v59 }
  0x19   :  { %vm118_vm3 = vcmp.eq.f32.partialorder %v670_v2, %v715_v56  ;;  %vm119_vm4 = vcmp.eq.f32.partialorder %v672_v3, %v717_v57  ;;  %vm122_vm5 = vcmp.eq.f32.partialorder %v674_v4, %v711_v54  ;;  %vm123_vm6 = vcmp.eq.f32.partialorder %v676_v5, %v713_v55 }
  0x1a   :  { %vm124_vm7 = vcmp.eq.f32.partialorder %v678_v6, %v715_v56  ;;  %vm125_vm8 = vcmp.eq.f32.partialorder %v680_v7, %v717_v57  ;;  %v128_v63 = vsel %vm116_vm1, %v709_v47, 10  ;;  %v129_v10 = vsel %vm117_vm2, %v709_v47, 10 }
  0x1b   :  { %vm120_vm9 = vcmp.eq.f32.partialorder %v694_v14, %v730_v61  ;;  %vm121_vm10 = vcmp.eq.f32.partialorder %v696_v15, %v732_v62  ;;  %vm126_vm11 = vcmp.eq.f32.partialorder %v682_v8, %v730_v61  ;;  %vm127_vm12 = vcmp.eq.f32.partialorder %v684_v9, %v732_v62 }
  0x1c   :  { %v130_v11 = vsel %vm118_vm3, %v709_v47, 10  ;;  %v131_v12 = vsel %vm119_vm4, %v709_v47, 10  ;;  %v132_v13 = vsel %vm120_vm9, %v709_v47, 10  ;;  %v133_v16 = vsel %vm121_vm10, %v709_v47, 10 }
  0x1d   :  { %v134_v17 = vsel %vm122_vm5, %v720_v60, 10  ;;  %v135_v18 = vsel %vm123_vm6, %v720_v60, 10  ;;  %v136_v15 = vsel %vm124_vm7, %v720_v60, 10  ;;  %v137_v19 = vsel %vm125_vm8, %v720_v60, 10 }
  0x1e   :  { %v138_v20 = vsel %vm126_vm11, %v720_v60, 10  ;;  %v139_v9 = vsel %vm127_vm12, %v720_v60, 10  ;;  %v140_v21 = vsel %vm64_vm0, %v134_v17, 2147483647  ;;  %v152_v22 = vsel %vm64_vm0, %v135_v18, 2147483647 }
  0x1f   :  { %vm141_vm13 = vcmp.lt.s32.totalorder %v128_v63, %v140_v21  ;;  %vm153_vm14 = vcmp.lt.s32.totalorder %v129_v10, %v152_v22  ;;  %v164_v23 = vsel %vm64_vm0, %v136_v15, 2147483647  ;;  %v176_v24 = vsel %vm64_vm0, %v137_v19, 2147483647 }
  0x20   :  { %v142_v25 = vsel %vm141_vm13, %v128_v63, %v140_v21  ;;  %v154_v26 = vsel %vm153_vm14, %v129_v10, %v152_v22  ;;  %vm165_vm15 = vcmp.lt.s32.totalorder %v130_v11, %v164_v23  ;;  %vm177_vm1 = vcmp.lt.s32.totalorder %v131_v12, %v176_v24 }
  0x21   :  { %v143_v27 = vrot.slane %v142_v25, 4  ;;  %v155_v28 = vrot.slane %v154_v26, 4  ;;  %v166_v29 = vsel %vm165_vm15, %v130_v11, %v164_v23  ;;  %v178_v30 = vsel %vm177_vm1, %v131_v12, %v176_v24 }
  0x22   :  { %v167_v31 = vrot.slane %v166_v29, 4  ;;  %v179_v32 = vrot.slane %v178_v30, 4  ;;  %v188_v33 = vsel %vm64_vm0, %v138_v20, 2147483647  ;;  %v200_v35 = vsel %vm64_vm0, %v139_v9, 2147483647 }
  0x23   :  { %vm144_vm2 = vcmp.lt.s32.totalorder %v142_v25, %v143_v27  ;;  %vm156_vm3 = vcmp.lt.s32.totalorder %v154_v26, %v155_v28  ;;  %vm189_vm4 = vcmp.lt.s32.totalorder %v132_v13, %v188_v33  ;;  %vm201_vm5 = vcmp.lt.s32.totalorder %v133_v16, %v200_v35 }
  0x24   :  { %v145_v36 = vsel %vm144_vm2, %v142_v25, %v143_v27  ;;  %v157_v37 = vsel %vm156_vm3, %v154_v26, %v155_v28  ;;  %vm168_vm6 = vcmp.lt.s32.totalorder %v166_v29, %v167_v31  ;;  %vm180_vm7 = vcmp.lt.s32.totalorder %v178_v30, %v179_v32 }
  0x25   :  { %v146_v38 = vrot.slane %v145_v36, 2  ;;  %v158_v39 = vrot.slane %v157_v37, 2  ;;  %v169_v40 = vsel %vm168_vm6, %v166_v29, %v167_v31  ;;  %v181_v41 = vsel %vm180_vm7, %v178_v30, %v179_v32 }
  0x26   :  { %vm217_vm8 = vcmask 1040384   ;;  %v170_v42 = vrot.slane %v169_v40, 2  ;;  %v182_v43 = vrot.slane %v181_v41, 2  ;;  %v190_v44 = vsel %vm189_vm4, %v132_v13, %v188_v33 }
  0x27   :  { %v202_v45 = vsel %vm201_vm5, %v133_v16, %v200_v35  ;;  %vm147_vm9 = vcmp.lt.s32.totalorder %v145_v36, %v146_v38  ;;  %vm159_vm10 = vcmp.lt.s32.totalorder %v157_v37, %v158_v39  ;;  %v191_v46 = vrot.slane %v190_v44, 4 }
  0x28   :  { %v203_v48 = vrot.slane %v202_v45, 4  ;;  %v148_v49 = vsel %vm147_vm9, %v145_v36, %v146_v38  ;;  %v160_v50 = vsel %vm159_vm10, %v157_v37, %v158_v39  ;;  %vm171_vm11 = vcmp.lt.s32.totalorder %v169_v40, %v170_v42 }
  0x29   :  { %vm183_vm12 = vcmp.lt.s32.totalorder %v181_v41, %v182_v43  ;;  %v149_v51 = vrot.slane %v148_v49, 1  ;;  %v161_v52 = vrot.slane %v160_v50, 1  ;;  %v172_v53 = vsel %vm171_vm11, %v169_v40, %v170_v42 }
  0x2a   :  { %v184_v58 = vsel %vm183_vm12, %v181_v41, %v182_v43  ;;  %v173_v59 = vrot.slane %v172_v53, 1  ;;  %vm192_vm13 = vcmp.lt.s32.totalorder %v190_v44, %v191_v46  ;;  %vm204_vm14 = vcmp.lt.s32.totalorder %v202_v45, %v203_v48 }
  0x2b   :  { %v185_v63 = vrot.slane %v184_v58, 1  ;;  %vm220_vm15 = vcmask 1043459   ;;  %vm150_vm1 = vcmp.lt.s32.totalorder %v148_v49, %v149_v51  ;;  %vm162_vm2 = vcmp.lt.s32.totalorder %v160_v50, %v161_v52 }
  0x2c   :  { %v193_v10 = vsel %vm192_vm13, %v190_v44, %v191_v46  ;;  %v205_v11 = vsel %vm204_vm14, %v202_v45, %v203_v48  ;;  %vm222_vm3 = vcmask 1044483   ;;  %v151_v12 = vsel %vm150_vm1, %v148_v49, %v149_v51 }
  0x2d   :  { %v163_v13 = vsel %vm162_vm2, %v160_v50, %v161_v52  ;;  %vm174_vm4 = vcmp.lt.s32.totalorder %v172_v53, %v173_v59  ;;  %vm186_vm5 = vcmp.lt.s32.totalorder %v184_v58, %v185_v63  ;;  %v194_v18 = vrot.slane %v193_v10, 2 }
  0x2e   :  { %v175_v16 = vsel %vm174_vm4, %v172_v53, %v173_v59  ;;  %v187_v17 = vsel %vm186_vm5, %v184_v58, %v185_v63  ;;  %v206_v15 = vrot.slane %v205_v11, 2  ;;  %v212_v19 = vrot.slane %v163_v13, 7 }
  0x2f   :  { %v213_v20 = vrot.slane %v175_v16, 6  ;;  %v214_v9 = vrot.slane %v187_v17, 5  ;;  %vm224_vm6 = vcmask 1042432   ;;  %vm195_vm7 = vcmp.lt.s32.totalorder %v193_v10, %v194_v18 }
  0x30   :  { %vm207_vm9 = vcmp.lt.s32.totalorder %v205_v11, %v206_v15  ;;  %v235_v21 = vrot.slane %v713_v55, 7  ;;  %v236_v22 = vrot.slane %v715_v56, 6  ;;  %v196_v23 = vsel %vm195_vm7, %v193_v10, %v194_v18 }
  0x31   :  { %v208_v24 = vsel %vm207_vm9, %v205_v11, %v206_v15  ;;  %v218_v25 = vsel %vm217_vm8, %v151_v12, %v212_v19  ;;  %v237_v26 = vrot.slane %v717_v57, 5  ;;  %v197_v27 = vrot.slane %v196_v23, 1  ;;  %v42_v11 = vld [vmem:[%s932_s1] sm:$0x3f] }
  0x32   :  { %v209_v28 = vrot.slane %v208_v24, 1  ;;  %v219_v29 = vsel %vm64_vm0, %v218_v25, %v213_v20  ;;  %v238_v30 = vrot.slane %v730_v61, 4  ;;  %v239_v31 = vrot.slane %v732_v62, 3 }
  0x33   :  { %v240_v32 = vsel %vm217_vm8, %v711_v54, %v235_v21  ;;  %v247_v33 = vsub.f32 %v666_v0, %v711_v54  ;;  %v248_v35 = vsub.f32 %v668_v1, %v713_v55  ;;  %vm198_vm10 = vcmp.lt.s32.totalorder %v196_v23, %v197_v27 }
  0x34   :  { %vm210_vm11 = vcmp.lt.s32.totalorder %v208_v24, %v209_v28  ;;  %v782_v36 = vsel %vm64_vm0, %v240_v32, %v236_v22  ;;  %v785_v37 = vsel %vm220_vm15, %v237_v26, %v238_v30  ;;  %v199_v38 = vsel %vm198_vm10, %v196_v23, %v197_v27 }
  0x35   :  { %v211_v39 = vsel %vm210_vm11, %v208_v24, %v209_v28  ;;  %v243_v62 = vsel %vm222_vm3, %v785_v37, %v239_v31  ;;  %v249_v40 = vsub.f32 %v670_v2, %v715_v56  ;;  %v215_v41 = vrot.slane %v199_v38, 4 }
  0x36   :  { %v216_v42 = vrot.slane %v211_v39, 3  ;;  %v244_v43 = vsel %vm224_vm6, %v782_v36, %v243_v62  ;;  %v250_v44 = vsub.f32 %v672_v3, %v717_v57  ;;  %v251_v45 = vsub.f32 %v694_v14, %v730_v61 }
  0x37   :  { %v253_v46 = vsub.f32 %v674_v4, %v711_v54  ;;  %v254_v48 = vsub.f32 %v676_v5, %v713_v55  ;;  %v255_v49 = vsub.f32 %v678_v6, %v715_v56  ;;  %v221_v50 = vsel %vm220_vm15, %v214_v9, %v215_v41 }
  0x38   :  { %v256_v51 = vsub.f32 %v680_v7, %v717_v57  ;;  %v257_v52 = vsub.f32 %v682_v8, %v730_v61  ;;  %v259_v53 = vmul.f32 1.442695, %v247_v33  ;;  %v223_v58 = vsel %vm222_vm3, %v221_v50, %v216_v42 }
  0x39   :  { %v261_v59 = vmul.f32 1.442695, %v248_v35  ;;  %v263_v63 = vmul.f32 1.442695, %v249_v40  ;;  %v265_v10 = vmul.f32 1.442695, %v250_v44  ;;  %v225_v12 = vsel %vm224_vm6, %v219_v29, %v223_v58 }
  0x3a   :  { %577 = vpow2.f32 %v259_v53  ;;  %v267_v13 = vmul.f32 1.442695, %v251_v45  ;;  %v271_v16 = vmul.f32 1.442695, %v253_v46  ;;  %vm226_vm12 = vcmp.eq.s32.totalorder %v42_v11, %v225_v12 }
  0x3b   :  { %579 = vpow2.f32 %v261_v59  ;;  %v273_v17 = vmul.f32 1.442695, %v254_v48  ;;  %v275_v18 = vmul.f32 1.442695, %v255_v49  ;;  %v637_v15 = vmov 0.0  }
  0x3c   :  { %v559_v19 = vsel %vm226_vm12, 1.0, %v637_v15  ;;  %581 = vpow2.f32 %v263_v63  ;;  %v277_v20 = vmul.f32 1.442695, %v256_v51  ;;  %v279_v9 = vmul.f32 1.442695, %v257_v52 }
  0x3d   :  { %v814_v21 = vsub.f32 %v559_v19, %v244_v43  ;;  %583 = vpow2.f32 %v265_v10  ;;  %v349_v22 = vperm.slane %v42_v11, 0  ;;  %v350_v23 = vperm.slane %v42_v11, 1 }
  0x3e   :  { %585 = vpow2.f32 %v267_v13  ;;  %v351_v24 = vperm.slane %v42_v11, 2  ;;  %v352_v25 = vperm.slane %v42_v11, 3  ;;  %v353_v26 = vperm.slane %v42_v11, 4 }
  0x3f   :  { %587 = vpow2.f32 %v271_v16  ;;  %vm817_vm13 = vcmp.eq.s32.totalorder %v709_v47, %v349_v22  ;;  %vm822_vm14 = vcmp.eq.s32.totalorder %v709_v47, %v350_v23  ;;  %vm827_vm1 = vcmp.eq.s32.totalorder %v720_v60, %v349_v22 }
  0x40   :  { %v578_v30 = vpop.eup %577  ;;  %589 = vpow2.f32 %v273_v17  ;;  %vm357_vm2 = vcmp.eq.s32.totalorder %v709_v47, %v351_v24  ;;  %vm358_vm4 = vcmp.eq.s32.totalorder %v709_v47, %v352_v25  ;;  %vm359_vm5 = vcmp.eq.s32.totalorder %v709_v47, %v353_v26 }
  0x41   :  { %v580_v31 = vpop.eup %579  ;;  %591 = vpow2.f32 %v275_v18  ;;  %vm362_vm7 = vcmp.eq.s32.totalorder %v720_v60, %v350_v23  ;;  %vm363_vm9 = vcmp.eq.s32.totalorder %v720_v60, %v351_v24  ;;  %vm364_vm10 = vcmp.eq.s32.totalorder %v720_v60, %v352_v25 }
  0x42   :  { %v582_v32 = vpop.eup %581  ;;  %593 = vpow2.f32 %v277_v20  ;;  %vm365_vm11 = vcmp.eq.s32.totalorder %v720_v60, %v353_v26  ;;  %v560_v33 = vsel %vm817_vm13, 1.0, %v637_v15  ;;  %v561_v47 = vsel %vm822_vm14, 1.0, %v637_v15 }
  0x43   :  { %v584_v35 = vpop.eup %583  ;;  %595 = vpow2.f32 %v279_v9  ;;  %v562_v38 = vsel %vm357_vm2, 1.0, %v637_v15  ;;  %v563_v39 = vsel %vm358_vm4, 1.0, %v637_v15  ;;  %v564_v62 = vsel %vm359_vm5, 1.0, %v637_v15 }
  0x44   :  { %v586_v40 = vpop.eup %585  ;;  %v566_v60 = vsel %vm827_vm1, 1.0, %v637_v15  ;;  %v567_v41 = vsel %vm362_vm7, 1.0, %v637_v15  ;;  %v568_v42 = vsel %vm363_vm9, 1.0, %v637_v15  ;;  %v569_v43 = vsel %vm364_vm10, 1.0, %v637_v15 }
  0x45   :  { %v588_v44 = vpop.eup %587  ;;  %v570_v45 = vsel %vm365_vm11, 1.0, %v637_v15  ;;  %v391_v46 = vmul.f32 %v560_v33, %v666_v0  ;;  %v392_v48 = vmul.f32 %v561_v47, %v668_v1  ;;  %v393_v49 = vmul.f32 %v562_v38, %v670_v2 }
  0x46   :  { %v590_v50 = vpop.eup %589  ;;  %v283_v51 = vsel %vm64_vm0, %v588_v44, 0.0  ;;  %v859_v52 = vmul.f32 %v563_v39, %v672_v3  ;;  %v862_v53 = vmul.f32 %v564_v62, %v694_v14  ;;  %v397_v58 = vmul.f32 %v566_v60, %v674_v4 }
  0x47   :  { %v592_v59 = vpop.eup %591  ;;  %v284_v63 = vadd.f32 %v578_v30, %v283_v51  ;;  %v291_v10 = vsel %vm64_vm0, %v590_v50, 0.0  ;;  %v398_v0 = vmul.f32 %v567_v41, %v676_v5  ;;  %v399_v1 = vmul.f32 %v568_v42, %v678_v6 }
  0x48   :  { %v594_v2 = vpop.eup %593  ;;  %v292_v11 = vadd.f32 %v580_v31, %v291_v10  ;;  %v299_v12 = vsel %vm64_vm0, %v592_v59, 0.0  ;;  %v400_v3 = vmul.f32 %v569_v43, %v680_v7  ;;  %v871_v13 = vmul.f32 %v570_v45, %v682_v8 }
  0x49   :  { %v596_v14 = vpop.eup %595  ;;  %v285_v16 = vrot.slane %v284_v63, 4  ;;  %v300_v4 = vadd.f32 %v582_v32, %v299_v12  ;;  %v307_v17 = vsel %vm64_vm0, %v594_v2, 0.0  ;;  %v403_v18 = vsel %vm64_vm0, %v397_v58, 0.0 }
  0x4a   :  { %v293_v19 = vrot.slane %v292_v11, 4  ;;  %v308_v5 = vadd.f32 %v584_v35, %v307_v17  ;;  %v315_v6 = vsel %vm64_vm0, %v596_v14, 0.0  ;;  %v404_v20 = vadd.f32 %v403_v18, %v391_v46 }
  0x4b   :  { %v286_v9 = vadd.f32 %v285_v16, %v284_v63  ;;  %v301_v22 = vrot.slane %v300_v4, 4  ;;  %v316_v23 = vadd.f32 %v586_v40, %v315_v6  ;;  %v411_v7 = vsel %vm64_vm0, %v398_v0, 0.0 }
  0x4c   :  { %v294_v24 = vadd.f32 %v293_v19, %v292_v11  ;;  %v309_v8 = vrot.slane %v308_v5, 4  ;;  %v405_v25 = vrot.slane %v404_v20, 4  ;;  %v412_v26 = vadd.f32 %v411_v7, %v392_v48 }
  0x4d   :  { %v287_v27 = vrot.slane %v286_v9, 2  ;;  %v302_v28 = vadd.f32 %v301_v22, %v300_v4  ;;  %v317_v29 = vrot.slane %v316_v23, 4  ;;  %v419_v30 = vsel %vm64_vm0, %v399_v1, 0.0 }
  0x4e   :  { %v295_v31 = vrot.slane %v294_v24, 2  ;;  %v310_v32 = vadd.f32 %v309_v8, %v308_v5  ;;  %v406_v33 = vadd.f32 %v405_v25, %v404_v20  ;;  %v413_v47 = vrot.slane %v412_v26, 4 }
  0x4f   :  { %v288_v35 = vadd.f32 %v287_v27, %v286_v9  ;;  %v303_v38 = vrot.slane %v302_v28, 2  ;;  %v318_v39 = vadd.f32 %v317_v29, %v316_v23  ;;  %v420_v62 = vadd.f32 %v419_v30, %v393_v49 }
  0x50   :  { %v296_v40 = vadd.f32 %v295_v31, %v294_v24  ;;  %v311_v60 = vrot.slane %v310_v32, 2  ;;  %v407_v41 = vrot.slane %v406_v33, 2  ;;  %v414_v42 = vadd.f32 %v413_v47, %v412_v26 }
  0x51   :  { %v289_v43 = vrot.slane %v288_v35, 1  ;;  %v304_v44 = vadd.f32 %v303_v38, %v302_v28  ;;  %v319_v45 = vrot.slane %v318_v39, 2  ;;  %v421_v46 = vrot.slane %v420_v62, 4 }
  0x52   :  { %v297_v48 = vrot.slane %v296_v40, 1  ;;  %v312_v50 = vadd.f32 %v311_v60, %v310_v32  ;;  %v408_v51 = vadd.f32 %v407_v41, %v406_v33  ;;  %v415_v58 = vrot.slane %v414_v42, 2 }
  0x53   :  { %v290_v59 = vadd.f32 %v289_v43, %v288_v35  ;;  %v305_v63 = vrot.slane %v304_v44, 1  ;;  %v320_v10 = vadd.f32 %v319_v45, %v318_v39  ;;  %v422_v0 = vadd.f32 %v421_v46, %v420_v62 }
  0x54   :  { %v298_v1 = vadd.f32 %v297_v48, %v296_v40  ;;  %v313_v2 = vrot.slane %v312_v50, 1  ;;  %v409_v11 = vrot.slane %v408_v51, 1  ;;  %v416_v49 = vadd.f32 %v415_v58, %v414_v42 }
  0x55   :  { %v306_v12 = vadd.f32 %v305_v63, %v304_v44  ;;  %v321_v14 = vrot.slane %v320_v10, 1  ;;  %597 = vlog2.f32 %v290_v59  ;;  %v423_v16 = vrot.slane %v422_v0, 2 }
  0x56   :  { %v314_v4 = vadd.f32 %v313_v2, %v312_v50  ;;  %599 = vlog2.f32 %v298_v1  ;;  %v878_v17 = vadd.f32 %v409_v11, %v408_v51  ;;  %v417_v18 = vrot.slane %v416_v49, 1 }
  0x57   :  { %v322_v19 = vadd.f32 %v321_v14, %v320_v10  ;;  %601 = vlog2.f32 %v306_v12  ;;  %v424_v5 = vadd.f32 %v423_v16, %v422_v0  ;;  %v427_v6 = vsel %vm64_vm0, %v400_v3, 0.0 }
  0x58   :  { %603 = vlog2.f32 %v314_v4  ;;  %v418_v20 = vadd.f32 %v417_v18, %v416_v49  ;;  %v428_v9 = vadd.f32 %v427_v6, %v859_v52  ;;  %v435_v22 = vsel %vm64_vm0, %v871_v13, 0.0 }
  0x59   :  { %605 = vlog2.f32 %v322_v19  ;;  %v425_v23 = vrot.slane %v424_v5, 1  ;;  %v436_v7 = vadd.f32 %v435_v22, %v862_v53  ;;  %v467_v24 = vrot.slane %v637_v15, 3 }
  0x5a   :  { %v429_v8 = vrot.slane %v428_v9, 4  ;;  %vm887_vm12 = vcmp.lt.s32.totalorder %v113_v34, 768  ;;  %v480_v3 = vperm.slane %v814_v21, 0  ;;  %v481_v26 = vperm.slane %v814_v21, 1 }
  0x5b   :  { %v598_v52 = vpop.eup %597  ;;  %v426_v27 = vadd.f32 %v425_v23, %v424_v5  ;;  %v437_v28 = vrot.slane %v436_v7, 4  ;;  %v471_v13 = vsel %vm222_vm3, %v785_v37, %v467_v24  ;;  %v482_v53 = vperm.slane %v814_v21, 2 }
  0x5c   :  { %v600_v29 = vpop.eup %599  ;;  %v332_v15 = vmul.f32 0.6931472, %v598_v52  ;;  %v430_v30 = vadd.f32 %v429_v8, %v428_v9  ;;  %v472_v34 = vsel %vm224_vm6, %v782_v36, %v471_v13  ;;  %v483_v31 = vperm.slane %v814_v21, 3 }
  0x5d   :  { %v602_v32 = vpop.eup %601  ;;  %v334_v33 = vmul.f32 0.6931472, %v600_v29  ;;  %v438_v47 = vadd.f32 %v437_v28, %v436_v7  ;;  %478 = vst.msk [vmem:[%s933_s2] sm:$0x3f] %vm887_vm12, %v472_v34  ;;  %v484_v37 = vperm.slane %v814_v21, 4  ;;  %v504_v35 = vrot.slane %v481_v26, 7 }
  0x5e   :  { %v604_v38 = vpop.eup %603  ;;  %v336_v39 = vmul.f32 0.6931472, %v602_v32  ;;  %v343_v62 = vadd.f32 %v332_v15, %v711_v54  ;;  %v431_v40 = vrot.slane %v430_v30, 2  ;;  %v505_v36 = vrot.slane %v482_v53, 6 }
  0x5f   :  { %v606_v60 = vpop.eup %605  ;;  %v338_v41 = vmul.f32 0.6931472, %v604_v38  ;;  %v344_v42 = vadd.f32 %v334_v33, %v713_v55  ;;  %v439_v43 = vrot.slane %v438_v47, 2  ;;  %v506_v44 = vrot.slane %v483_v31, 5 }
  0x60   :  { %v340_v45 = vmul.f32 0.6931472, %v606_v60  ;;  %v345_v46 = vadd.f32 %v336_v39, %v715_v56  ;;  %v432_v48 = vadd.f32 %v431_v40, %v430_v30  ;;  %v507_v50 = vrot.slane %v484_v37, 4 }
  0x61   :  { %v346_v21 = vadd.f32 %v338_v41, %v717_v57  ;;  %v440_v51 = vadd.f32 %v439_v43, %v438_v47  ;;  %v509_v58 = vsel %vm217_vm8, %v480_v3, %v504_v35  ;;  %v516_v54 = vsub.f32 %v343_v62, %v878_v17 }
  0x62   :  { %v347_v59 = vadd.f32 %v340_v45, %v730_v61  ;;  %v433_v63 = vrot.slane %v432_v48, 1  ;;  %v510_v10 = vsel %vm64_vm0, %v509_v58, %v505_v36  ;;  %v511_v55 = vsel %vm220_vm15, %v506_v44, %v507_v50 }
  0x63   :  { %v441_v0 = vrot.slane %v440_v51, 1  ;;  %v512_v1 = vsel %vm222_vm3, %v511_v55, %v467_v24  ;;  %v517_v56 = vsub.f32 %v344_v42, %v418_v20  ;;  %v518_v2 = vsub.f32 %v345_v46, %v426_v27 }
  0x64   :  { %v434_v11 = vadd.f32 %v433_v63, %v432_v48  ;;  %v513_v57 = vsel %vm224_vm6, %v510_v10, %v512_v1 }
  0x65   :  { %v442_v49 = vadd.f32 %v441_v0, %v440_v51  ;;  %515 = vst.msk [vmem:[%s934_s3] sm:$0x3f] %vm887_vm12, %v513_v57  ;;  %v534_v61 = vrot.slane %v517_v56, 7  ;;  %v535_v14 = vrot.slane %v518_v2, 6 }
  0x66   :  { %v519_v12 = vsub.f32 %v346_v21, %v434_v11 }
  0x67   :  { %v520_v16 = vsub.f32 %v347_v59, %v442_v49  ;;  %v539_v4 = vsel %vm217_vm8, %v516_v54, %v534_v61 }
  0x68   :  { %v536_v17 = vrot.slane %v519_v12, 5  ;;  %v540_v19 = vsel %vm64_vm0, %v539_v4, %v535_v14 }
  0x69   :  { %v537_v18 = vrot.slane %v520_v16, 4 }
  0x6b   :  { %v541_v5 = vsel %vm220_vm15, %v536_v17, %v537_v18 }
  0x6c   :  { %v542_v6 = vsel %vm222_vm3, %v541_v5, %v467_v24 }
  0x6d   :  { %v543_v20 = vsel %vm224_vm6, %v540_v19, %v542_v6 }
  0x6e   :  { %545 = vst.msk [vmem:[%s935_s4] sm:$0x3f] %vm887_vm12, %v543_v20 }
  0x6f   :  { %558 = vsyncpa [#allocation3], 1 }

// kernel: esd_loss.3
= control target key start
LH: loop header
LB: loop body
LE: loop exit
PB: predicated region body
PF: predicated region fallthrough
CT: control target
= control target key end

     0   :  { %s3330_s15 = smov 0   ;;  %s3332_s16 = smov 0   ;;  %s6418_s0 = inlined_call_operand.vmem [shape: f32[768,1], index: 0, kind: input, shape index: {}]   ;;  %s6419_s1 = inlined_call_operand.vmem [shape: f32[768,1], index: 1, kind: input, shape index: {}]   ;;  %s6420_s2 = inlined_call_operand.vmem [shape: f32[1,768], index: 2, kind: input, shape index: {}]   ;;  %s6421_s3 = inlined_call_operand.vmem [shape: f32[1,768], index: 3, kind: input, shape index: {}]   ;;  %s6422_s4 = inlined_call_operand.vmem [shape: f32[1,768], index: 4, kind: output, shape index: {}]  }
   0x1   :  { %s3334_s17 = smov 0  }
   0x2 LB: > { %s26_s18 = sadd.s32 1, %s3295_s16  ;;  %p3159_p0 = scmp.ge.s32.totalorder %s3299_s17, 1  ;;  %s3299_s17 = sphi %s3334_s17, %s14_s17   ;;  %s3295_s16 = sphi %s3332_s16, %s7117_s16   ;;  %s3291_s15 = sphi %s3330_s15, %s7116_s15  }
   0x3   : > { %p28_p1 = scmp.ge.s32.totalorder %s26_s18, 2  ;;  %p222_p2 = scmp.lt.s32.totalorder %s3299_s17, 3 }
   0x5   : > { %s7119_s18 = smov (%p28_p1, %s26_s18), 0  ;;  %p223_p3 = pnand %p3159_p0, %p222_p2 }
   0x7   : > { %226 = sbr.rel (%p223_p3) target bundleno = 806 (0x326), region = 36 }
   0xc   : > { %v325_v0 = vld [vmem:[%s6418_s0 + $0x20] sm:$0xff]  ;;  %v323_v1 = vld [vmem:[%s6418_s0 + $0x10] sm:$0xff]  ;;  %v3301_v3 = vmov 0   ;;  %v326_v4 = vld [vmem:[%s6418_s0 + $0x28] sm:$0xff]  ;;  %s296_s7 = smul.u32 3, %s3291_s15 }
   0xd   : > { %v321_v2 = vld [vmem:[%s6418_s0] sm:$0xff]  ;;  %3192 = vset.pattern.permute.xlu2 %v3301_v3  ;;  %3191 = vset.pattern.permute.xlu1 %v3301_v3  ;;  %v324_v5 = vld [vmem:[%s6418_s0 + $0x18] sm:$0xff]  ;;  %v322_v6 = vld [vmem:[%s6418_s0 + $0x8] sm:$0xff] }
   0xe   : > { %3190 = vset.pattern.permute.xlu0 %v3301_v3  ;;  %504 = vperm.xlu2 %3192, %v325_v0   ;;  %v329_v7 = vld [vmem:[%s6418_s0 + $0x40] sm:$0xff]  ;;  %v328_v8 = vld [vmem:[%s6418_s0 + $0x38] sm:$0xff]  ;;  %v327_v9 = vld [vmem:[%s6418_s0 + $0x30] sm:$0xff]  ;;  %p297_p4 = scmp.lt.s32.totalorder %s296_s7, 5 }
   0xf   : > { %494 = vperm.xlu1 %3191, %v323_v1   ;;  %484 = vperm.xlu0 %3190, %v321_v2   ;;  %v332_v10 = vld [vmem:[%s6418_s0 + $0x58] sm:$0xff]  ;;  %v331_v11 = vld [vmem:[%s6418_s0 + $0x50] sm:$0xff]  ;;  %v330_v12 = vld [vmem:[%s6418_s0 + $0x48] sm:$0xff] }
  0x10   : > { %v335_v13 = vld [vmem:[%s6418_s0 + $0x70] sm:$0xff]  ;;  %v334_v14 = vld [vmem:[%s6418_s0 + $0x68] sm:$0xff]  ;;  %v333_v15 = vld [vmem:[%s6418_s0 + $0x60] sm:$0xff]  ;;  %s7121_s7 = smov (!%p297_p4, %s296_s7), 5 }
  0x11   : > { %v338_v16 = vld [vmem:[%s6418_s0 + $0x88] sm:$0xff]  ;;  %v337_v17 = vld [vmem:[%s6418_s0 + $0x80] sm:$0xff]  ;;  %v336_v18 = vld [vmem:[%s6418_s0 + $0x78] sm:$0xff]  ;;  %s299_s25 = scalar_lea.vmem %s6420_s2, %s7121_s7  ;;  %s304_s20 = scalar_lea.vmem %s6421_s3, %s7121_s7 }
  0x12   : > { %v341_v19 = vld [vmem:[%s6418_s0 + $0xa0] sm:$0xff]  ;;  %v340_v20 = vld [vmem:[%s6418_s0 + $0x98] sm:$0xff]  ;;  %v339_v21 = vld [vmem:[%s6418_s0 + $0x90] sm:$0xff]  ;;  %s309_s23 = scalar_lea.vmem %s6422_s4, %s7121_s7 }
  0x13   : > { %v344_v22 = vld [vmem:[%s6418_s0 + $0xb8] sm:$0xff]  ;;  %v343_v23 = vld [vmem:[%s6418_s0 + $0xb0] sm:$0xff]  ;;  %v342_v24 = vld [vmem:[%s6418_s0 + $0xa8] sm:$0xff] }
  0x14   : > { %v347_v25 = vld [vmem:[%s6418_s0 + $0xd0] sm:$0xff]  ;;  %v346_v26 = vld [vmem:[%s6418_s0 + $0xc8] sm:$0xff]  ;;  %v345_v27 = vld [vmem:[%s6418_s0 + $0xc0] sm:$0xff] }
  0x15   : > { %v350_v28 = vld [vmem:[%s6418_s0 + $0xe8] sm:$0xff]  ;;  %v349_v29 = vld [vmem:[%s6418_s0 + $0xe0] sm:$0xff]  ;;  %v348_v30 = vld [vmem:[%s6418_s0 + $0xd8] sm:$0xff] }
  0x16   : > { %509 = vperm.xlu2 %3192, %v326_v4   ;;  %v353_v31 = vld [vmem:[%s6418_s0 + $0x100] sm:$0xff]  ;;  %v352_v32 = vld [vmem:[%s6418_s0 + $0xf8] sm:$0xff]  ;;  %v351_v33 = vld [vmem:[%s6418_s0 + $0xf0] sm:$0xff] }
  0x17   : > { %499 = vperm.xlu1 %3191, %v324_v5   ;;  %489 = vperm.xlu0 %3190, %v322_v6   ;;  %v356_v34 = vld [vmem:[%s6418_s0 + $0x118] sm:$0xff]  ;;  %v355_v35 = vld [vmem:[%s6418_s0 + $0x110] sm:$0xff]  ;;  %v354_v36 = vld [vmem:[%s6418_s0 + $0x108] sm:$0xff] }
  0x18   : > { %v359_v38 = vld [vmem:[%s6418_s0 + $0x130] sm:$0xff]  ;;  %v358_v39 = vld [vmem:[%s6418_s0 + $0x128] sm:$0xff]  ;;  %v357_v40 = vld [vmem:[%s6418_s0 + $0x120] sm:$0xff] }
  0x19   : > { %v362_v42 = vld [vmem:[%s6418_s0 + $0x148] sm:$0xff]  ;;  %v361_v43 = vld [vmem:[%s6418_s0 + $0x140] sm:$0xff]  ;;  %v360_v44 = vld [vmem:[%s6418_s0 + $0x138] sm:$0xff] }
  0x1a   : > { %v365_v46 = vld [vmem:[%s6418_s0 + $0x160] sm:$0xff]  ;;  %v364_v47 = vld [vmem:[%s6418_s0 + $0x158] sm:$0xff]  ;;  %v363_v48 = vld [vmem:[%s6418_s0 + $0x150] sm:$0xff] }
  0x1b   : > { %v368_v52 = vld [vmem:[%s6418_s0 + $0x178] sm:$0xff]  ;;  %v367_v53 = vld [vmem:[%s6418_s0 + $0x170] sm:$0xff]  ;;  %v366_v54 = vld [vmem:[%s6418_s0 + $0x168] sm:$0xff] }
  0x1c   : > { %v371_v58 = vld [vmem:[%s6418_s0 + $0x190] sm:$0xff]  ;;  %v370_v59 = vld [vmem:[%s6418_s0 + $0x188] sm:$0xff]  ;;  %v369_v60 = vld [vmem:[%s6418_s0 + $0x180] sm:$0xff] }
  0x1d   : > { %v374_v0 = vld [vmem:[%s6418_s0 + $0x1a8] sm:$0xff]  ;;  %v373_v1 = vld [vmem:[%s6418_s0 + $0x1a0] sm:$0xff]  ;;  %v372_v2 = vld [vmem:[%s6418_s0 + $0x198] sm:$0xff] }
  0x1e   : > { %524 = vperm.xlu2 %3192, %v329_v7   ;;  %v377_v6 = vld [vmem:[%s6418_s0 + $0x1c0] sm:$0xff]  ;;  %v376_v7 = vld [vmem:[%s6418_s0 + $0x1b8] sm:$0xff] }
  0x1f   : > { %519 = vperm.xlu1 %3191, %v328_v8   ;;  %514 = vperm.xlu0 %3190, %v327_v9   ;;  %v375_v8 = vld [vmem:[%s6418_s0 + $0x1b0] sm:$0xff] }
  0x26   : > { %539 = vperm.xlu2 %3192, %v332_v10  }
  0x27   : > { %534 = vperm.xlu1 %3191, %v331_v11   ;;  %529 = vperm.xlu0 %3190, %v330_v12   ;;  %v380_v12 = vld [vmem:[%s6418_s0 + $0x1d8] sm:$0xff] }
  0x2e   : > { %554 = vperm.xlu2 %3192, %v335_v13   ;;  %v379_v13 = vld [vmem:[%s6418_s0 + $0x1d0] sm:$0xff] }
  0x2f   : > { %549 = vperm.xlu1 %3191, %v334_v14   ;;  %544 = vperm.xlu0 %3190, %v333_v15   ;;  %v378_v14 = vld [vmem:[%s6418_s0 + $0x1c8] sm:$0xff] }
  0x36   : > { %569 = vperm.xlu2 %3192, %v338_v16  }
  0x37   : > { %564 = vperm.xlu1 %3191, %v337_v17   ;;  %559 = vperm.xlu0 %3190, %v336_v18   ;;  %v383_v18 = vld [vmem:[%s6418_s0 + $0x1f0] sm:$0xff] }
  0x3e   : > { %584 = vperm.xlu2 %3192, %v341_v19   ;;  %v382_v19 = vld [vmem:[%s6418_s0 + $0x1e8] sm:$0xff] }
  0x3f   : > { %579 = vperm.xlu1 %3191, %v340_v20   ;;  %574 = vperm.xlu0 %3190, %v339_v21   ;;  %v381_v20 = vld [vmem:[%s6418_s0 + $0x1e0] sm:$0xff] }
  0x46   : > { %599 = vperm.xlu2 %3192, %v344_v22  }
  0x47   : > { %594 = vperm.xlu1 %3191, %v343_v23   ;;  %589 = vperm.xlu0 %3190, %v342_v24   ;;  %v386_v24 = vld [vmem:[%s6418_s0 + $0x208] sm:$0xff] }
  0x4e   : > { %614 = vperm.xlu2 %3192, %v347_v25   ;;  %v385_v25 = vld [vmem:[%s6418_s0 + $0x200] sm:$0xff] }
  0x4f   : > { %609 = vperm.xlu1 %3191, %v346_v26   ;;  %604 = vperm.xlu0 %3190, %v345_v27   ;;  %v384_v26 = vld [vmem:[%s6418_s0 + $0x1f8] sm:$0xff] }
  0x56   : > { %629 = vperm.xlu2 %3192, %v350_v28  }
  0x57   : > { %624 = vperm.xlu1 %3191, %v349_v29   ;;  %619 = vperm.xlu0 %3190, %v348_v30   ;;  %v389_v30 = vld [vmem:[%s6418_s0 + $0x220] sm:$0xff] }
  0x5e   : > { %644 = vperm.xlu2 %3192, %v353_v31   ;;  %v388_v31 = vld [vmem:[%s6418_s0 + $0x218] sm:$0xff] }
  0x5f   : > { %639 = vperm.xlu1 %3191, %v352_v32   ;;  %634 = vperm.xlu0 %3190, %v351_v33   ;;  %v387_v32 = vld [vmem:[%s6418_s0 + $0x210] sm:$0xff] }
  0x66   : > { %659 = vperm.xlu2 %3192, %v356_v34  }
  0x67   : > { %654 = vperm.xlu1 %3191, %v355_v35   ;;  %649 = vperm.xlu0 %3190, %v354_v36   ;;  %v392_v36 = vld [vmem:[%s6418_s0 + $0x238] sm:$0xff] }
  0x68   : > { %v3458_v37 = vpop.permute.xlu2 %504 }
  0x6e   : > { %674 = vperm.xlu2 %3192, %v359_v38   ;;  %v391_v38 = vld [vmem:[%s6418_s0 + $0x230] sm:$0xff] }
  0x6f   : > { %669 = vperm.xlu1 %3191, %v358_v39   ;;  %664 = vperm.xlu0 %3190, %v357_v40   ;;  %v390_v39 = vld [vmem:[%s6418_s0 + $0x228] sm:$0xff] }
  0x70   : > { %v3469_v41 = vpop.permute.xlu2 %509 }
  0x76   : > { %689 = vperm.xlu2 %3192, %v362_v42  }
  0x77   : > { %684 = vperm.xlu1 %3191, %v361_v43   ;;  %679 = vperm.xlu0 %3190, %v360_v44   ;;  %v395_v44 = vld [vmem:[%s6418_s0 + $0x250] sm:$0xff] }
  0x78   : > { %v3480_v45 = vpop.permute.xlu2 %524 }
  0x7e   : > { %704 = vperm.xlu2 %3192, %v365_v46   ;;  %v394_v46 = vld [vmem:[%s6418_s0 + $0x248] sm:$0xff] }
  0x7f   : > { %699 = vperm.xlu1 %3191, %v364_v47   ;;  %694 = vperm.xlu0 %3190, %v363_v48   ;;  %v393_v47 = vld [vmem:[%s6418_s0 + $0x240] sm:$0xff] }
  0x80   : > { %v3491_v49 = vpop.permute.xlu2 %539 }
  0x81   : > { %v3493_v50 = vpop.permute.xlu1 %494  ;;  %v3495_v51 = vpop.permute.xlu0 %484 }
  0x82   : > { %6750 = vst [vmem:[#allocation4_spill] sm:$0xff] %v3495_v51 }
  0x86   : > { %719 = vperm.xlu2 %3192, %v368_v52  }
  0x87   : > { %714 = vperm.xlu1 %3191, %v367_v53   ;;  %709 = vperm.xlu0 %3190, %v366_v54   ;;  %v398_v54 = vld [vmem:[%s6418_s0 + $0x268] sm:$0xff] }
  0x88   : > { %v3506_v55 = vpop.permute.xlu2 %554 }
  0x89   : > { %v3508_v56 = vpop.permute.xlu1 %499  ;;  %v3510_v57 = vpop.permute.xlu0 %489 }
  0x8a   : > { %6751 = vst [vmem:[#allocation5_spill] sm:$0xff] %v3510_v57 }
  0x8e   : > { %734 = vperm.xlu2 %3192, %v371_v58   ;;  %v397_v58 = vld [vmem:[%s6418_s0 + $0x260] sm:$0xff] }
  0x8f   : > { %729 = vperm.xlu1 %3191, %v370_v59   ;;  %724 = vperm.xlu0 %3190, %v369_v60   ;;  %v396_v59 = vld [vmem:[%s6418_s0 + $0x258] sm:$0xff] }
  0x90   : > { %v3521_v61 = vpop.permute.xlu2 %569 }
  0x91   : > { %v3523_v62 = vpop.permute.xlu1 %519  ;;  %v3525_v63 = vpop.permute.xlu0 %514 }
  0x96   : > { %749 = vperm.xlu2 %3192, %v374_v0  }
  0x97   : > { %744 = vperm.xlu1 %3191, %v373_v1   ;;  %739 = vperm.xlu0 %3190, %v372_v2   ;;  %v401_v2 = vld [vmem:[%s6419_s1] sm:$0xff] }
  0x98   : > { %v3536_v3 = vpop.permute.xlu2 %584 }
  0x99   : > { %v3538_v4 = vpop.permute.xlu1 %534  ;;  %v3540_v5 = vpop.permute.xlu0 %529 }
  0x9e   : > { %764 = vperm.xlu2 %3192, %v377_v6   ;;  %v400_v6 = vld [vmem:[%s6418_s0 + $0x278] sm:$0xff] }
  0x9f   : > { %759 = vperm.xlu1 %3191, %v376_v7   ;;  %754 = vperm.xlu0 %3190, %v375_v8   ;;  %v399_v7 = vld [vmem:[%s6418_s0 + $0x270] sm:$0xff] }
  0xa0   : > { %v3551_v9 = vpop.permute.xlu2 %599 }
  0xa1   : > { %v3553_v10 = vpop.permute.xlu1 %549  ;;  %v3555_v11 = vpop.permute.xlu0 %544 }
  0xa6   : > { %779 = vperm.xlu2 %3192, %v380_v12  }
  0xa7   : > { %774 = vperm.xlu1 %3191, %v379_v13   ;;  %769 = vperm.xlu0 %3190, %v378_v14   ;;  %v404_v14 = vld [vmem:[%s6419_s1 + $0x18] sm:$0xff] }
  0xa8   : > { %v3566_v15 = vpop.permute.xlu2 %614 }
  0xa9   : > { %v3568_v16 = vpop.permute.xlu1 %564  ;;  %v3570_v17 = vpop.permute.xlu0 %559 }
  0xae   : > { %794 = vperm.xlu2 %3192, %v383_v18   ;;  %v403_v18 = vld [vmem:[%s6419_s1 + $0x10] sm:$0xff] }
  0xaf   : > { %789 = vperm.xlu1 %3191, %v382_v19   ;;  %784 = vperm.xlu0 %3190, %v381_v20   ;;  %v402_v19 = vld [vmem:[%s6419_s1 + $0x8] sm:$0xff] }
  0xb0   : > { %v3581_v21 = vpop.permute.xlu2 %629 }
  0xb1   : > { %v3583_v22 = vpop.permute.xlu1 %579  ;;  %v3585_v23 = vpop.permute.xlu0 %574 }
  0xb6   : > { %809 = vperm.xlu2 %3192, %v386_v24  }
  0xb7   : > { %804 = vperm.xlu1 %3191, %v385_v25   ;;  %799 = vperm.xlu0 %3190, %v384_v26   ;;  %v407_v26 = vld [vmem:[%s6419_s1 + $0x30] sm:$0xff] }
  0xb8   : > { %v3596_v27 = vpop.permute.xlu2 %644 }
  0xb9   : > { %6752 = vst [vmem:[#allocation6_spill] sm:$0xff] %v3596_v27  ;;  %v3598_v28 = vpop.permute.xlu1 %594  ;;  %v3600_v29 = vpop.permute.xlu0 %589 }
  0xbe   : > { %824 = vperm.xlu2 %3192, %v389_v30   ;;  %v406_v30 = vld [vmem:[%s6419_s1 + $0x28] sm:$0xff] }
  0xbf   : > { %819 = vperm.xlu1 %3191, %v388_v31   ;;  %814 = vperm.xlu0 %3190, %v387_v32   ;;  %v405_v31 = vld [vmem:[%s6419_s1 + $0x20] sm:$0xff] }
  0xc0   : > { %v3611_v33 = vpop.permute.xlu2 %659 }
  0xc1   : > { %6753 = vst [vmem:[#allocation7_spill] sm:$0xff] %v3611_v33  ;;  %v3613_v34 = vpop.permute.xlu1 %609  ;;  %v3615_v35 = vpop.permute.xlu0 %604 }
  0xc6   : > { %839 = vperm.xlu2 %3192, %v392_v36  }
  0xc7   : > { %834 = vperm.xlu1 %3191, %v391_v38   ;;  %829 = vperm.xlu0 %3190, %v390_v39   ;;  %v410_v39 = vld [vmem:[%s6419_s1 + $0x48] sm:$0xff] }
  0xc8   : > { %v3626_v40 = vpop.permute.xlu2 %674 }
  0xc9   : > { %6754 = vst [vmem:[#allocation8_spill] sm:$0xff] %v3626_v40  ;;  %v3628_v42 = vpop.permute.xlu1 %624  ;;  %v3630_v43 = vpop.permute.xlu0 %619 }
  0xce   : > { %854 = vperm.xlu2 %3192, %v395_v44   ;;  %v409_v44 = vld [vmem:[%s6419_s1 + $0x40] sm:$0xff] }
  0xcf   : > { %849 = vperm.xlu1 %3191, %v394_v46   ;;  %844 = vperm.xlu0 %3190, %v393_v47   ;;  %v408_v46 = vld [vmem:[%s6419_s1 + $0x38] sm:$0xff] }
  0xd0   : > { %v3641_v48 = vpop.permute.xlu2 %689 }
  0xd1   : > { %6755 = vst [vmem:[#allocation9_spill] sm:$0xff] %v3641_v48  ;;  %v3643_v52 = vpop.permute.xlu1 %639  ;;  %v3645_v53 = vpop.permute.xlu0 %634 }
  0xd2   : > { %6756 = vst [vmem:[#allocation10_spill] sm:$0xff] %v3643_v52 }
  0xd6   : > { %869 = vperm.xlu2 %3192, %v398_v54  }
  0xd7   : > { %864 = vperm.xlu1 %3191, %v397_v58   ;;  %859 = vperm.xlu0 %3190, %v396_v59   ;;  %v413_v59 = vld [vmem:[%s6419_s1 + $0x60] sm:$0xff] }
  0xd8   : > { %v3656_v60 = vpop.permute.xlu2 %704 }
  0xd9   : > { %6757 = vst [vmem:[#allocation11_spill] sm:$0xff] %v3656_v60  ;;  %v3658_v0 = vpop.permute.xlu1 %654  ;;  %v3660_v1 = vpop.permute.xlu0 %649 }
  0xda   : > { %6758 = vst [vmem:[#allocation12_spill] sm:$0xff] %v3658_v0 }
  0xdb   : > { %6759 = vst [vmem:[#allocation13_spill] sm:$0xff] %v3660_v1 }
  0xde   : > { %1131 = vperm.xlu2 %3192, %v401_v2   ;;  %v412_v2 = vld [vmem:[%s6419_s1 + $0x58] sm:$0xff] }
  0xdf   : > { %879 = vperm.xlu1 %3191, %v400_v6   ;;  %874 = vperm.xlu0 %3190, %v399_v7   ;;  %v411_v6 = vld [vmem:[%s6419_s1 + $0x50] sm:$0xff] }
  0xe0   : > { %v3671_v8 = vpop.permute.xlu2 %719 }
  0xe1   : > { %6760 = vst [vmem:[#allocation14_spill] sm:$0xff] %v3671_v8  ;;  %v3673_v12 = vpop.permute.xlu1 %669  ;;  %v3675_v13 = vpop.permute.xlu0 %664  ;;  %v449_v8 = vld [vmem:[%s6419_s1 + $0x180] sm:$0xff] }
  0xe2   : > { %6761 = vst [vmem:[#allocation15_spill] sm:$0xff] %v3673_v12 }
  0xe3   : > { %6762 = vst [vmem:[#allocation16_spill] sm:$0xff] %v3675_v13 }
  0xe6   : > { %1146 = vperm.xlu2 %3192, %v404_v14  }
  0xe7   : > { %1141 = vperm.xlu1 %3191, %v403_v18   ;;  %1136 = vperm.xlu0 %3190, %v402_v19   ;;  %v416_v19 = vld [vmem:[%s6419_s1 + $0x78] sm:$0xff] }
  0xe8   : > { %v3686_v20 = vpop.permute.xlu2 %734 }
  0xe9   : > { %6763 = vst [vmem:[#allocation17_spill] sm:$0xff] %v3686_v20  ;;  %v3688_v24 = vpop.permute.xlu1 %684  ;;  %v3690_v25 = vpop.permute.xlu0 %679 }
  0xea   : > { %6764 = vst [vmem:[#allocation18_spill] sm:$0xff] %v3688_v24 }
  0xeb   : > { %6765 = vst [vmem:[#allocation19_spill] sm:$0xff] %v3690_v25 }
  0xee   : > { %1161 = vperm.xlu2 %3192, %v407_v26   ;;  %v415_v26 = vld [vmem:[%s6419_s1 + $0x70] sm:$0xff] }
  0xef   : > { %1156 = vperm.xlu1 %3191, %v406_v30   ;;  %1151 = vperm.xlu0 %3190, %v405_v31   ;;  %v414_v30 = vld [vmem:[%s6419_s1 + $0x68] sm:$0xff] }
  0xf0   : > { %v3701_v32 = vpop.permute.xlu2 %749 }
  0xf1   : > { %6766 = vst [vmem:[#allocation20_spill] sm:$0xff] %v3701_v32  ;;  %v3703_v36 = vpop.permute.xlu1 %699  ;;  %v3705_v38 = vpop.permute.xlu0 %694 }
  0xf2   : > { %6767 = vst [vmem:[#allocation21_spill] sm:$0xff] %v3703_v36  ;;  %v448_v36 = vld [vmem:[%s6419_s1 + $0x178] sm:$0xff] }
  0xf3   : > { %6768 = vst [vmem:[#allocation22_spill] sm:$0xff] %v3705_v38 }
  0xf6   : > { %1176 = vperm.xlu2 %3192, %v410_v39  }
  0xf7   : > { %1171 = vperm.xlu1 %3191, %v409_v44   ;;  %1166 = vperm.xlu0 %3190, %v408_v46   ;;  %v419_v46 = vld [vmem:[%s6419_s1 + $0x90] sm:$0xff] }
  0xf8   : > { %v3716_v47 = vpop.permute.xlu2 %764 }
  0xf9   : > { %6769 = vst [vmem:[#allocation23_spill] sm:$0xff] %v3716_v47  ;;  %v3718_v54 = vpop.permute.xlu1 %714  ;;  %v3720_v58 = vpop.permute.xlu0 %709  ;;  %v435_v47 = vld [vmem:[%s6419_s1 + $0x110] sm:$0xff] }
  0xfa   : > { %6770 = vst [vmem:[#allocation24_spill] sm:$0xff] %v3718_v54 }
  0xfb   : > { %6771 = vst [vmem:[#allocation25_spill] sm:$0xff] %v3720_v58 }
  0xfe   : > { %1191 = vperm.xlu2 %3192, %v413_v59   ;;  %v418_v59 = vld [vmem:[%s6419_s1 + $0x88] sm:$0xff] }
  0xff   : > { %1186 = vperm.xlu1 %3191, %v412_v2   ;;  %1181 = vperm.xlu0 %3190, %v411_v6   ;;  %v417_v2 = vld [vmem:[%s6419_s1 + $0x80] sm:$0xff] }
 0x100   : > { %v3731_v7 = vpop.permute.xlu2 %779 }
 0x101   : > { %6772 = vst [vmem:[#allocation26_spill] sm:$0xff] %v3731_v7  ;;  %v3733_v14 = vpop.permute.xlu1 %729  ;;  %v3735_v18 = vpop.permute.xlu0 %724  ;;  %v425_v7 = vld [vmem:[%s6419_s1 + $0xc0] sm:$0xff] }
 0x102   : > { %6773 = vst [vmem:[#allocation27_spill] sm:$0xff] %v3733_v14 }
 0x103   : > { %6774 = vst [vmem:[#allocation28_spill] sm:$0xff] %v3735_v18 }
 0x106   : > { %1206 = vperm.xlu2 %3192, %v416_v19  }
 0x107   : > { %1201 = vperm.xlu1 %3191, %v415_v26   ;;  %1196 = vperm.xlu0 %3190, %v414_v30   ;;  %v422_v30 = vld [vmem:[%s6419_s1 + $0xa8] sm:$0xff] }
 0x108   : > { %v3746_v31 = vpop.permute.xlu2 %794 }
 0x109   : > { %6775 = vst [vmem:[#allocation29_spill] sm:$0xff] %v3746_v31  ;;  %v3748_v39 = vpop.permute.xlu1 %744  ;;  %v3750_v44 = vpop.permute.xlu0 %739  ;;  %v421_v31 = vld [vmem:[%s6419_s1 + $0xa0] sm:$0xff] }
 0x10a   : > { %6776 = vst [vmem:[#allocation30_spill] sm:$0xff] %v3748_v39  ;;  %v446_v39 = vld [vmem:[%s6419_s1 + $0x168] sm:$0xff] }
 0x10b   : > { %6777 = vst [vmem:[#allocation31_spill] sm:$0xff] %v3750_v44  ;;  %v445_v44 = vld [vmem:[%s6419_s1 + $0x160] sm:$0xff] }
 0x10e   : > { %1221 = vperm.xlu2 %3192, %v419_v46   ;;  %v420_v46 = vld [vmem:[%s6419_s1 + $0x98] sm:$0xff] }
 0x10f   : > { %1216 = vperm.xlu1 %3191, %v418_v59   ;;  %1211 = vperm.xlu0 %3190, %v417_v2  }
 0x110   : > { %v3761_v6 = vpop.permute.xlu2 %809 }
 0x111   : > { %6778 = vst [vmem:[#allocation32_spill] sm:$0xff] %v3761_v6  ;;  %v3763_v19 = vpop.permute.xlu1 %759  ;;  %v3765_v26 = vpop.permute.xlu0 %754 }
 0x112   : > { %6779 = vst [vmem:[#allocation33_spill] sm:$0xff] %v3763_v19  ;;  %v424_v19 = vld [vmem:[%s6419_s1 + $0xb8] sm:$0xff] }
 0x113   : > { %6780 = vst [vmem:[#allocation34_spill] sm:$0xff] %v3765_v26  ;;  %v442_v26 = vld [vmem:[%s6419_s1 + $0x148] sm:$0xff] }
 0x116   : > { %1236 = vperm.xlu2 %3192, %v422_v30   ;;  %v423_v30 = vld [vmem:[%s6419_s1 + $0xb0] sm:$0xff] }
 0x117   : > { %1231 = vperm.xlu1 %3191, %v421_v31   ;;  %1226 = vperm.xlu0 %3190, %v420_v46  }
 0x118   : > { %v3776_v59 = vpop.permute.xlu2 %824 }
 0x119   : > { %6781 = vst [vmem:[#allocation35_spill] sm:$0xff] %v3776_v59  ;;  %v3778_v2 = vpop.permute.xlu1 %774  ;;  %v3780_v6 = vpop.permute.xlu0 %769 }
 0x11a   : > { %6782 = vst [vmem:[#allocation36_spill] sm:$0xff] %v3778_v2  ;;  %v428_v2 = vld [vmem:[%s6419_s1 + $0xd8] sm:$0xff] }
 0x11b   : > { %6783 = vst [vmem:[#allocation37_spill] sm:$0xff] %v3780_v6  ;;  %v427_v6 = vld [vmem:[%s6419_s1 + $0xd0] sm:$0xff] }
 0x11e   : > { %1251 = vperm.xlu2 %3192, %v425_v7   ;;  %v426_v7 = vld [vmem:[%s6419_s1 + $0xc8] sm:$0xff] }
 0x11f   : > { %1246 = vperm.xlu1 %3191, %v424_v19   ;;  %1241 = vperm.xlu0 %3190, %v423_v30  }
 0x120   : > { %v3791_v31 = vpop.permute.xlu2 %839 }
 0x121   : > { %6784 = vst [vmem:[#allocation38_spill] sm:$0xff] %v3791_v31  ;;  %v3793_v46 = vpop.permute.xlu1 %789  ;;  %v3795_v59 = vpop.permute.xlu0 %784 }
 0x122   : > { %6785 = vst [vmem:[#allocation39_spill] sm:$0xff] %v3793_v46  ;;  %v431_v46 = vld [vmem:[%s6419_s1 + $0xf0] sm:$0xff] }
 0x123   : > { %6786 = vst [vmem:[#allocation40_spill] sm:$0xff] %v3795_v59  ;;  %v430_v59 = vld [vmem:[%s6419_s1 + $0xe8] sm:$0xff] }
 0x126   : > { %1266 = vperm.xlu2 %3192, %v428_v2   ;;  %v429_v2 = vld [vmem:[%s6419_s1 + $0xe0] sm:$0xff] }
 0x127   : > { %1261 = vperm.xlu1 %3191, %v427_v6   ;;  %1256 = vperm.xlu0 %3190, %v426_v7  }
 0x128   : > { %v3806_v19 = vpop.permute.xlu2 %854 }
 0x129   : > { %6787 = vst [vmem:[#allocation41_spill] sm:$0xff] %v3806_v19  ;;  %v3808_v30 = vpop.permute.xlu1 %804  ;;  %v3810_v31 = vpop.permute.xlu0 %799 }
 0x12a   : > { %6788 = vst [vmem:[#allocation42_spill] sm:$0xff] %v3808_v30  ;;  %v434_v30 = vld [vmem:[%s6419_s1 + $0x108] sm:$0xff] }
 0x12b   : > { %6789 = vst [vmem:[#allocation43_spill] sm:$0xff] %v3810_v31  ;;  %v433_v31 = vld [vmem:[%s6419_s1 + $0x100] sm:$0xff] }
 0x12e   : > { %1281 = vperm.xlu2 %3192, %v431_v46   ;;  %v432_v46 = vld [vmem:[%s6419_s1 + $0xf8] sm:$0xff] }
 0x12f   : > { %1276 = vperm.xlu1 %3191, %v430_v59   ;;  %1271 = vperm.xlu0 %3190, %v429_v2  }
 0x130   : > { %v3821_v6 = vpop.permute.xlu2 %869 }
 0x131   : > { %6790 = vst [vmem:[#allocation44_spill] sm:$0xff] %v3821_v6  ;;  %v3823_v7 = vpop.permute.xlu1 %819  ;;  %v3825_v19 = vpop.permute.xlu0 %814 }
 0x132   : > { %6791 = vst [vmem:[#allocation45_spill] sm:$0xff] %v3823_v7  ;;  %v437_v7 = vld [vmem:[%s6419_s1 + $0x120] sm:$0xff] }
 0x133   : > { %6792 = vst [vmem:[#allocation46_spill] sm:$0xff] %v3825_v19  ;;  %v436_v19 = vld [vmem:[%s6419_s1 + $0x118] sm:$0xff] }
 0x136   : > { %1296 = vperm.xlu2 %3192, %v434_v30  }
 0x137   : > { %1291 = vperm.xlu1 %3191, %v433_v31   ;;  %1286 = vperm.xlu0 %3190, %v432_v46  }
 0x138   : > { %v1132_v59 = vpop.permute.xlu2 %1131 }
 0x139   : > { %v3836_v2 = vpop.permute.xlu1 %834  ;;  %v3838_v6 = vpop.permute.xlu0 %829 }
 0x13a   : > { %6793 = vst [vmem:[#allocation47_spill] sm:$0xff] %v3836_v2  ;;  %v440_v2 = vld [vmem:[%s6419_s1 + $0x138] sm:$0xff] }
 0x13b   : > { %6794 = vst [vmem:[#allocation48_spill] sm:$0xff] %v3838_v6  ;;  %v439_v6 = vld [vmem:[%s6419_s1 + $0x130] sm:$0xff] }
 0x13e   : > { %1311 = vperm.xlu2 %3192, %v437_v7  }
 0x13f   : > { %1306 = vperm.xlu1 %3191, %v436_v19   ;;  %1301 = vperm.xlu0 %3190, %v435_v47   ;;  %v438_v19 = vld [vmem:[%s6419_s1 + $0x128] sm:$0xff] }
 0x140   : > { %v3849_v31 = vpop.permute.xlu2 %1146 }
 0x141   : > { %v3851_v30 = vpop.permute.xlu1 %849  ;;  %v3853_v46 = vpop.permute.xlu0 %844 }
 0x142   : > { %6795 = vst [vmem:[#allocation49_spill] sm:$0xff] %v3851_v30 }
 0x143   : > { %6796 = vst [vmem:[#allocation50_spill] sm:$0xff] %v3853_v46  ;;  %v443_v46 = vld [vmem:[%s6419_s1 + $0x150] sm:$0xff] }
 0x146   : > { %1326 = vperm.xlu2 %3192, %v440_v2  }
 0x147   : > { %1321 = vperm.xlu1 %3191, %v439_v6   ;;  %1316 = vperm.xlu0 %3190, %v438_v19   ;;  %v441_v6 = vld [vmem:[%s6419_s1 + $0x140] sm:$0xff] }
 0x148   : > { %v3865_v47 = vpop.permute.xlu2 %1161  ;;  %v481_v19 = vld [vmem:[%s299_s25] sm:$0x7] }
 0x149   : > { %v3867_v7 = vpop.permute.xlu1 %864  ;;  %v3869_v30 = vpop.permute.xlu0 %859  ;;  %v3895_v32 = vperm.slane %v481_v19, 0 }
 0x14a   : > { %6797 = vst [vmem:[#allocation51_spill] sm:$0xff] %v3867_v7 }
 0x14b   : > { %6798 = vst [vmem:[#allocation52_spill] sm:$0xff] %v3869_v30  ;;  %vm895_vm0 = vcmp.le.f32.partialorder %v3493_v50, %v3895_v32  ;;  %vm889_vm2 = vcmp.le.f32.partialorder %v3495_v51, %v3895_v32  ;;  %vm892_vm5 = vcmp.le.f32.partialorder %v3510_v57, %v3895_v32  ;;  %vm6465_vm9 = vcmp.le.f32.partialorder %v3458_v37, %v3895_v32 }
 0x14c   : > { %vm898_vm10 = vcmp.le.f32.partialorder %v3508_v56, %v3895_v32  ;;  %vm6466_vm15 = vcmp.le.f32.partialorder %v3469_v41, %v3895_v32 }
 0x14e   : > { %1341 = vperm.xlu2 %3192, %v443_v46   ;;  %v3903_v46 = vperm.slane %v481_v19, 1 }
 0x14f   : > { %1336 = vperm.xlu1 %3191, %v442_v26   ;;  %1331 = vperm.xlu0 %3190, %v441_v6   ;;  %v444_v26 = vld [vmem:[%s6419_s1 + $0x158] sm:$0xff]  ;;  %v3905_v6 = vperm.slane %v481_v19, 2  ;;  %v1529_v19 = vsel %vm889_vm2, %v1132_v59, 0.0 }
 0x150   : > { %v3886_v2 = vpop.permute.xlu2 %1176  ;;  %vm6698_vm1 = vcmp.le.f32.partialorder %v3493_v50, %v3903_v46  ;;  %vm890_vm3 = vcmp.le.f32.partialorder %v3495_v51, %v3903_v46  ;;  %vm893_vm6 = vcmp.le.f32.partialorder %v3510_v57, %v3903_v46  ;;  %vm6468_vm11 = vcmp.le.f32.partialorder %v3458_v37, %v3903_v46 }
 0x151   : > { %v3888_v7 = vpop.permute.xlu1 %879  ;;  %v3890_v30 = vpop.permute.xlu0 %874  ;;  %vm891_vm4 = vcmp.le.f32.partialorder %v3495_v51, %v3905_v6  ;;  %vm894_vm7 = vcmp.le.f32.partialorder %v3510_v57, %v3905_v6  ;;  %vm6684_vm8 = vcmp.le.f32.partialorder %v3493_v50, %v3905_v6  ;;  %vm6464_vm12 = vcmp.le.f32.partialorder %v3508_v56, %v3903_v46 }
 0x152   : > { %6799 = vst [vmem:[#allocation53_spill] sm:$0xff] %v3888_v7  ;;  %v1531_v14 = vsel %vm891_vm4, %v1132_v59, 0.0  ;;  %vm6471_vm13 = vcmp.le.f32.partialorder %v3508_v56, %v3905_v6  ;;  %vm6467_vm14 = vcmp.le.f32.partialorder %v3458_v37, %v3905_v6 }
 0x153   : > { %6800 = vst [vmem:[#allocation54_spill] sm:$0xff] %v3890_v30 }
 0x156   : > { %1356 = vperm.xlu2 %3192, %v446_v39  }
 0x157   : > { %1351 = vperm.xlu1 %3191, %v445_v44   ;;  %1346 = vperm.xlu0 %3190, %v444_v26   ;;  %v1530_v26 = vsel %vm890_vm3, %v1132_v59, 0.0 }
 0x158   : > { %v3913_v30 = vpop.permute.xlu2 %1191 }
 0x159   : > { %v1142_v39 = vpop.permute.xlu1 %1141  ;;  %v1137_v44 = vpop.permute.xlu0 %1136 }
 0x15a   : > { %v1532_v7 = vsel %vm892_vm5, %v1137_v44, 0.0  ;;  %v1533_v20 = vsel %vm893_vm6, %v1137_v44, 0.0  ;;  %v1534_v18 = vsel %vm894_vm7, %v1137_v44, 0.0  ;;  %v1535_v59 = vsel %vm895_vm0, %v1142_v39, 0.0 }
 0x15b   : > { %v2490_v54 = vadd.f32 %v1532_v7, %v1529_v19  ;;  %v2575_v51 = vadd.f32 %v1533_v20, %v1530_v26  ;;  %v2660_v58 = vadd.f32 %v1534_v18, %v1531_v14  ;;  %v447_v7 = vld [vmem:[%s6419_s1 + $0x170] sm:$0xff]  ;;  %v1536_v44 = vsel %vm6698_vm1, %v1142_v39, 0.0 }
 0x15c   : > { %v1537_v19 = vsel %vm6684_vm8, %v1142_v39, 0.0 }
 0x15d   : > { %v2491_v57 = vadd.f32 %v2490_v54, %v1535_v59  ;;  %v2576_v60 = vadd.f32 %v2575_v51, %v1536_v44  ;;  %v2661_v20 = vadd.f32 %v2660_v58, %v1537_v19  ;;  %v1538_v51 = vsel %vm898_vm10, %v3849_v31, 0.0  ;;  %v452_v44 = vld [vmem:[%s6419_s1 + $0x198] sm:$0xff] }
 0x15e   : > { %1371 = vperm.xlu2 %3192, %v449_v8   ;;  %v1540_v54 = vsel %vm6471_vm13, %v3849_v31, 0.0  ;;  %vm6477_vm13 = vcmp.le.f32.partialorder %v3523_v62, %v3903_v46 }
 0x15f   : > { %1366 = vperm.xlu1 %3191, %v448_v36   ;;  %1361 = vperm.xlu0 %3190, %v447_v7   ;;  %v1539_v36 = vsel %vm6464_vm12, %v3849_v31, 0.0  ;;  %v2492_v18 = vadd.f32 %v2491_v57, %v1538_v51  ;;  %v2662_v59 = vadd.f32 %v2661_v20, %v1540_v54  ;;  %vm6469_vm12 = vcmp.le.f32.partialorder %v3469_v41, %v3903_v46  ;;  %v451_v51 = vld [vmem:[%s6419_s1 + $0x190] sm:$0xff] }
 0x160   : > { %v3977_v8 = vpop.permute.xlu2 %1206  ;;  %v2577_v26 = vadd.f32 %v2576_v60, %v1539_v36  ;;  %v450_v36 = vld [vmem:[%s6419_s1 + $0x188] sm:$0xff] }
 0x161   : > { %v1157_v58 = vpop.permute.xlu1 %1156  ;;  %v1152_v14 = vpop.permute.xlu0 %1151 }
 0x162   : > { %v1541_v39 = vsel %vm6465_vm9, %v1152_v14, 0.0  ;;  %v1542_v7 = vsel %vm6468_vm11, %v1152_v14, 0.0  ;;  %v1543_v57 = vsel %vm6467_vm14, %v1152_v14, 0.0  ;;  %vm6470_vm9 = vcmp.le.f32.partialorder %v3469_v41, %v3905_v6 }
 0x163   : > { %v2493_v31 = vadd.f32 %v2492_v18, %v1541_v39  ;;  %v1544_v60 = vsel %vm6466_vm15, %v1157_v58, 0.0  ;;  %v2578_v19 = vadd.f32 %v2577_v26, %v1542_v7  ;;  %v2663_v20 = vadd.f32 %v2662_v59, %v1543_v57 }
 0x164   : > { %v1545_v54 = vsel %vm6469_vm12, %v1157_v58, 0.0  ;;  %v1546_v14 = vsel %vm6470_vm9, %v1157_v58, 0.0  ;;  %vm6475_vm15 = vcmp.le.f32.partialorder %v3480_v45, %v3895_v32  ;;  %vm6472_vm14 = vcmp.le.f32.partialorder %v3525_v63, %v3895_v32 }
 0x165   : > { %v2494_v18 = vadd.f32 %v2493_v31, %v1544_v60  ;;  %v2579_v39 = vadd.f32 %v2578_v19, %v1545_v54  ;;  %v2664_v26 = vadd.f32 %v2663_v20, %v1546_v14  ;;  %vm6474_vm11 = vcmp.le.f32.partialorder %v3523_v62, %v3895_v32  ;;  %v455_v14 = vld [vmem:[%s6419_s1 + $0x1b0] sm:$0xff] }
 0x166   : > { %1386 = vperm.xlu2 %3192, %v452_v44   ;;  %vm6473_vm12 = vcmp.le.f32.partialorder %v3525_v63, %v3903_v46  ;;  %vm6480_vm9 = vcmp.le.f32.partialorder %v3525_v63, %v3905_v6  ;;  %v1547_v58 = vsel %vm6472_vm14, %v3865_v47, 0.0  ;;  %vm6476_vm14 = vcmp.le.f32.partialorder %v3523_v62, %v3905_v6 }
 0x167   : > { %1381 = vperm.xlu1 %3191, %v451_v51   ;;  %1376 = vperm.xlu0 %3190, %v450_v36   ;;  %v1548_v7 = vsel %vm6473_vm12, %v3865_v47, 0.0  ;;  %v1549_v57 = vsel %vm6480_vm9, %v3865_v47, 0.0  ;;  %v2495_v60 = vadd.f32 %v2494_v18, %v1547_v58  ;;  %vm6478_vm12 = vcmp.le.f32.partialorder %v3480_v45, %v3903_v46  ;;  %v454_v58 = vld [vmem:[%s6419_s1 + $0x1a8] sm:$0xff] }
 0x168   : > { %v4036_v59 = vpop.permute.xlu2 %1221  ;;  %v2580_v20 = vadd.f32 %v2579_v39, %v1548_v7  ;;  %v2665_v51 = vadd.f32 %v2664_v26, %v1549_v57  ;;  %v453_v7 = vld [vmem:[%s6419_s1 + $0x1a0] sm:$0xff]  ;;  %vm6486_vm9 = vcmp.le.f32.partialorder %v3538_v4, %v3903_v46 }
 0x169   : > { %v1172_v31 = vpop.permute.xlu1 %1171  ;;  %v1167_v44 = vpop.permute.xlu0 %1166 }
 0x16a   : > { %v1550_v19 = vsel %vm6474_vm11, %v1167_v44, 0.0  ;;  %v1551_v36 = vsel %vm6477_vm13, %v1167_v44, 0.0  ;;  %v1552_v47 = vsel %vm6476_vm14, %v1167_v44, 0.0  ;;  %vm6479_vm11 = vcmp.le.f32.partialorder %v3480_v45, %v3905_v6 }
 0x16b   : > { %v2496_v54 = vadd.f32 %v2495_v60, %v1550_v19  ;;  %v1553_v18 = vsel %vm6475_vm15, %v1172_v31, 0.0  ;;  %v2581_v39 = vadd.f32 %v2580_v20, %v1551_v36  ;;  %v2666_v26 = vadd.f32 %v2665_v51, %v1552_v47 }
 0x16c   : > { %v1554_v57 = vsel %vm6478_vm12, %v1172_v31, 0.0  ;;  %v1555_v44 = vsel %vm6479_vm11, %v1172_v31, 0.0  ;;  %vm6484_vm15 = vcmp.le.f32.partialorder %v3491_v49, %v3895_v32  ;;  %vm6481_vm14 = vcmp.le.f32.partialorder %v3540_v5, %v3895_v32 }
 0x16d   : > { %v2497_v60 = vadd.f32 %v2496_v54, %v1553_v18  ;;  %v2582_v19 = vadd.f32 %v2581_v39, %v1554_v57  ;;  %v2667_v20 = vadd.f32 %v2666_v26, %v1555_v44  ;;  %vm6483_vm13 = vcmp.le.f32.partialorder %v3538_v4, %v3895_v32  ;;  %v458_v44 = vld [vmem:[%s6419_s1 + $0x1c8] sm:$0xff] }
 0x16e   : > { %1401 = vperm.xlu2 %3192, %v455_v14   ;;  %vm6482_vm12 = vcmp.le.f32.partialorder %v3540_v5, %v3903_v46  ;;  %vm6490_vm11 = vcmp.le.f32.partialorder %v3540_v5, %v3905_v6  ;;  %v1556_v31 = vsel %vm6481_vm14, %v3886_v2, 0.0  ;;  %vm6485_vm14 = vcmp.le.f32.partialorder %v3538_v4, %v3905_v6 }
 0x16f   : > { %1396 = vperm.xlu1 %3191, %v454_v58   ;;  %1391 = vperm.xlu0 %3190, %v453_v7   ;;  %v1557_v36 = vsel %vm6482_vm12, %v3886_v2, 0.0  ;;  %v1558_v47 = vsel %vm6490_vm11, %v3886_v2, 0.0  ;;  %v2498_v18 = vadd.f32 %v2497_v60, %v1556_v31  ;;  %vm6487_vm12 = vcmp.le.f32.partialorder %v3491_v49, %v3903_v46  ;;  %v457_v31 = vld [vmem:[%s6419_s1 + $0x1c0] sm:$0xff] }
 0x170   : > { %v4095_v51 = vpop.permute.xlu2 %1236  ;;  %v2583_v26 = vadd.f32 %v2582_v19, %v1557_v36  ;;  %v2668_v58 = vadd.f32 %v2667_v20, %v1558_v47  ;;  %v456_v36 = vld [vmem:[%s6419_s1 + $0x1b8] sm:$0xff]  ;;  %vm6494_vm11 = vcmp.le.f32.partialorder %v3553_v10, %v3905_v6 }
 0x171   : > { %v1187_v54 = vpop.permute.xlu1 %1186  ;;  %v1182_v14 = vpop.permute.xlu0 %1181 }
 0x172   : > { %v1559_v39 = vsel %vm6483_vm13, %v1182_v14, 0.0  ;;  %v1560_v7 = vsel %vm6486_vm9, %v1182_v14, 0.0  ;;  %v1561_v2 = vsel %vm6485_vm14, %v1182_v14, 0.0  ;;  %vm6488_vm13 = vcmp.le.f32.partialorder %v3491_v49, %v3905_v6 }
 0x173   : > { %v2499_v57 = vadd.f32 %v2498_v18, %v1559_v39  ;;  %v1562_v60 = vsel %vm6484_vm15, %v1187_v54, 0.0  ;;  %v2584_v19 = vadd.f32 %v2583_v26, %v1560_v7  ;;  %v2669_v20 = vadd.f32 %v2668_v58, %v1561_v2 }
 0x174   : > { %v1563_v47 = vsel %vm6487_vm12, %v1187_v54, 0.0  ;;  %v1564_v14 = vsel %vm6488_vm13, %v1187_v54, 0.0  ;;  %vm6489_vm15 = vcmp.le.f32.partialorder %v3555_v11, %v3895_v32  ;;  %vm6493_vm14 = vcmp.le.f32.partialorder %v3506_v55, %v3895_v32 }
 0x175   : > { %v2500_v18 = vadd.f32 %v2499_v57, %v1562_v60  ;;  %v2585_v39 = vadd.f32 %v2584_v19, %v1563_v47  ;;  %v2670_v26 = vadd.f32 %v2669_v20, %v1564_v14  ;;  %vm6491_vm9 = vcmp.le.f32.partialorder %v3555_v11, %v3903_v46  ;;  %v461_v14 = vld [vmem:[%s6419_s1 + $0x1e0] sm:$0xff] }
 0x176   : > { %1416 = vperm.xlu2 %3192, %v458_v44   ;;  %vm6499_vm12 = vcmp.le.f32.partialorder %v3555_v11, %v3905_v6  ;;  %v1565_v54 = vsel %vm6489_vm15, %v3913_v30, 0.0  ;;  %vm6492_vm13 = vcmp.le.f32.partialorder %v3553_v10, %v3895_v32  ;;  %v1566_v7 = vsel %vm6491_vm9, %v3913_v30, 0.0 }
 0x177   : > { %1411 = vperm.xlu1 %3191, %v457_v31   ;;  %1406 = vperm.xlu0 %3190, %v456_v36   ;;  %v1567_v2 = vsel %vm6499_vm12, %v3913_v30, 0.0  ;;  %vm6495_vm15 = vcmp.le.f32.partialorder %v3553_v10, %v3903_v46  ;;  %v2501_v60 = vadd.f32 %v2500_v18, %v1565_v54  ;;  %v2586_v20 = vadd.f32 %v2585_v39, %v1566_v7  ;;  %v460_v54 = vld [vmem:[%s6419_s1 + $0x1d8] sm:$0xff]  ;;  %v459_v7 = vld [vmem:[%s6419_s1 + $0x1d0] sm:$0xff] }
 0x178   : > { %v4152_v58 = vpop.permute.xlu2 %1251  ;;  %v2671_v31 = vadd.f32 %v2670_v26, %v1567_v2  ;;  %vm6496_vm9 = vcmp.le.f32.partialorder %v3506_v55, %v3903_v46  ;;  %vm6503_vm12 = vcmp.le.f32.partialorder %v3568_v16, %v3905_v6 }
 0x179   : > { %v1202_v57 = vpop.permute.xlu1 %1201  ;;  %v1197_v44 = vpop.permute.xlu0 %1196 }
 0x17a   : > { %v1568_v19 = vsel %vm6492_vm13, %v1197_v44, 0.0  ;;  %v1569_v30 = vsel %vm6495_vm15, %v1197_v44, 0.0  ;;  %v1570_v36 = vsel %vm6494_vm11, %v1197_v44, 0.0  ;;  %vm6497_vm13 = vcmp.le.f32.partialorder %v3506_v55, %v3905_v6 }
 0x17b   : > { %v2502_v47 = vadd.f32 %v2501_v60, %v1568_v19  ;;  %v1571_v18 = vsel %vm6493_vm14, %v1202_v57, 0.0  ;;  %v2587_v39 = vadd.f32 %v2586_v20, %v1569_v30  ;;  %v2672_v26 = vadd.f32 %v2671_v31, %v1570_v36 }
 0x17c   : > { %v1572_v2 = vsel %vm6496_vm9, %v1202_v57, 0.0  ;;  %v1573_v44 = vsel %vm6497_vm13, %v1202_v57, 0.0  ;;  %vm6498_vm14 = vcmp.le.f32.partialorder %v3570_v17, %v3895_v32  ;;  %vm6502_vm11 = vcmp.le.f32.partialorder %v3521_v61, %v3895_v32 }
 0x17d   : > { %v2503_v60 = vadd.f32 %v2502_v47, %v1571_v18  ;;  %v2588_v19 = vadd.f32 %v2587_v39, %v1572_v2  ;;  %v2673_v20 = vadd.f32 %v2672_v26, %v1573_v44  ;;  %vm6500_vm15 = vcmp.le.f32.partialorder %v3570_v17, %v3903_v46  ;;  %v464_v44 = vld [vmem:[%s6419_s1 + $0x1f8] sm:$0xff] }
 0x17e   : > { %1431 = vperm.xlu2 %3192, %v461_v14   ;;  %vm6508_vm9 = vcmp.le.f32.partialorder %v3570_v17, %v3905_v6  ;;  %v1574_v57 = vsel %vm6498_vm14, %v3977_v8, 0.0  ;;  %vm6501_vm13 = vcmp.le.f32.partialorder %v3568_v16, %v3895_v32  ;;  %v1575_v30 = vsel %vm6500_vm15, %v3977_v8, 0.0 }
 0x17f   : > { %1426 = vperm.xlu1 %3191, %v460_v54   ;;  %1421 = vperm.xlu0 %3190, %v459_v7   ;;  %v1576_v36 = vsel %vm6508_vm9, %v3977_v8, 0.0  ;;  %vm6504_vm14 = vcmp.le.f32.partialorder %v3568_v16, %v3903_v46  ;;  %v2504_v18 = vadd.f32 %v2503_v60, %v1574_v57  ;;  %v2589_v26 = vadd.f32 %v2588_v19, %v1575_v30  ;;  %v463_v57 = vld [vmem:[%s6419_s1 + $0x1f0] sm:$0xff]  ;;  %v462_v30 = vld [vmem:[%s6419_s1 + $0x1e8] sm:$0xff] }
 0x180   : > { %v4211_v31 = vpop.permute.xlu2 %1266  ;;  %v2674_v54 = vadd.f32 %v2673_v20, %v1576_v36  ;;  %vm6505_vm15 = vcmp.le.f32.partialorder %v3521_v61, %v3903_v46  ;;  %vm6512_vm9 = vcmp.le.f32.partialorder %v3583_v22, %v3905_v6 }
 0x181   : > { %v1217_v47 = vpop.permute.xlu1 %1216  ;;  %v1212_v14 = vpop.permute.xlu0 %1211 }
 0x182   : > { %v1577_v39 = vsel %vm6501_vm13, %v1212_v14, 0.0  ;;  %v1578_v8 = vsel %vm6504_vm14, %v1212_v14, 0.0  ;;  %v1579_v7 = vsel %vm6503_vm12, %v1212_v14, 0.0  ;;  %vm6506_vm13 = vcmp.le.f32.partialorder %v3521_v61, %v3905_v6 }
 0x183   : > { %v2505_v2 = vadd.f32 %v2504_v18, %v1577_v39  ;;  %v1580_v60 = vsel %vm6502_vm11, %v1217_v47, 0.0  ;;  %v2590_v19 = vadd.f32 %v2589_v26, %v1578_v8  ;;  %v2675_v20 = vadd.f32 %v2674_v54, %v1579_v7 }
 0x184   : > { %v1581_v36 = vsel %vm6505_vm15, %v1217_v47, 0.0  ;;  %v1582_v14 = vsel %vm6506_vm13, %v1217_v47, 0.0  ;;  %vm6507_vm11 = vcmp.le.f32.partialorder %v3585_v23, %v3895_v32  ;;  %vm6511_vm12 = vcmp.le.f32.partialorder %v3536_v3, %v3895_v32 }
 0x185   : > { %v2506_v18 = vadd.f32 %v2505_v2, %v1580_v60  ;;  %v2591_v39 = vadd.f32 %v2590_v19, %v1581_v36  ;;  %v2676_v26 = vadd.f32 %v2675_v20, %v1582_v14  ;;  %vm6509_vm14 = vcmp.le.f32.partialorder %v3585_v23, %v3903_v46  ;;  %v467_v14 = vld [vmem:[%s6419_s1 + $0x210] sm:$0xff] }
 0x186   : > { %1446 = vperm.xlu2 %3192, %v464_v44   ;;  %vm6517_vm15 = vcmp.le.f32.partialorder %v3585_v23, %v3905_v6  ;;  %v1583_v47 = vsel %vm6507_vm11, %v4036_v59, 0.0  ;;  %vm6510_vm13 = vcmp.le.f32.partialorder %v3583_v22, %v3895_v32  ;;  %v1584_v8 = vsel %vm6509_vm14, %v4036_v59, 0.0 }
 0x187   : > { %1441 = vperm.xlu1 %3191, %v463_v57   ;;  %1436 = vperm.xlu0 %3190, %v462_v30   ;;  %v1585_v7 = vsel %vm6517_vm15, %v4036_v59, 0.0  ;;  %vm6513_vm11 = vcmp.le.f32.partialorder %v3583_v22, %v3903_v46  ;;  %v2507_v60 = vadd.f32 %v2506_v18, %v1583_v47  ;;  %v2592_v20 = vadd.f32 %v2591_v39, %v1584_v8  ;;  %v466_v47 = vld [vmem:[%s6419_s1 + $0x208] sm:$0xff]  ;;  %v465_v8 = vld [vmem:[%s6419_s1 + $0x200] sm:$0xff] }
 0x188   : > { %v4270_v54 = vpop.permute.xlu2 %1281  ;;  %v2677_v57 = vadd.f32 %v2676_v26, %v1585_v7  ;;  %vm6514_vm14 = vcmp.le.f32.partialorder %v3536_v3, %v3903_v46  ;;  %vm6521_vm15 = vcmp.le.f32.partialorder %v3598_v28, %v3905_v6 }
 0x189   : > { %v1232_v2 = vpop.permute.xlu1 %1231  ;;  %v1227_v44 = vpop.permute.xlu0 %1226 }
 0x18a   : > { %v1586_v19 = vsel %vm6510_vm13, %v1227_v44, 0.0  ;;  %v1587_v59 = vsel %vm6513_vm11, %v1227_v44, 0.0  ;;  %v1588_v30 = vsel %vm6512_vm9, %v1227_v44, 0.0  ;;  %vm6515_vm13 = vcmp.le.f32.partialorder %v3536_v3, %v3905_v6 }
 0x18b   : > { %v2508_v36 = vadd.f32 %v2507_v60, %v1586_v19  ;;  %v1589_v18 = vsel %vm6511_vm12, %v1232_v2, 0.0  ;;  %v2593_v39 = vadd.f32 %v2592_v20, %v1587_v59  ;;  %v2678_v26 = vadd.f32 %v2677_v57, %v1588_v30 }
 0x18c   : > { %v1590_v7 = vsel %vm6514_vm14, %v1232_v2, 0.0  ;;  %v1591_v44 = vsel %vm6515_vm13, %v1232_v2, 0.0  ;;  %vm6516_vm12 = vcmp.le.f32.partialorder %v3600_v29, %v3895_v32  ;;  %vm6520_vm9 = vcmp.le.f32.partialorder %v3551_v9, %v3895_v32 }
 0x18d   : > { %v2509_v60 = vadd.f32 %v2508_v36, %v1589_v18  ;;  %v2594_v19 = vadd.f32 %v2593_v39, %v1590_v7  ;;  %v2679_v20 = vadd.f32 %v2678_v26, %v1591_v44  ;;  %vm6518_vm11 = vcmp.le.f32.partialorder %v3600_v29, %v3903_v46  ;;  %v470_v44 = vld [vmem:[%s6419_s1 + $0x228] sm:$0xff] }
 0x18e   : > { %1461 = vperm.xlu2 %3192, %v467_v14   ;;  %vm6526_vm14 = vcmp.le.f32.partialorder %v3600_v29, %v3905_v6  ;;  %v1592_v2 = vsel %vm6516_vm12, %v4095_v51, 0.0  ;;  %vm6519_vm13 = vcmp.le.f32.partialorder %v3598_v28, %v3895_v32  ;;  %v1593_v59 = vsel %vm6518_vm11, %v4095_v51, 0.0 }
 0x18f   : > { %1456 = vperm.xlu1 %3191, %v466_v47   ;;  %1451 = vperm.xlu0 %3190, %v465_v8   ;;  %v1594_v30 = vsel %vm6526_vm14, %v4095_v51, 0.0  ;;  %vm6522_vm12 = vcmp.le.f32.partialorder %v3598_v28, %v3903_v46  ;;  %v2510_v18 = vadd.f32 %v2509_v60, %v1592_v2  ;;  %v2595_v26 = vadd.f32 %v2594_v19, %v1593_v59  ;;  %v469_v2 = vld [vmem:[%s6419_s1 + $0x220] sm:$0xff]  ;;  %v468_v59 = vld [vmem:[%s6419_s1 + $0x218] sm:$0xff] }
 0x190   : > { %v4329_v57 = vpop.permute.xlu2 %1296  ;;  %v2680_v47 = vadd.f32 %v2679_v20, %v1594_v30  ;;  %vm6523_vm11 = vcmp.le.f32.partialorder %v3551_v9, %v3903_v46  ;;  %vm6530_vm14 = vcmp.le.f32.partialorder %v3613_v34, %v3905_v6 }
 0x191   : > { %v1247_v36 = vpop.permute.xlu1 %1246  ;;  %v1242_v14 = vpop.permute.xlu0 %1241 }
 0x192   : > { %v1595_v39 = vsel %vm6519_vm13, %v1242_v14, 0.0  ;;  %v1596_v51 = vsel %vm6522_vm12, %v1242_v14, 0.0  ;;  %v1597_v8 = vsel %vm6521_vm15, %v1242_v14, 0.0  ;;  %vm6524_vm13 = vcmp.le.f32.partialorder %v3551_v9, %v3905_v6 }
 0x193   : > { %v2511_v7 = vadd.f32 %v2510_v18, %v1595_v39  ;;  %v1598_v60 = vsel %vm6520_vm9, %v1247_v36, 0.0  ;;  %v2596_v19 = vadd.f32 %v2595_v26, %v1596_v51  ;;  %v2681_v20 = vadd.f32 %v2680_v47, %v1597_v8 }
 0x194   : > { %v1599_v30 = vsel %vm6523_vm11, %v1247_v36, 0.0  ;;  %v1600_v14 = vsel %vm6524_vm13, %v1247_v36, 0.0  ;;  %vm6525_vm9 = vcmp.le.f32.partialorder %v3615_v35, %v3895_v32  ;;  %vm6529_vm15 = vcmp.le.f32.partialorder %v3566_v15, %v3895_v32 }
 0x195   : > { %v2512_v18 = vadd.f32 %v2511_v7, %v1598_v60  ;;  %v2597_v39 = vadd.f32 %v2596_v19, %v1599_v30  ;;  %v2682_v26 = vadd.f32 %v2681_v20, %v1600_v14  ;;  %vm6527_vm12 = vcmp.le.f32.partialorder %v3615_v35, %v3903_v46  ;;  %v473_v14 = vld [vmem:[%s6419_s1 + $0x240] sm:$0xff] }
 0x196   : > { %1476 = vperm.xlu2 %3192, %v470_v44   ;;  %vm6535_vm11 = vcmp.le.f32.partialorder %v3615_v35, %v3905_v6  ;;  %v1601_v36 = vsel %vm6525_vm9, %v4152_v58, 0.0  ;;  %vm6528_vm13 = vcmp.le.f32.partialorder %v3613_v34, %v3895_v32  ;;  %v1602_v51 = vsel %vm6527_vm12, %v4152_v58, 0.0 }
 0x197   : > { %1471 = vperm.xlu1 %3191, %v469_v2   ;;  %1466 = vperm.xlu0 %3190, %v468_v59   ;;  %v1603_v8 = vsel %vm6535_vm11, %v4152_v58, 0.0  ;;  %vm6531_vm9 = vcmp.le.f32.partialorder %v3613_v34, %v3903_v46  ;;  %v2513_v60 = vadd.f32 %v2512_v18, %v1601_v36  ;;  %v2598_v20 = vadd.f32 %v2597_v39, %v1602_v51  ;;  %v472_v36 = vld [vmem:[%s6419_s1 + $0x238] sm:$0xff]  ;;  %v471_v51 = vld [vmem:[%s6419_s1 + $0x230] sm:$0xff] }
 0x198   : > { %v4388_v47 = vpop.permute.xlu2 %1311  ;;  %v2683_v2 = vadd.f32 %v2682_v26, %v1603_v8  ;;  %vm6532_vm12 = vcmp.le.f32.partialorder %v3566_v15, %v3903_v46  ;;  %vm6539_vm11 = vcmp.le.f32.partialorder %v3628_v42, %v3905_v6 }
 0x199   : > { %v1262_v7 = vpop.permute.xlu1 %1261  ;;  %v1257_v44 = vpop.permute.xlu0 %1256 }
 0x19a   : > { %v1604_v19 = vsel %vm6528_vm13, %v1257_v44, 0.0  ;;  %v1605_v58 = vsel %vm6531_vm9, %v1257_v44, 0.0  ;;  %v1606_v59 = vsel %vm6530_vm14, %v1257_v44, 0.0  ;;  %vm6533_vm13 = vcmp.le.f32.partialorder %v3566_v15, %v3905_v6 }
 0x19b   : > { %v2514_v30 = vadd.f32 %v2513_v60, %v1604_v19  ;;  %v1607_v18 = vsel %vm6529_vm15, %v1262_v7, 0.0  ;;  %v2599_v39 = vadd.f32 %v2598_v20, %v1605_v58  ;;  %v2684_v26 = vadd.f32 %v2683_v2, %v1606_v59 }
 0x19c   : > { %v1608_v8 = vsel %vm6532_vm12, %v1262_v7, 0.0  ;;  %v1609_v44 = vsel %vm6533_vm13, %v1262_v7, 0.0  ;;  %vm6534_vm15 = vcmp.le.f32.partialorder %v3630_v43, %v3895_v32  ;;  %vm6538_vm14 = vcmp.le.f32.partialorder %v3581_v21, %v3895_v32 }
 0x19d   : > { %v2515_v60 = vadd.f32 %v2514_v30, %v1607_v18  ;;  %v2600_v19 = vadd.f32 %v2599_v39, %v1608_v8  ;;  %v2685_v20 = vadd.f32 %v2684_v26, %v1609_v44  ;;  %vm6536_vm9 = vcmp.le.f32.partialorder %v3630_v43, %v3903_v46  ;;  %v476_v44 = vld [vmem:[%s6419_s1 + $0x258] sm:$0xff] }
 0x19e   : > { %1491 = vperm.xlu2 %3192, %v473_v14   ;;  %vm6544_vm12 = vcmp.le.f32.partialorder %v3630_v43, %v3905_v6  ;;  %v1610_v7 = vsel %vm6534_vm15, %v4211_v31, 0.0  ;;  %vm6537_vm13 = vcmp.le.f32.partialorder %v3628_v42, %v3895_v32  ;;  %v1611_v58 = vsel %vm6536_vm9, %v4211_v31, 0.0 }
 0x19f   : > { %1486 = vperm.xlu1 %3191, %v472_v36   ;;  %1481 = vperm.xlu0 %3190, %v471_v51   ;;  %v1612_v59 = vsel %vm6544_vm12, %v4211_v31, 0.0  ;;  %vm6540_vm15 = vcmp.le.f32.partialorder %v3628_v42, %v3903_v46  ;;  %v2516_v18 = vadd.f32 %v2515_v60, %v1610_v7  ;;  %v2601_v26 = vadd.f32 %v2600_v19, %v1611_v58  ;;  %v475_v7 = vld [vmem:[%s6419_s1 + $0x250] sm:$0xff]  ;;  %v474_v58 = vld [vmem:[%s6419_s1 + $0x248] sm:$0xff] }
 0x1a0   : > { %v4447_v2 = vpop.permute.xlu2 %1326  ;;  %v2686_v36 = vadd.f32 %v2685_v20, %v1612_v59  ;;  %vm6541_vm9 = vcmp.le.f32.partialorder %v3581_v21, %v3903_v46  ;;  %vm6552_vm12 = vcmp.le.f32.partialorder %v3643_v52, %v3905_v6 }
 0x1a1   : > { %v1277_v30 = vpop.permute.xlu1 %1276  ;;  %v1272_v14 = vpop.permute.xlu0 %1271 }
 0x1a2   : > { %v1613_v39 = vsel %vm6537_vm13, %v1272_v14, 0.0  ;;  %v1614_v31 = vsel %vm6540_vm15, %v1272_v14, 0.0  ;;  %v1615_v51 = vsel %vm6539_vm11, %v1272_v14, 0.0  ;;  %vm6542_vm13 = vcmp.le.f32.partialorder %v3581_v21, %v3905_v6 }
 0x1a3   : > { %v2517_v8 = vadd.f32 %v2516_v18, %v1613_v39  ;;  %v1616_v60 = vsel %vm6538_vm14, %v1277_v30, 0.0  ;;  %v2602_v19 = vadd.f32 %v2601_v26, %v1614_v31  ;;  %v2687_v20 = vadd.f32 %v2686_v36, %v1615_v51 }
 0x1a4   : > { %v1617_v59 = vsel %vm6541_vm9, %v1277_v30, 0.0  ;;  %v1618_v14 = vsel %vm6542_vm13, %v1277_v30, 0.0  ;;  %vm6543_vm14 = vcmp.le.f32.partialorder %v3645_v53, %v3895_v32  ;;  %vm6551_vm11 = vcmp.le.f32.partialorder %v3596_v27, %v3895_v32 }
 0x1a5   : > { %v2518_v18 = vadd.f32 %v2517_v8, %v1616_v60  ;;  %v2603_v39 = vadd.f32 %v2602_v19, %v1617_v59  ;;  %v2688_v26 = vadd.f32 %v2687_v20, %v1618_v14  ;;  %vm6545_vm15 = vcmp.le.f32.partialorder %v3645_v53, %v3903_v46  ;;  %v479_v14 = vld [vmem:[%s6419_s1 + $0x270] sm:$0xff] }
 0x1a6   : > { %1506 = vperm.xlu2 %3192, %v476_v44   ;;  %vm6555_vm9 = vcmp.le.f32.partialorder %v3645_v53, %v3905_v6  ;;  %v1619_v30 = vsel %vm6543_vm14, %v4270_v54, 0.0  ;;  %vm6546_vm13 = vcmp.le.f32.partialorder %v3643_v52, %v3895_v32  ;;  %v1620_v31 = vsel %vm6545_vm15, %v4270_v54, 0.0 }
 0x1a7   : > { %1501 = vperm.xlu1 %3191, %v475_v7   ;;  %1496 = vperm.xlu0 %3190, %v474_v58   ;;  %v1621_v51 = vsel %vm6555_vm9, %v4270_v54, 0.0  ;;  %vm6553_vm14 = vcmp.le.f32.partialorder %v3643_v52, %v3903_v46  ;;  %v2519_v60 = vadd.f32 %v2518_v18, %v1619_v30  ;;  %v2604_v20 = vadd.f32 %v2603_v39, %v1620_v31  ;;  %v478_v30 = vld [vmem:[%s6419_s1 + $0x268] sm:$0xff]  ;;  %v477_v31 = vld [vmem:[%s6419_s1 + $0x260] sm:$0xff] }
 0x1a8   : > { %v4506_v36 = vpop.permute.xlu2 %1341  ;;  %v2689_v7 = vadd.f32 %v2688_v26, %v1621_v51  ;;  %vm6549_vm15 = vcmp.le.f32.partialorder %v3596_v27, %v3903_v46  ;;  %vm6565_vm9 = vcmp.le.f32.partialorder %v3658_v0, %v3905_v6 }
 0x1a9   : > { %v1292_v8 = vpop.permute.xlu1 %1291  ;;  %v1287_v44 = vpop.permute.xlu0 %1286 }
 0x1aa   : > { %v1622_v19 = vsel %vm6546_vm13, %v1287_v44, 0.0  ;;  %v1623_v54 = vsel %vm6553_vm14, %v1287_v44, 0.0  ;;  %v1624_v58 = vsel %vm6552_vm12, %v1287_v44, 0.0  ;;  %vm6550_vm13 = vcmp.le.f32.partialorder %v3596_v27, %v3905_v6 }
 0x1ab   : > { %v2520_v59 = vadd.f32 %v2519_v60, %v1622_v19  ;;  %v1625_v18 = vsel %vm6551_vm11, %v1292_v8, 0.0  ;;  %v2605_v39 = vadd.f32 %v2604_v20, %v1623_v54  ;;  %v2690_v26 = vadd.f32 %v2689_v7, %v1624_v58  ;;  %v3197_v19 = vld [vmem:[%s6419_s1] sm:$0xff]  ;;  %v3198_v58 = vld [vmem:[%s6419_s1 + $0x8] sm:$0xff] }
 0x1ac   : > { %v1626_v51 = vsel %vm6549_vm15, %v1292_v8, 0.0  ;;  %v1627_v44 = vsel %vm6550_vm13, %v1292_v8, 0.0  ;;  %v1769_v20 = vmul.f32 %v3197_v19, %v3197_v19  ;;  %v1770_v52 = vmul.f32 %v3198_v58, %v3198_v58 }
 0x1ad   : > { %v2521_v60 = vadd.f32 %v2520_v59, %v1625_v18  ;;  %v2606_v7 = vadd.f32 %v2605_v39, %v1626_v51  ;;  %v2691_v54 = vadd.f32 %v2690_v26, %v1627_v44  ;;  %vm6554_vm15 = vcmp.le.f32.partialorder %v3660_v1, %v3895_v32 }
 0x1ae   : > { %1521 = vperm.xlu2 %3192, %v479_v14   ;;  %vm6564_vm13 = vcmp.le.f32.partialorder %v3611_v33, %v3895_v32  ;;  %vm6556_vm11 = vcmp.le.f32.partialorder %v3660_v1, %v3903_v46  ;;  %vm6557_vm12 = vcmp.le.f32.partialorder %v3660_v1, %v3905_v6  ;;  %v1628_v8 = vsel %vm6554_vm15, %v4329_v57, 0.0 }
 0x1af   : > { %1516 = vperm.xlu1 %3191, %v478_v30   ;;  %1511 = vperm.xlu0 %3190, %v477_v31   ;;  %vm6568_vm14 = vcmp.le.f32.partialorder %v3658_v0, %v3895_v32  ;;  %v1629_v14 = vsel %vm6556_vm11, %v4329_v57, 0.0  ;;  %v1630_v18 = vsel %vm6557_vm12, %v4329_v57, 0.0  ;;  %vm6566_vm15 = vcmp.le.f32.partialorder %v3658_v0, %v3903_v46  ;;  %v3201_v0 = vld [vmem:[%s6419_s1 + $0x20] sm:$0xff] }
 0x1b0   : > { %v4571_v59 = vpop.permute.xlu2 %1356  ;;  %v2522_v30 = vadd.f32 %v2521_v60, %v1628_v8  ;;  %v2607_v51 = vadd.f32 %v2606_v7, %v1629_v14  ;;  %v2692_v44 = vadd.f32 %v2691_v54, %v1630_v18  ;;  %vm6563_vm11 = vcmp.le.f32.partialorder %v3611_v33, %v3903_v46  ;;  %v480_v8 = vld [vmem:[%s6419_s1 + $0x278] sm:$0xff] }
 0x1b1   : > { %v1307_v39 = vpop.permute.xlu1 %1306  ;;  %v1302_v26 = vpop.permute.xlu0 %1301  ;;  %vm6562_vm12 = vcmp.le.f32.partialorder %v3611_v33, %v3905_v6  ;;  %v1773_v33 = vmul.f32 %v3201_v0, %v3201_v0 }
 0x1b2   : > { %v1631_v31 = vsel %vm6568_vm14, %v1302_v26, 0.0  ;;  %v1632_v57 = vsel %vm6566_vm15, %v1302_v26, 0.0  ;;  %v1633_v60 = vsel %vm6565_vm9, %v1302_v26, 0.0  ;;  %v1634_v7 = vsel %vm6564_vm13, %v1307_v39, 0.0 }
 0x1b3   : > { %v2523_v19 = vadd.f32 %v2522_v30, %v1631_v31  ;;  %v2608_v54 = vadd.f32 %v2607_v51, %v1632_v57  ;;  %v2693_v58 = vadd.f32 %v2692_v44, %v1633_v60  ;;  %v1635_v14 = vsel %vm6563_vm11, %v1307_v39, 0.0  ;;  %v3199_v30 = vld [vmem:[%s6419_s1 + $0x18] sm:$0xff]  ;;  %v3200_v51 = vld [vmem:[%s6419_s1 + $0x10] sm:$0xff] }
 0x1b4   : > { %v1636_v18 = vsel %vm6562_vm12, %v1307_v39, 0.0  ;;  %v1772_v31 = vmul.f32 %v3199_v30, %v3199_v30  ;;  %v1771_v44 = vmul.f32 %v3200_v51, %v3200_v51  ;;  %vm6567_vm12 = vcmp.le.f32.partialorder %v3675_v13, %v3895_v32 }
 0x1b5   : > { %v2524_v26 = vadd.f32 %v2523_v19, %v1634_v7  ;;  %v2609_v57 = vadd.f32 %v2608_v54, %v1635_v14  ;;  %v2694_v60 = vadd.f32 %v2693_v58, %v1636_v18  ;;  %vm6573_vm11 = vcmp.le.f32.partialorder %v3626_v40, %v3895_v32 }
 0x1b6   : > { %1856 = vperm.xlu2 %3192, %v1770_v52   ;;  %vm6569_vm13 = vcmp.le.f32.partialorder %v3675_v13, %v3903_v46  ;;  %vm6570_vm9 = vcmp.le.f32.partialorder %v3675_v13, %v3905_v6  ;;  %v1637_v52 = vsel %vm6567_vm12, %v4388_v47, 0.0  ;;  %vm6577_vm15 = vcmp.le.f32.partialorder %v3673_v12, %v3895_v32 }
 0x1b7   : > { %1851 = vperm.xlu1 %3191, %v1769_v20   ;;  %1526 = vperm.xlu0 %3190, %v480_v8   ;;  %v1638_v20 = vsel %vm6569_vm13, %v4388_v47, 0.0  ;;  %v1639_v39 = vsel %vm6570_vm9, %v4388_v47, 0.0  ;;  %vm6575_vm12 = vcmp.le.f32.partialorder %v3673_v12, %v3903_v46  ;;  %v2525_v54 = vadd.f32 %v2524_v26, %v1637_v52 }
 0x1b8   : > { %v4633_v0 = vpop.permute.xlu2 %1371  ;;  %vm6574_vm14 = vcmp.le.f32.partialorder %v3673_v12, %v3905_v6  ;;  %v2610_v8 = vadd.f32 %v2609_v57, %v1638_v20  ;;  %v2695_v14 = vadd.f32 %v2694_v60, %v1639_v39  ;;  %vm6572_vm13 = vcmp.le.f32.partialorder %v3626_v40, %v3903_v46  ;;  %v3202_v39 = vld [vmem:[%s6419_s1 + $0x30] sm:$0xff] }
 0x1b9   : > { %v1322_v19 = vpop.permute.xlu1 %1321  ;;  %v1317_v7 = vpop.permute.xlu0 %1316  ;;  %vm6571_vm9 = vcmp.le.f32.partialorder %v3626_v40, %v3905_v6 }
 0x1ba   : > { %v1640_v58 = vsel %vm6577_vm15, %v1317_v7, 0.0  ;;  %v1641_v47 = vsel %vm6575_vm12, %v1317_v7, 0.0  ;;  %v1642_v18 = vsel %vm6574_vm14, %v1317_v7, 0.0  ;;  %v1643_v30 = vsel %vm6573_vm11, %v1322_v19, 0.0 }
 0x1bb   : > { %v2526_v26 = vadd.f32 %v2525_v54, %v1640_v58  ;;  %v2611_v51 = vadd.f32 %v2610_v8, %v1641_v47  ;;  %v2696_v57 = vadd.f32 %v2695_v14, %v1642_v18  ;;  %v1644_v60 = vsel %vm6572_vm13, %v1322_v19, 0.0  ;;  %v3203_v54 = vld [vmem:[%s6419_s1 + $0x28] sm:$0xff]  ;;  %v3204_v47 = vld [vmem:[%s6419_s1 + $0x38] sm:$0xff] }
 0x1bc   : > { %v1645_v52 = vsel %vm6571_vm9, %v1322_v19, 0.0  ;;  %v1775_v7 = vmul.f32 %v3202_v39, %v3202_v39  ;;  %v1774_v58 = vmul.f32 %v3203_v54, %v3203_v54  ;;  %v1776_v18 = vmul.f32 %v3204_v47, %v3204_v47 }
 0x1bd   : > { %v2527_v20 = vadd.f32 %v2526_v26, %v1643_v30  ;;  %v2612_v8 = vadd.f32 %v2611_v51, %v1644_v60  ;;  %v2697_v14 = vadd.f32 %v2696_v57, %v1645_v52  ;;  %vm6576_vm9 = vcmp.le.f32.partialorder %v3690_v25, %v3895_v32 }
 0x1be   : > { %1871 = vperm.xlu2 %3192, %v1773_v33   ;;  %vm6582_vm13 = vcmp.le.f32.partialorder %v3641_v48, %v3895_v32  ;;  %vm6578_vm11 = vcmp.le.f32.partialorder %v3690_v25, %v3903_v46  ;;  %vm6579_vm14 = vcmp.le.f32.partialorder %v3690_v25, %v3905_v6  ;;  %v1646_v33 = vsel %vm6576_vm9, %v4447_v2, 0.0 }
 0x1bf   : > { %1866 = vperm.xlu1 %3191, %v1772_v31   ;;  %1861 = vperm.xlu0 %3190, %v1771_v44   ;;  %vm6586_vm12 = vcmp.le.f32.partialorder %v3688_v24, %v3895_v32  ;;  %v1647_v31 = vsel %vm6578_vm11, %v4447_v2, 0.0  ;;  %v1648_v44 = vsel %vm6579_vm14, %v4447_v2, 0.0  ;;  %vm6584_vm9 = vcmp.le.f32.partialorder %v3688_v24, %v3903_v46 }
 0x1c0   : > { %v4692_v19 = vpop.permute.xlu2 %1386  ;;  %v2528_v51 = vadd.f32 %v2527_v20, %v1646_v33  ;;  %vm6583_vm15 = vcmp.le.f32.partialorder %v3688_v24, %v3905_v6  ;;  %v2613_v60 = vadd.f32 %v2612_v8, %v1647_v31  ;;  %v2698_v52 = vadd.f32 %v2697_v14, %v1648_v44  ;;  %v3205_v44 = vld [vmem:[%s6419_s1 + $0x48] sm:$0xff] }
 0x1c1   : > { %v1337_v26 = vpop.permute.xlu1 %1336  ;;  %v1332_v30 = vpop.permute.xlu0 %1331  ;;  %vm6581_vm11 = vcmp.le.f32.partialorder %v3641_v48, %v3903_v46  ;;  %vm6580_vm14 = vcmp.le.f32.partialorder %v3641_v48, %v3905_v6 }
 0x1c2   : > { %v1649_v57 = vsel %vm6586_vm12, %v1332_v30, 0.0  ;;  %v1650_v2 = vsel %vm6584_vm9, %v1332_v30, 0.0  ;;  %v1651_v20 = vsel %vm6583_vm15, %v1332_v30, 0.0  ;;  %v1652_v54 = vsel %vm6582_vm13, %v1337_v26, 0.0 }
 0x1c3   : > { %v2529_v39 = vadd.f32 %v2528_v51, %v1649_v57  ;;  %v2614_v8 = vadd.f32 %v2613_v60, %v1650_v2  ;;  %v2699_v14 = vadd.f32 %v2698_v52, %v1651_v20  ;;  %v1653_v47 = vsel %vm6581_vm11, %v1337_v26, 0.0  ;;  %v3206_v51 = vld [vmem:[%s6419_s1 + $0x40] sm:$0xff]  ;;  %v3207_v2 = vld [vmem:[%s6419_s1 + $0x50] sm:$0xff] }
 0x1c4   : > { %v1654_v33 = vsel %vm6580_vm14, %v1337_v26, 0.0  ;;  %v1778_v30 = vmul.f32 %v3205_v44, %v3205_v44  ;;  %v1777_v57 = vmul.f32 %v3206_v51, %v3206_v51  ;;  %v1779_v20 = vmul.f32 %v3207_v2, %v3207_v2  ;;  %v6801_v26 = vld [vmem:[#allocation11_spill] sm:$0xff] }
 0x1c5   : > { %v2530_v31 = vadd.f32 %v2529_v39, %v1652_v54  ;;  %v2615_v60 = vadd.f32 %v2614_v8, %v1653_v47  ;;  %v2700_v52 = vadd.f32 %v2699_v14, %v1654_v33  ;;  %vm6585_vm14 = vcmp.le.f32.partialorder %v3705_v38, %v3895_v32  ;;  %v6802_v54 = vld [vmem:[#allocation21_spill] sm:$0xff] }
 0x1c6   : > { %1886 = vperm.xlu2 %3192, %v1776_v18   ;;  %vm6593_vm11 = vcmp.le.f32.partialorder %v6801_v26, %v3895_v32  ;;  %vm6587_vm13 = vcmp.le.f32.partialorder %v3705_v38, %v3903_v46  ;;  %vm6588_vm15 = vcmp.le.f32.partialorder %v3705_v38, %v3905_v6  ;;  %v1655_v18 = vsel %vm6585_vm14, %v4506_v36, 0.0 }
 0x1c7   : > { %1881 = vperm.xlu1 %3191, %v1775_v7   ;;  %1876 = vperm.xlu0 %3190, %v1774_v58   ;;  %vm6597_vm9 = vcmp.le.f32.partialorder %v6802_v54, %v3895_v32  ;;  %v1656_v7 = vsel %vm6587_vm13, %v4506_v36, 0.0  ;;  %v1657_v58 = vsel %vm6588_vm15, %v4506_v36, 0.0  ;;  %vm6595_vm14 = vcmp.le.f32.partialorder %v6802_v54, %v3903_v46 }
 0x1c8   : > { %v4751_v39 = vpop.permute.xlu2 %1401  ;;  %v2531_v47 = vadd.f32 %v2530_v31, %v1655_v18  ;;  %vm6594_vm12 = vcmp.le.f32.partialorder %v6802_v54, %v3905_v6  ;;  %v2616_v44 = vadd.f32 %v2615_v60, %v1656_v7  ;;  %v2701_v51 = vadd.f32 %v2700_v52, %v1657_v58 }
 0x1c9   : > { %v1352_v8 = vpop.permute.xlu1 %1351  ;;  %v1347_v14 = vpop.permute.xlu0 %1346  ;;  %vm6592_vm13 = vcmp.le.f32.partialorder %v6801_v26, %v3903_v46  ;;  %vm6591_vm15 = vcmp.le.f32.partialorder %v6801_v26, %v3905_v6 }
 0x1ca   : > { %v1658_v33 = vsel %vm6597_vm9, %v1347_v14, 0.0  ;;  %v1659_v36 = vsel %vm6595_vm14, %v1347_v14, 0.0  ;;  %v1660_v31 = vsel %vm6594_vm12, %v1347_v14, 0.0  ;;  %v1661_v60 = vsel %vm6593_vm11, %v1352_v8, 0.0  ;;  %v3208_v14 = vld [vmem:[%s6419_s1 + $0x60] sm:$0xff] }
 0x1cb   : > { %v2532_v2 = vadd.f32 %v2531_v47, %v1658_v33  ;;  %v2617_v52 = vadd.f32 %v2616_v44, %v1659_v36  ;;  %v2702_v18 = vadd.f32 %v2701_v51, %v1660_v31  ;;  %v1662_v7 = vsel %vm6592_vm13, %v1352_v8, 0.0  ;;  %v3209_v33 = vld [vmem:[%s6419_s1 + $0x58] sm:$0xff]  ;;  %v3210_v31 = vld [vmem:[%s6419_s1 + $0x68] sm:$0xff] }
 0x1cc   : > { %v1663_v58 = vsel %vm6591_vm15, %v1352_v8, 0.0  ;;  %v1781_v47 = vmul.f32 %v3208_v14, %v3208_v14  ;;  %v1780_v44 = vmul.f32 %v3209_v33, %v3209_v33  ;;  %v1782_v26 = vmul.f32 %v3210_v31, %v3210_v31  ;;  %v6803_v8 = vld [vmem:[#allocation25_spill] sm:$0xff] }
 0x1cd   : > { %v2533_v54 = vadd.f32 %v2532_v2, %v1661_v60  ;;  %v2618_v51 = vadd.f32 %v2617_v52, %v1662_v7  ;;  %v2703_v36 = vadd.f32 %v2702_v18, %v1663_v58  ;;  %vm6596_vm15 = vcmp.le.f32.partialorder %v6803_v8, %v3895_v32  ;;  %v6804_v2 = vld [vmem:[#allocation14_spill] sm:$0xff]  ;;  %v6805_v52 = vld [vmem:[#allocation24_spill] sm:$0xff] }
 0x1ce   : > { %1901 = vperm.xlu2 %3192, %v1779_v20   ;;  %vm6605_vm13 = vcmp.le.f32.partialorder %v6804_v2, %v3895_v32  ;;  %vm6598_vm11 = vcmp.le.f32.partialorder %v6803_v8, %v3903_v46  ;;  %vm6599_vm12 = vcmp.le.f32.partialorder %v6803_v8, %v3905_v6  ;;  %v1664_v20 = vsel %vm6596_vm15, %v4571_v59, 0.0 }
 0x1cf   : > { %1896 = vperm.xlu1 %3191, %v1778_v30   ;;  %1891 = vperm.xlu0 %3190, %v1777_v57   ;;  %vm6609_vm14 = vcmp.le.f32.partialorder %v6805_v52, %v3895_v32  ;;  %v1665_v30 = vsel %vm6598_vm11, %v4571_v59, 0.0  ;;  %v1666_v57 = vsel %vm6599_vm12, %v4571_v59, 0.0  ;;  %vm6607_vm15 = vcmp.le.f32.partialorder %v6805_v52, %v3903_v46 }
 0x1d0   : > { %v4810_v60 = vpop.permute.xlu2 %1416  ;;  %v2534_v58 = vadd.f32 %v2533_v54, %v1664_v20  ;;  %vm6606_vm9 = vcmp.le.f32.partialorder %v6805_v52, %v3905_v6  ;;  %v2619_v33 = vadd.f32 %v2618_v51, %v1665_v30  ;;  %v2704_v31 = vadd.f32 %v2703_v36, %v1666_v57 }
 0x1d1   : > { %v1367_v18 = vpop.permute.xlu1 %1366  ;;  %v1362_v7 = vpop.permute.xlu0 %1361  ;;  %vm6604_vm11 = vcmp.le.f32.partialorder %v6804_v2, %v3903_v46  ;;  %vm6603_vm12 = vcmp.le.f32.partialorder %v6804_v2, %v3905_v6 }
 0x1d2   : > { %v1667_v14 = vsel %vm6609_vm14, %v1362_v7, 0.0  ;;  %v1668_v59 = vsel %vm6607_vm15, %v1362_v7, 0.0  ;;  %v1669_v54 = vsel %vm6606_vm9, %v1362_v7, 0.0  ;;  %v1670_v51 = vsel %vm6605_vm13, %v1367_v18, 0.0  ;;  %v3211_v7 = vld [vmem:[%s6419_s1 + $0x78] sm:$0xff] }
 0x1d3   : > { %v2535_v20 = vadd.f32 %v2534_v58, %v1667_v14  ;;  %v2620_v36 = vadd.f32 %v2619_v33, %v1668_v59  ;;  %v2705_v30 = vadd.f32 %v2704_v31, %v1669_v54  ;;  %v1671_v57 = vsel %vm6604_vm11, %v1367_v18, 0.0  ;;  %v3212_v14 = vld [vmem:[%s6419_s1 + $0x70] sm:$0xff]  ;;  %v3213_v54 = vld [vmem:[%s6419_s1 + $0x80] sm:$0xff] }
 0x1d4   : > { %v1672_v8 = vsel %vm6603_vm12, %v1367_v18, 0.0  ;;  %v1784_v58 = vmul.f32 %v3211_v7, %v3211_v7  ;;  %v1783_v33 = vmul.f32 %v3212_v14, %v3212_v14  ;;  %v1785_v2 = vmul.f32 %v3213_v54, %v3213_v54  ;;  %v6806_v18 = vld [vmem:[#allocation28_spill] sm:$0xff] }
 0x1d5   : > { %v2536_v52 = vadd.f32 %v2535_v20, %v1670_v51  ;;  %v2621_v31 = vadd.f32 %v2620_v36, %v1671_v57  ;;  %v2706_v59 = vadd.f32 %v2705_v30, %v1672_v8  ;;  %vm6608_vm12 = vcmp.le.f32.partialorder %v6806_v18, %v3895_v32  ;;  %v6807_v20 = vld [vmem:[#allocation17_spill] sm:$0xff]  ;;  %v6808_v51 = vld [vmem:[#allocation27_spill] sm:$0xff] }
 0x1d6   : > { %1916 = vperm.xlu2 %3192, %v1782_v26   ;;  %vm6617_vm11 = vcmp.le.f32.partialorder %v6807_v20, %v3895_v32  ;;  %vm6610_vm13 = vcmp.le.f32.partialorder %v6806_v18, %v3903_v46  ;;  %vm6611_vm9 = vcmp.le.f32.partialorder %v6806_v18, %v3905_v6  ;;  %v1673_v26 = vsel %vm6608_vm12, %v4633_v0, 0.0 }
 0x1d7   : > { %1911 = vperm.xlu1 %3191, %v1781_v47   ;;  %1906 = vperm.xlu0 %3190, %v1780_v44   ;;  %vm6621_vm15 = vcmp.le.f32.partialorder %v6808_v51, %v3895_v32  ;;  %v1674_v47 = vsel %vm6610_vm13, %v4633_v0, 0.0  ;;  %v1675_v44 = vsel %vm6611_vm9, %v4633_v0, 0.0  ;;  %vm6619_vm12 = vcmp.le.f32.partialorder %v6808_v51, %v3903_v46 }
 0x1d8   : > { %v4869_v8 = vpop.permute.xlu2 %1431  ;;  %v2537_v57 = vadd.f32 %v2536_v52, %v1673_v26  ;;  %vm6618_vm14 = vcmp.le.f32.partialorder %v6808_v51, %v3905_v6  ;;  %v2622_v14 = vadd.f32 %v2621_v31, %v1674_v47  ;;  %v2707_v54 = vadd.f32 %v2706_v59, %v1675_v44 }
 0x1d9   : > { %v1382_v36 = vpop.permute.xlu1 %1381  ;;  %v1377_v30 = vpop.permute.xlu0 %1376  ;;  %vm6616_vm13 = vcmp.le.f32.partialorder %v6807_v20, %v3903_v46  ;;  %vm6615_vm9 = vcmp.le.f32.partialorder %v6807_v20, %v3905_v6 }
 0x1da   : > { %v1676_v7 = vsel %vm6621_vm15, %v1377_v30, 0.0  ;;  %v1677_v0 = vsel %vm6619_vm12, %v1377_v30, 0.0  ;;  %v1678_v52 = vsel %vm6618_vm14, %v1377_v30, 0.0  ;;  %v1679_v31 = vsel %vm6617_vm11, %v1382_v36, 0.0  ;;  %v3214_v30 = vld [vmem:[%s6419_s1 + $0x90] sm:$0xff] }
 0x1db   : > { %v2538_v26 = vadd.f32 %v2537_v57, %v1676_v7  ;;  %v2623_v59 = vadd.f32 %v2622_v14, %v1677_v0  ;;  %v2708_v47 = vadd.f32 %v2707_v54, %v1678_v52  ;;  %v1680_v44 = vsel %vm6616_vm13, %v1382_v36, 0.0  ;;  %v3215_v7 = vld [vmem:[%s6419_s1 + $0x88] sm:$0xff]  ;;  %v3216_v52 = vld [vmem:[%s6419_s1 + $0x98] sm:$0xff] }
 0x1dc   : > { %v1681_v18 = vsel %vm6615_vm9, %v1382_v36, 0.0  ;;  %v1787_v57 = vmul.f32 %v3214_v30, %v3214_v30  ;;  %v1786_v14 = vmul.f32 %v3215_v7, %v3215_v7  ;;  %v1788_v20 = vmul.f32 %v3216_v52, %v3216_v52  ;;  %v6809_v36 = vld [vmem:[#allocation31_spill] sm:$0xff] }
 0x1dd   : > { %v2539_v51 = vadd.f32 %v2538_v26, %v1679_v31  ;;  %v2624_v54 = vadd.f32 %v2623_v59, %v1680_v44  ;;  %v2709_v0 = vadd.f32 %v2708_v47, %v1681_v18  ;;  %vm6620_vm9 = vcmp.le.f32.partialorder %v6809_v36, %v3895_v32  ;;  %v6810_v26 = vld [vmem:[#allocation20_spill] sm:$0xff]  ;;  %v6811_v31 = vld [vmem:[#allocation30_spill] sm:$0xff] }
 0x1de   : > { %1931 = vperm.xlu2 %3192, %v1785_v2   ;;  %vm6629_vm13 = vcmp.le.f32.partialorder %v6810_v26, %v3895_v32  ;;  %vm6622_vm11 = vcmp.le.f32.partialorder %v6809_v36, %v3903_v46  ;;  %vm6623_vm14 = vcmp.le.f32.partialorder %v6809_v36, %v3905_v6  ;;  %v1682_v2 = vsel %vm6620_vm9, %v4692_v19, 0.0 }
 0x1df   : > { %1926 = vperm.xlu1 %3191, %v1784_v58   ;;  %1921 = vperm.xlu0 %3190, %v1783_v33   ;;  %vm6633_vm12 = vcmp.le.f32.partialorder %v6811_v31, %v3895_v32  ;;  %v1683_v58 = vsel %vm6622_vm11, %v4692_v19, 0.0  ;;  %v1684_v33 = vsel %vm6623_vm14, %v4692_v19, 0.0  ;;  %vm6631_vm9 = vcmp.le.f32.partialorder %v6811_v31, %v3903_v46 }
 0x1e0   : > { %v4928_v18 = vpop.permute.xlu2 %1446  ;;  %v2540_v44 = vadd.f32 %v2539_v51, %v1682_v2  ;;  %vm6630_vm15 = vcmp.le.f32.partialorder %v6811_v31, %v3905_v6  ;;  %v2625_v7 = vadd.f32 %v2624_v54, %v1683_v58  ;;  %v2710_v52 = vadd.f32 %v2709_v0, %v1684_v33 }
 0x1e1   : > { %v1397_v59 = vpop.permute.xlu1 %1396  ;;  %v1392_v47 = vpop.permute.xlu0 %1391  ;;  %vm6628_vm11 = vcmp.le.f32.partialorder %v6810_v26, %v3903_v46  ;;  %vm6627_vm14 = vcmp.le.f32.partialorder %v6810_v26, %v3905_v6 }
 0x1e2   : > { %v1685_v30 = vsel %vm6633_vm12, %v1392_v47, 0.0  ;;  %v1686_v19 = vsel %vm6631_vm9, %v1392_v47, 0.0  ;;  %v1687_v51 = vsel %vm6630_vm15, %v1392_v47, 0.0  ;;  %v1688_v54 = vsel %vm6629_vm13, %v1397_v59, 0.0  ;;  %v3217_v47 = vld [vmem:[%s6419_s1 + $0xa8] sm:$0xff] }
 0x1e3   : > { %v2541_v2 = vadd.f32 %v2540_v44, %v1685_v30  ;;  %v2626_v0 = vadd.f32 %v2625_v7, %v1686_v19  ;;  %v2711_v58 = vadd.f32 %v2710_v52, %v1687_v51  ;;  %v1689_v33 = vsel %vm6628_vm11, %v1397_v59, 0.0  ;;  %v3218_v30 = vld [vmem:[%s6419_s1 + $0xa0] sm:$0xff]  ;;  %v3219_v51 = vld [vmem:[%s6419_s1 + $0xb0] sm:$0xff] }
 0x1e4   : > { %v1690_v36 = vsel %vm6627_vm14, %v1397_v59, 0.0  ;;  %v1790_v44 = vmul.f32 %v3217_v47, %v3217_v47  ;;  %v1789_v7 = vmul.f32 %v3218_v30, %v3218_v30  ;;  %v1791_v26 = vmul.f32 %v3219_v51, %v3219_v51  ;;  %v6812_v59 = vld [vmem:[#allocation34_spill] sm:$0xff] }
 0x1e5   : > { %v2542_v31 = vadd.f32 %v2541_v2, %v1688_v54  ;;  %v2627_v52 = vadd.f32 %v2626_v0, %v1689_v33  ;;  %v2712_v19 = vadd.f32 %v2711_v58, %v1690_v36  ;;  %vm6632_vm14 = vcmp.le.f32.partialorder %v6812_v59, %v3895_v32  ;;  %v6813_v2 = vld [vmem:[#allocation23_spill] sm:$0xff]  ;;  %v6814_v54 = vld [vmem:[#allocation33_spill] sm:$0xff] }
 0x1e6   : > { %1946 = vperm.xlu2 %3192, %v1788_v20   ;;  %vm6641_vm11 = vcmp.le.f32.partialorder %v6813_v2, %v3895_v32  ;;  %vm6634_vm13 = vcmp.le.f32.partialorder %v6812_v59, %v3903_v46  ;;  %vm6635_vm15 = vcmp.le.f32.partialorder %v6812_v59, %v3905_v6  ;;  %v1691_v20 = vsel %vm6632_vm14, %v4751_v39, 0.0 }
 0x1e7   : > { %1941 = vperm.xlu1 %3191, %v1787_v57   ;;  %1936 = vperm.xlu0 %3190, %v1786_v14   ;;  %vm6645_vm9 = vcmp.le.f32.partialorder %v6814_v54, %v3895_v32  ;;  %v1692_v57 = vsel %vm6634_vm13, %v4751_v39, 0.0  ;;  %v1693_v14 = vsel %vm6635_vm15, %v4751_v39, 0.0  ;;  %vm6643_vm14 = vcmp.le.f32.partialorder %v6814_v54, %v3903_v46 }
 0x1e8   : > { %v4987_v36 = vpop.permute.xlu2 %1461  ;;  %v2543_v33 = vadd.f32 %v2542_v31, %v1691_v20  ;;  %vm6642_vm12 = vcmp.le.f32.partialorder %v6814_v54, %v3905_v6  ;;  %v2628_v30 = vadd.f32 %v2627_v52, %v1692_v57  ;;  %v2713_v51 = vadd.f32 %v2712_v19, %v1693_v14 }
 0x1e9   : > { %v1412_v0 = vpop.permute.xlu1 %1411  ;;  %v1407_v58 = vpop.permute.xlu0 %1406  ;;  %vm6640_vm13 = vcmp.le.f32.partialorder %v6813_v2, %v3903_v46  ;;  %vm6639_vm15 = vcmp.le.f32.partialorder %v6813_v2, %v3905_v6 }
 0x1ea   : > { %v1694_v47 = vsel %vm6645_vm9, %v1407_v58, 0.0  ;;  %v1695_v39 = vsel %vm6643_vm14, %v1407_v58, 0.0  ;;  %v1696_v31 = vsel %vm6642_vm12, %v1407_v58, 0.0  ;;  %v1697_v52 = vsel %vm6641_vm11, %v1412_v0, 0.0  ;;  %v3220_v58 = vld [vmem:[%s6419_s1 + $0xc0] sm:$0xff] }
 0x1eb   : > { %v2544_v20 = vadd.f32 %v2543_v33, %v1694_v47  ;;  %v2629_v19 = vadd.f32 %v2628_v30, %v1695_v39  ;;  %v2714_v57 = vadd.f32 %v2713_v51, %v1696_v31  ;;  %v1698_v14 = vsel %vm6640_vm13, %v1412_v0, 0.0  ;;  %v3221_v47 = vld [vmem:[%s6419_s1 + $0xb8] sm:$0xff]  ;;  %v3222_v31 = vld [vmem:[%s6419_s1 + $0xc8] sm:$0xff] }
 0x1ec   : > { %v1699_v59 = vsel %vm6639_vm15, %v1412_v0, 0.0  ;;  %v1793_v33 = vmul.f32 %v3220_v58, %v3220_v58  ;;  %v1792_v30 = vmul.f32 %v3221_v47, %v3221_v47  ;;  %v1794_v2 = vmul.f32 %v3222_v31, %v3222_v31  ;;  %v6815_v0 = vld [vmem:[#allocation37_spill] sm:$0xff] }
 0x1ed   : > { %v2545_v54 = vadd.f32 %v2544_v20, %v1697_v52  ;;  %v2630_v51 = vadd.f32 %v2629_v19, %v1698_v14  ;;  %v2715_v39 = vadd.f32 %v2714_v57, %v1699_v59  ;;  %vm6644_vm15 = vcmp.le.f32.partialorder %v6815_v0, %v3895_v32  ;;  %v6816_v20 = vld [vmem:[#allocation26_spill] sm:$0xff]  ;;  %v6817_v52 = vld [vmem:[#allocation36_spill] sm:$0xff] }
 0x1ee   : > { %1961 = vperm.xlu2 %3192, %v1791_v26   ;;  %vm6653_vm13 = vcmp.le.f32.partialorder %v6816_v20, %v3895_v32  ;;  %vm6646_vm11 = vcmp.le.f32.partialorder %v6815_v0, %v3903_v46  ;;  %vm6647_vm12 = vcmp.le.f32.partialorder %v6815_v0, %v3905_v6  ;;  %v1700_v26 = vsel %vm6644_vm15, %v4810_v60, 0.0 }
 0x1ef   : > { %1956 = vperm.xlu1 %3191, %v1790_v44   ;;  %1951 = vperm.xlu0 %3190, %v1789_v7   ;;  %vm6657_vm14 = vcmp.le.f32.partialorder %v6817_v52, %v3895_v32  ;;  %v1701_v44 = vsel %vm6646_vm11, %v4810_v60, 0.0  ;;  %v1702_v7 = vsel %vm6647_vm12, %v4810_v60, 0.0  ;;  %vm6655_vm15 = vcmp.le.f32.partialorder %v6817_v52, %v3903_v46 }
 0x1f0   : > { %v5046_v59 = vpop.permute.xlu2 %1476  ;;  %v2546_v14 = vadd.f32 %v2545_v54, %v1700_v26  ;;  %vm6654_vm9 = vcmp.le.f32.partialorder %v6817_v52, %v3905_v6  ;;  %v2631_v47 = vadd.f32 %v2630_v51, %v1701_v44  ;;  %v2716_v31 = vadd.f32 %v2715_v39, %v1702_v7 }
 0x1f1   : > { %v1427_v19 = vpop.permute.xlu1 %1426  ;;  %v1422_v57 = vpop.permute.xlu0 %1421  ;;  %vm6652_vm11 = vcmp.le.f32.partialorder %v6816_v20, %v3903_v46  ;;  %vm6651_vm12 = vcmp.le.f32.partialorder %v6816_v20, %v3905_v6 }
 0x1f2   : > { %v1703_v58 = vsel %vm6657_vm14, %v1422_v57, 0.0  ;;  %v1704_v60 = vsel %vm6655_vm15, %v1422_v57, 0.0  ;;  %v1705_v54 = vsel %vm6654_vm9, %v1422_v57, 0.0  ;;  %v1706_v51 = vsel %vm6653_vm13, %v1427_v19, 0.0  ;;  %v3223_v57 = vld [vmem:[%s6419_s1 + $0xd8] sm:$0xff] }
 0x1f3   : > { %v2547_v26 = vadd.f32 %v2546_v14, %v1703_v58  ;;  %v2632_v39 = vadd.f32 %v2631_v47, %v1704_v60  ;;  %v2717_v44 = vadd.f32 %v2716_v31, %v1705_v54  ;;  %v1707_v7 = vsel %vm6652_vm11, %v1427_v19, 0.0  ;;  %v3224_v58 = vld [vmem:[%s6419_s1 + $0xd0] sm:$0xff]  ;;  %v3225_v54 = vld [vmem:[%s6419_s1 + $0xe0] sm:$0xff] }
 0x1f4   : > { %v1708_v0 = vsel %vm6651_vm12, %v1427_v19, 0.0  ;;  %v1796_v14 = vmul.f32 %v3223_v57, %v3223_v57  ;;  %v1795_v47 = vmul.f32 %v3224_v58, %v3224_v58  ;;  %v1797_v20 = vmul.f32 %v3225_v54, %v3225_v54  ;;  %v6818_v19 = vld [vmem:[#allocation40_spill] sm:$0xff] }
 0x1f5   : > { %v2548_v52 = vadd.f32 %v2547_v26, %v1706_v51  ;;  %v2633_v31 = vadd.f32 %v2632_v39, %v1707_v7  ;;  %v2718_v60 = vadd.f32 %v2717_v44, %v1708_v0  ;;  %vm6656_vm12 = vcmp.le.f32.partialorder %v6818_v19, %v3895_v32  ;;  %v6819_v26 = vld [vmem:[#allocation29_spill] sm:$0xff]  ;;  %v6820_v51 = vld [vmem:[#allocation39_spill] sm:$0xff] }
 0x1f6   : > { %1976 = vperm.xlu2 %3192, %v1794_v2   ;;  %vm6665_vm11 = vcmp.le.f32.partialorder %v6819_v26, %v3895_v32  ;;  %vm6658_vm13 = vcmp.le.f32.partialorder %v6818_v19, %v3903_v46  ;;  %vm6659_vm9 = vcmp.le.f32.partialorder %v6818_v19, %v3905_v6  ;;  %v1709_v2 = vsel %vm6656_vm12, %v4869_v8, 0.0 }
 0x1f7   : > { %1971 = vperm.xlu1 %3191, %v1793_v33   ;;  %1966 = vperm.xlu0 %3190, %v1792_v30   ;;  %vm6669_vm15 = vcmp.le.f32.partialorder %v6820_v51, %v3895_v32  ;;  %v1710_v33 = vsel %vm6658_vm13, %v4869_v8, 0.0  ;;  %v1711_v30 = vsel %vm6659_vm9, %v4869_v8, 0.0  ;;  %vm6667_vm12 = vcmp.le.f32.partialorder %v6820_v51, %v3903_v46 }
 0x1f8   : > { %v5105_v0 = vpop.permute.xlu2 %1491  ;;  %v2549_v7 = vadd.f32 %v2548_v52, %v1709_v2  ;;  %vm6666_vm14 = vcmp.le.f32.partialorder %v6820_v51, %v3905_v6  ;;  %v2634_v58 = vadd.f32 %v2633_v31, %v1710_v33  ;;  %v2719_v54 = vadd.f32 %v2718_v60, %v1711_v30 }
 0x1f9   : > { %v1442_v39 = vpop.permute.xlu1 %1441  ;;  %v1437_v44 = vpop.permute.xlu0 %1436  ;;  %vm6664_vm13 = vcmp.le.f32.partialorder %v6819_v26, %v3903_v46  ;;  %vm6663_vm9 = vcmp.le.f32.partialorder %v6819_v26, %v3905_v6 }
 0x1fa   : > { %v1712_v57 = vsel %vm6669_vm15, %v1437_v44, 0.0  ;;  %v1713_v8 = vsel %vm6667_vm12, %v1437_v44, 0.0  ;;  %v1714_v52 = vsel %vm6666_vm14, %v1437_v44, 0.0  ;;  %v1715_v31 = vsel %vm6665_vm11, %v1442_v39, 0.0  ;;  %v3226_v44 = vld [vmem:[%s6419_s1 + $0xf0] sm:$0xff] }
 0x1fb   : > { %v2550_v2 = vadd.f32 %v2549_v7, %v1712_v57  ;;  %v2635_v60 = vadd.f32 %v2634_v58, %v1713_v8  ;;  %v2720_v33 = vadd.f32 %v2719_v54, %v1714_v52  ;;  %v1716_v30 = vsel %vm6664_vm13, %v1442_v39, 0.0  ;;  %v3227_v57 = vld [vmem:[%s6419_s1 + $0xe8] sm:$0xff]  ;;  %v3228_v52 = vld [vmem:[%s6419_s1 + $0xf8] sm:$0xff] }
 0x1fc   : > { %v1717_v19 = vsel %vm6663_vm9, %v1442_v39, 0.0  ;;  %v1799_v7 = vmul.f32 %v3226_v44, %v3226_v44  ;;  %v1798_v58 = vmul.f32 %v3227_v57, %v3227_v57  ;;  %v1800_v26 = vmul.f32 %v3228_v52, %v3228_v52  ;;  %v6821_v39 = vld [vmem:[#allocation43_spill] sm:$0xff] }
 0x1fd   : > { %v2551_v51 = vadd.f32 %v2550_v2, %v1715_v31  ;;  %v2636_v54 = vadd.f32 %v2635_v60, %v1716_v30  ;;  %v2721_v8 = vadd.f32 %v2720_v33, %v1717_v19  ;;  %vm6668_vm9 = vcmp.le.f32.partialorder %v6821_v39, %v3895_v32  ;;  %v6822_v2 = vld [vmem:[#allocation32_spill] sm:$0xff]  ;;  %v6823_v31 = vld [vmem:[#allocation42_spill] sm:$0xff] }
 0x1fe   : > { %1991 = vperm.xlu2 %3192, %v1797_v20   ;;  %vm6674_vm13 = vcmp.le.f32.partialorder %v6822_v2, %v3895_v32  ;;  %vm6670_vm11 = vcmp.le.f32.partialorder %v6821_v39, %v3903_v46  ;;  %vm6671_vm14 = vcmp.le.f32.partialorder %v6821_v39, %v3905_v6  ;;  %v1718_v20 = vsel %vm6668_vm9, %v4928_v18, 0.0 }
 0x1ff   : > { %1986 = vperm.xlu1 %3191, %v1796_v14   ;;  %1981 = vperm.xlu0 %3190, %v1795_v47   ;;  %vm6682_vm12 = vcmp.le.f32.partialorder %v6823_v31, %v3895_v32  ;;  %v1719_v14 = vsel %vm6670_vm11, %v4928_v18, 0.0  ;;  %v1720_v47 = vsel %vm6671_vm14, %v4928_v18, 0.0  ;;  %vm6681_vm9 = vcmp.le.f32.partialorder %v6823_v31, %v3903_v46 }
 0x200   : > { %v5164_v19 = vpop.permute.xlu2 %1506  ;;  %v2552_v30 = vadd.f32 %v2551_v51, %v1718_v20  ;;  %vm6680_vm15 = vcmp.le.f32.partialorder %v6823_v31, %v3905_v6  ;;  %v2637_v57 = vadd.f32 %v2636_v54, %v1719_v14  ;;  %v2722_v52 = vadd.f32 %v2721_v8, %v1720_v47  ;;  %v3229_v47 = vld [vmem:[%s6419_s1 + $0x108] sm:$0xff] }
 0x201   : > { %v1457_v60 = vpop.permute.xlu1 %1456  ;;  %v1452_v33 = vpop.permute.xlu0 %1451  ;;  %vm6679_vm11 = vcmp.le.f32.partialorder %v6822_v2, %v3903_v46  ;;  %vm6678_vm14 = vcmp.le.f32.partialorder %v6822_v2, %v3905_v6  ;;  %v1802_v39 = vmul.f32 %v3229_v47, %v3229_v47  ;;  %v3231_v47 = vld [vmem:[%s6419_s1 + $0x110] sm:$0xff] }
 0x202   : > { %v1721_v44 = vsel %vm6682_vm12, %v1452_v33, 0.0  ;;  %v1722_v18 = vsel %vm6681_vm9, %v1452_v33, 0.0  ;;  %v1723_v51 = vsel %vm6680_vm15, %v1452_v33, 0.0  ;;  %v1724_v54 = vsel %vm6674_vm13, %v1457_v60, 0.0  ;;  %v6825_v2 = vld [vmem:[#allocation46_spill] sm:$0xff] }
 0x203   : > { %v2553_v20 = vadd.f32 %v2552_v30, %v1721_v44  ;;  %v2638_v8 = vadd.f32 %v2637_v57, %v1722_v18  ;;  %v2723_v14 = vadd.f32 %v2722_v52, %v1723_v51  ;;  %v1725_v31 = vsel %vm6679_vm11, %v1457_v60, 0.0  ;;  %v3230_v44 = vld [vmem:[%s6419_s1 + $0x100] sm:$0xff] }
 0x204   : > { %v1726_v33 = vsel %vm6678_vm14, %v1457_v60, 0.0  ;;  %v1801_v57 = vmul.f32 %v3230_v44, %v3230_v44  ;;  %v6824_v51 = vld [vmem:[#allocation35_spill] sm:$0xff]  ;;  %v1803_v38 = vmul.f32 %v3231_v47, %v3231_v47  ;;  %vm6683_vm14 = vcmp.le.f32.partialorder %v6825_v2, %v3895_v32  ;;  %v6826_v60 = vld [vmem:[#allocation45_spill] sm:$0xff] }
 0x205   : > { %v2554_v30 = vadd.f32 %v2553_v20, %v1724_v54  ;;  %v2639_v52 = vadd.f32 %v2638_v8, %v1725_v31  ;;  %v2724_v18 = vadd.f32 %v2723_v14, %v1726_v33  ;;  %vm6690_vm13 = vcmp.le.f32.partialorder %v6824_v51, %v3895_v32 }
 0x206   : > { %2006 = vperm.xlu2 %3192, %v1800_v26   ;;  %vm6692_vm11 = vcmp.le.f32.partialorder %v6824_v51, %v3903_v46  ;;  %vm6685_vm15 = vcmp.le.f32.partialorder %v6825_v2, %v3903_v46  ;;  %vm6696_vm9 = vcmp.le.f32.partialorder %v6825_v2, %v3905_v6  ;;  %v1727_v26 = vsel %vm6683_vm14, %v4987_v36, 0.0 }
 0x207   : > { %2001 = vperm.xlu1 %3191, %v1799_v7   ;;  %1996 = vperm.xlu0 %3190, %v1798_v58   ;;  %vm6695_vm12 = vcmp.le.f32.partialorder %v6826_v60, %v3895_v32  ;;  %v1728_v7 = vsel %vm6685_vm15, %v4987_v36, 0.0  ;;  %v1729_v58 = vsel %vm6696_vm9, %v4987_v36, 0.0  ;;  %vm6694_vm14 = vcmp.le.f32.partialorder %v6826_v60, %v3903_v46 }
 0x208   : > { %v5225_v31 = vpop.permute.xlu2 %1521  ;;  %v2555_v8 = vadd.f32 %v2554_v30, %v1727_v26  ;;  %vm6691_vm8 = vcmp.le.f32.partialorder %v6826_v60, %v3905_v6  ;;  %v2640_v33 = vadd.f32 %v2639_v52, %v1728_v7  ;;  %v2725_v44 = vadd.f32 %v2724_v18, %v1729_v58  ;;  %v3232_v26 = vld [vmem:[%s6419_s1 + $0x120] sm:$0xff]  ;;  %v3233_v58 = vld [vmem:[%s6419_s1 + $0x118] sm:$0xff] }
 0x209   : > { %v1472_v20 = vpop.permute.xlu1 %1471  ;;  %v1467_v54 = vpop.permute.xlu0 %1466  ;;  %vm6693_vm15 = vcmp.le.f32.partialorder %v6824_v51, %v3905_v6  ;;  %v1805_v2 = vmul.f32 %v3232_v26, %v3232_v26  ;;  %v1804_v48 = vmul.f32 %v3233_v58, %v3233_v58 }
 0x20a   : > { %v1730_v14 = vsel %vm6695_vm12, %v1467_v54, 0.0  ;;  %v1731_v36 = vsel %vm6694_vm14, %v1467_v54, 0.0  ;;  %v1732_v30 = vsel %vm6691_vm8, %v1467_v54, 0.0  ;;  %v1733_v52 = vsel %vm6690_vm13, %v1472_v20, 0.0 }
 0x20b   : > { %v2556_v47 = vadd.f32 %v2555_v8, %v1730_v14  ;;  %v2641_v18 = vadd.f32 %v2640_v33, %v1731_v36  ;;  %v2726_v7 = vadd.f32 %v2725_v44, %v1732_v30  ;;  %v1734_v54 = vsel %vm6692_vm11, %v1472_v20, 0.0  ;;  %v6827_v33 = vld [vmem:[#allocation38_spill] sm:$0xff]  ;;  %v3234_v44 = vld [vmem:[%s6419_s1 + $0x128] sm:$0xff] }
 0x20c   : > { %v1735_v8 = vsel %vm6693_vm15, %v1472_v20, 0.0  ;;  %vm6704_vm13 = vcmp.le.f32.partialorder %v6827_v33, %v3895_v32  ;;  %vm6705_vm8 = vcmp.le.f32.partialorder %v6827_v33, %v3903_v46  ;;  %v1806_v36 = vmul.f32 %v3234_v44, %v3234_v44  ;;  %v6828_v30 = vld [vmem:[#allocation48_spill] sm:$0xff]  ;;  %v3235_v44 = vld [vmem:[%s6419_s1 + $0x138] sm:$0xff] }
 0x20d   : > { %v2557_v14 = vadd.f32 %v2556_v47, %v1733_v52  ;;  %v2642_v26 = vadd.f32 %v2641_v18, %v1734_v54  ;;  %v2727_v60 = vadd.f32 %v2726_v7, %v1735_v8  ;;  %vm6697_vm11 = vcmp.le.f32.partialorder %v6828_v30, %v3895_v32  ;;  %v6829_v47 = vld [vmem:[#allocation47_spill] sm:$0xff] }
 0x20e   : > { %2021 = vperm.xlu2 %3192, %v1803_v38   ;;  %vm6706_vm15 = vcmp.le.f32.partialorder %v6827_v33, %v3905_v6  ;;  %vm1097_vm14 = vcmp.le.f32.partialorder %v6828_v30, %v3903_v46  ;;  %vm6711_vm12 = vcmp.le.f32.partialorder %v6828_v30, %v3905_v6  ;;  %v1736_v38 = vsel %vm6697_vm11, %v5046_v59, 0.0 }
 0x20f   : > { %2016 = vperm.xlu1 %3191, %v1802_v39   ;;  %2011 = vperm.xlu0 %3190, %v1801_v57   ;;  %vm6709_vm9 = vcmp.le.f32.partialorder %v6829_v47, %v3895_v32  ;;  %v1737_v39 = vsel %vm1097_vm14, %v5046_v59, 0.0  ;;  %v1738_v57 = vsel %vm6711_vm12, %v5046_v59, 0.0  ;;  %vm6708_vm11 = vcmp.le.f32.partialorder %v6829_v47, %v3903_v46 }
 0x210   : > { %v5286_v20 = vpop.permute.xlu2 %1856  ;;  %v2558_v7 = vadd.f32 %v2557_v14, %v1736_v38  ;;  %vm6707_vm1 = vcmp.le.f32.partialorder %v6829_v47, %v3905_v6  ;;  %v2643_v54 = vadd.f32 %v2642_v26, %v1737_v39  ;;  %v2728_v8 = vadd.f32 %v2727_v60, %v1738_v57  ;;  %v3236_v57 = vld [vmem:[%s6419_s1 + $0x130] sm:$0xff] }
 0x211   : > { %v1487_v52 = vpop.permute.xlu1 %1486  ;;  %v1482_v18 = vpop.permute.xlu0 %1481  ;;  %v1808_v59 = vmul.f32 %v3235_v44, %v3235_v44  ;;  %v315_v39 = vlaneseq  ;;  %v1807_v44 = vmul.f32 %v3236_v57, %v3236_v57 }
 0x212   : > { %v1739_v58 = vsel %vm6709_vm9, %v1482_v18, 0.0  ;;  %v1740_v30 = vsel %vm6708_vm11, %v1482_v18, 0.0  ;;  %v1741_v14 = vsel %vm6707_vm1, %v1482_v18, 0.0  ;;  %v1742_v51 = vsel %vm6704_vm13, %v1487_v52, 0.0 }
 0x213   : > { %v2559_v38 = vadd.f32 %v2558_v7, %v1739_v58  ;;  %v2644_v26 = vadd.f32 %v2643_v54, %v1740_v30  ;;  %v2729_v60 = vadd.f32 %v2728_v8, %v1741_v14  ;;  %v1743_v24 = vsel %vm6705_vm8, %v1487_v52, 0.0  ;;  %v3237_v54 = vld [vmem:[%s6419_s1 + $0x140] sm:$0xff]  ;;  %v6832_v14 = vld [vmem:[#allocation50_spill] sm:$0xff] }
 0x214   : > { %v1744_v18 = vsel %vm6706_vm15, %v1487_v52, 0.0  ;;  %vm5326_vm13 = vcmp.lt.s32.totalorder %v315_v39, 384  ;;  %v1809_v8 = vmul.f32 %v3237_v54, %v3237_v54  ;;  %vm6710_vm8 = vcmp.le.f32.partialorder %v6832_v14, %v3895_v32  ;;  %v6833_v52 = vld [vmem:[#allocation41_spill] sm:$0xff] }
 0x215   : > { %v2560_v7 = vadd.f32 %v2559_v38, %v1742_v51  ;;  %v2645_v58 = vadd.f32 %v2644_v26, %v1743_v24  ;;  %v2730_v47 = vadd.f32 %v2729_v60, %v1744_v18  ;;  %vm6717_vm15 = vcmp.le.f32.partialorder %v6833_v52, %v3895_v32 }
 0x216   : > { %2036 = vperm.xlu2 %3192, %v1806_v36   ;;  %v3302_v24 = vmov 0.0   ;;  %vm6712_vm1 = vcmp.le.f32.partialorder %v6832_v14, %v3903_v46  ;;  %vm6713_vm11 = vcmp.le.f32.partialorder %v6832_v14, %v3905_v6  ;;  %v1745_v51 = vsel %vm6710_vm8, %v5105_v0, 0.0 }
 0x217   : > { %2031 = vperm.xlu1 %3191, %v1805_v2   ;;  %2026 = vperm.xlu0 %3190, %v1804_v48   ;;  %319 = vst.msk [vmem:[#allocation2] sm:$0x7] %vm5326_vm13, %v3302_v24  ;;  %v6834_v48 = vld [vmem:[#allocation49_spill] sm:$0xff]  ;;  %v1746_v36 = vsel %vm6712_vm1, %v5105_v0, 0.0  ;;  %v1747_v38 = vsel %vm6713_vm11, %v5105_v0, 0.0  ;;  %v2561_v39 = vadd.f32 %v2560_v7, %v1745_v51  ;;  %vm6718_vm1 = vcmp.le.f32.partialorder %v6833_v52, %v3903_v46 }
 0x218   : > { %v5347_v2 = vpop.permute.xlu2 %1871  ;;  %vm1108_vm9 = vcmp.le.f32.partialorder %v6834_v48, %v3895_v32  ;;  %320 = vst.msk [vmem:[#allocation3] sm:$0x7] %vm5326_vm13, %v3302_v24  ;;  %vm6720_vm8 = vcmp.le.f32.partialorder %v6834_v48, %v3903_v46  ;;  %vm6715_vm12 = vcmp.le.f32.partialorder %v6834_v48, %v3905_v6  ;;  %v2646_v18 = vadd.f32 %v2645_v58, %v1746_v36 }
 0x219   : > { %v1502_v26 = vpop.permute.xlu1 %1501  ;;  %v1497_v60 = vpop.permute.xlu0 %1496  ;;  %v2731_v54 = vadd.f32 %v2730_v47, %v1747_v38  ;;  %vm6719_vm11 = vcmp.le.f32.partialorder %v6833_v52, %v3905_v6 }
 0x21a   : > { %v1748_v57 = vsel %vm1108_vm9, %v1497_v60, 0.0  ;;  %v1749_v0 = vsel %vm6720_vm8, %v1497_v60, 0.0  ;;  %v1750_v7 = vsel %vm6715_vm12, %v1497_v60, 0.0  ;;  %v1751_v58 = vsel %vm6717_vm15, %v1502_v26, 0.0  ;;  %v3238_v60 = vld [vmem:[%s6419_s1 + $0x150] sm:$0xff] }
 0x21b   : > { %v2562_v24 = vadd.f32 %v2561_v39, %v1748_v57  ;;  %v2647_v47 = vadd.f32 %v2646_v18, %v1749_v0  ;;  %v2732_v51 = vadd.f32 %v2731_v54, %v1750_v7  ;;  %v1752_v36 = vsel %vm6718_vm1, %v1502_v26, 0.0  ;;  %v6835_v57 = vld [vmem:[#allocation52_spill] sm:$0xff] }
 0x21c   : > { %v1753_v38 = vsel %vm6719_vm11, %v1502_v26, 0.0  ;;  %v1811_v39 = vmul.f32 %v3238_v60, %v3238_v60  ;;  %vm6721_vm12 = vcmp.le.f32.partialorder %v6835_v57, %v3895_v32  ;;  %vm6731_vm15 = vcmp.le.f32.partialorder %v6835_v57, %v3903_v46  ;;  %v6836_v26 = vld [vmem:[#allocation51_spill] sm:$0xff] }
 0x21d   : > { %v2563_v48 = vadd.f32 %v2562_v24, %v1751_v58  ;;  %v2648_v14 = vadd.f32 %v2647_v47, %v1752_v36  ;;  %v2733_v18 = vadd.f32 %v2732_v51, %v1753_v38  ;;  %vm6722_vm1 = vcmp.le.f32.partialorder %v6835_v57, %v3905_v6  ;;  %v3239_v51 = vld [vmem:[%s6419_s1 + $0x158] sm:$0xff] }
 0x21e   : > { %2051 = vperm.xlu2 %3192, %v1809_v8   ;;  %vm6723_vm11 = vcmp.le.f32.partialorder %v6836_v26, %v3895_v32  ;;  %v1754_v54 = vsel %vm6721_vm12, %v5164_v19, 0.0  ;;  %v1755_v8 = vsel %vm6731_vm15, %v5164_v19, 0.0  ;;  %v1756_v0 = vsel %vm6722_vm1, %v5164_v19, 0.0 }
 0x21f   : > { %2046 = vperm.xlu1 %3191, %v1808_v59   ;;  %2041 = vperm.xlu0 %3190, %v1807_v44   ;;  %vm6724_vm8 = vcmp.le.f32.partialorder %v6836_v26, %v3903_v46  ;;  %vm6730_vm12 = vcmp.le.f32.partialorder %v6836_v26, %v3905_v6  ;;  %v2564_v24 = vadd.f32 %v2563_v48, %v1754_v54 }
 0x220   : > { %v5410_v59 = vpop.permute.xlu2 %1886  ;;  %v2649_v58 = vadd.f32 %v2648_v14, %v1755_v8  ;;  %v2734_v47 = vadd.f32 %v2733_v18, %v1756_v0  ;;  %v1812_v36 = vmul.f32 %v3239_v51, %v3239_v51  ;;  %v3240_v14 = vld [vmem:[%s6419_s1 + $0x148] sm:$0xff] }
 0x221   : > { %v1517_v44 = vpop.permute.xlu1 %1516  ;;  %v1512_v7 = vpop.permute.xlu0 %1511  ;;  %v1810_v48 = vmul.f32 %v3240_v14, %v3240_v14  ;;  %v6837_v0 = vld [vmem:[#allocation44_spill] sm:$0xff]  ;;  %v3242_v14 = vld [vmem:[%s6419_s1 + $0x170] sm:$0xff] }
 0x222   : > { %v1757_v19 = vsel %vm6723_vm11, %v1512_v7, 0.0  ;;  %v1758_v38 = vsel %vm6724_vm8, %v1512_v7, 0.0  ;;  %v1759_v60 = vsel %vm6730_vm12, %v1512_v7, 0.0  ;;  %vm6729_vm1 = vcmp.le.f32.partialorder %v6837_v0, %v3895_v32 }
 0x223   : > { %v2565_v18 = vadd.f32 %v2564_v24, %v1757_v19  ;;  %v2650_v54 = vadd.f32 %v2649_v58, %v1758_v38  ;;  %v2735_v8 = vadd.f32 %v2734_v47, %v1759_v60  ;;  %vm6728_vm11 = vcmp.le.f32.partialorder %v6837_v0, %v3903_v46  ;;  %v3241_v19 = vld [vmem:[%s6419_s1 + $0x168] sm:$0xff] }
 0x224   : > { %vm6727_vm8 = vcmp.le.f32.partialorder %v6837_v0, %v3905_v6  ;;  %v1760_v7 = vsel %vm6729_vm1, %v1517_v44, 0.0  ;;  %v1761_v51 = vsel %vm6728_vm11, %v1517_v44, 0.0  ;;  %v1814_v38 = vmul.f32 %v3241_v19, %v3241_v19  ;;  %v6838_v0 = vld [vmem:[#allocation53_spill] sm:$0xff]  ;;  %v3243_v19 = vld [vmem:[%s6419_s1 + $0x160] sm:$0xff] }
 0x225   : > { %v1762_v24 = vsel %vm6727_vm8, %v1517_v44, 0.0  ;;  %v2566_v58 = vadd.f32 %v2565_v18, %v1760_v7  ;;  %v2651_v47 = vadd.f32 %v2650_v54, %v1761_v51  ;;  %v1815_v26 = vmul.f32 %v3242_v14, %v3242_v14  ;;  %v6839_v44 = vld [vmem:[#allocation54_spill] sm:$0xff] }
 0x226   : > { %2066 = vperm.xlu2 %3192, %v1812_v36   ;;  %v2736_v60 = vadd.f32 %v2735_v8, %v1762_v24  ;;  %vm1126_vm8 = vcmp.le.f32.partialorder %v6838_v0, %v3895_v32  ;;  %vm6732_vm11 = vcmp.le.f32.partialorder %v6839_v44, %v3895_v32  ;;  %vm1124_vm1 = vcmp.le.f32.partialorder %v6839_v44, %v3903_v46 }
 0x227   : > { %2061 = vperm.xlu1 %3191, %v1811_v39   ;;  %2056 = vperm.xlu0 %3190, %v1810_v48   ;;  %vm1127_vm12 = vcmp.le.f32.partialorder %v6838_v0, %v3903_v46  ;;  %vm1125_vm15 = vcmp.le.f32.partialorder %v6839_v44, %v3905_v6  ;;  %v1763_v48 = vsel %vm6732_vm11, %v5225_v31, 0.0  ;;  %v1764_v54 = vsel %vm1124_vm1, %v5225_v31, 0.0 }
 0x228   : > { %v5452_v36 = vpop.permute.xlu2 %1901  ;;  %v1765_v7 = vsel %vm1125_vm15, %v5225_v31, 0.0  ;;  %v2567_v51 = vadd.f32 %v2566_v58, %v1763_v48  ;;  %v2652_v24 = vadd.f32 %v2651_v47, %v1764_v54  ;;  %v1813_v14 = vmul.f32 %v3243_v19, %v3243_v19  ;;  %v3244_v48 = vld [vmem:[%s6419_s1 + $0x180] sm:$0xff] }
 0x229   : > { %v1852_v18 = vpop.permute.xlu1 %1851  ;;  %v1527_v39 = vpop.permute.xlu0 %1526  ;;  %vm1128_vm11 = vcmp.le.f32.partialorder %v6838_v0, %v3905_v6  ;;  %v2737_v52 = vadd.f32 %v2736_v60, %v1765_v7  ;;  %v1817_v54 = vmul.f32 %v3244_v48, %v3244_v48  ;;  %v3245_v60 = vld [vmem:[%s6419_s1 + $0x178] sm:$0xff] }
 0x22a   : > { %v1766_v8 = vsel %vm1126_vm8, %v1527_v39, 0.0  ;;  %v1767_v57 = vsel %vm1127_vm12, %v1527_v39, 0.0  ;;  %v1768_v44 = vsel %vm1128_vm11, %v1527_v39, 0.0  ;;  %v2249_v33 = vsel %vm889_vm2, %v1852_v18, 0.0 }
 0x22b   : > { %v2568_v31 = vadd.f32 %v2567_v51, %v1766_v8  ;;  %v2653_v58 = vadd.f32 %v2652_v24, %v1767_v57  ;;  %v2738_v47 = vadd.f32 %v2737_v52, %v1768_v44  ;;  %v1816_v39 = vmul.f32 %v3245_v60, %v3245_v60 }
 0x22c   : > { %v2250_v52 = vsel %vm890_vm3, %v1852_v18, 0.0  ;;  %v2251_v57 = vsel %vm891_vm4, %v1852_v18, 0.0  ;;  %v2252_v51 = vsel %vm892_vm5, %v5286_v20, 0.0  ;;  %v2254_v18 = vsel %vm894_vm7, %v5286_v20, 0.0 }
 0x22d   : > { %v2569_v25 = vrot.slane %v2568_v31, 4  ;;  %v2654_v40 = vrot.slane %v2653_v58, 4  ;;  %v2739_v44 = vrot.slane %v2738_v47, 4  ;;  %v2932_v13 = vadd.f32 %v2254_v18, %v2251_v57 }
 0x22e   : > { %2081 = vperm.xlu2 %3192, %v1815_v26   ;;  %v3246_v26 = vld [vmem:[%s6419_s1 + $0x188] sm:$0xff]  ;;  %vm6842_vm2 = vcmp.le.f32.partialorder %v3493_v50, %v3903_v46  ;;  %vm6843_vm3 = vcmp.le.f32.partialorder %v3493_v50, %v3905_v6  ;;  %vm6844_vm4 = vcmp.le.f32.partialorder %v3508_v56, %v3903_v46  ;;  %vm6846_vm5 = vcmp.le.f32.partialorder %v3458_v37, %v3895_v32 }
 0x22f   : > { %2076 = vperm.xlu1 %3191, %v1814_v38   ;;  %2071 = vperm.xlu0 %3190, %v1813_v14   ;;  %v1818_v8 = vmul.f32 %v3246_v26, %v3246_v26  ;;  %v2570_v48 = vadd.f32 %v2569_v25, %v2568_v31  ;;  %v2655_v60 = vadd.f32 %v2654_v40, %v2653_v58  ;;  %v2253_v38 = vsel %vm893_vm6, %v5286_v20, 0.0 }
 0x230   : > { %v5512_v24 = vpop.permute.xlu2 %1916  ;;  %v2762_v14 = vadd.f32 %v2252_v51, %v2249_v33  ;;  %v2740_v0 = vadd.f32 %v2739_v44, %v2738_v47  ;;  %v2847_v12 = vadd.f32 %v2253_v38, %v2250_v52  ;;  %vm6847_vm6 = vcmp.le.f32.partialorder %v3458_v37, %v3903_v46 }
 0x231   : > { %v1867_v19 = vpop.permute.xlu1 %1866  ;;  %v1862_v26 = vpop.permute.xlu0 %1861  ;;  %v2571_v58 = vrot.slane %v2570_v48, 2  ;;  %v2656_v57 = vrot.slane %v2655_v60, 2  ;;  %vm6848_vm7 = vcmp.le.f32.partialorder %v3458_v37, %v3905_v6 }
 0x232   : > { %v2258_v40 = vsel %vm898_vm10, %v1867_v19, 0.0  ;;  %v2255_v25 = vsel %vm895_vm0, %v1862_v26, 0.0  ;;  %v2256_v31 = vsel %vm6842_vm2, %v1862_v26, 0.0  ;;  %v2257_v33 = vsel %vm6843_vm3, %v1862_v26, 0.0  ;;  %v3248_v26 = vld [vmem:[%s6419_s1 + $0x190] sm:$0xff] }
 0x233   : > { %v2763_v20 = vadd.f32 %v2762_v14, %v2255_v25  ;;  %v2848_v47 = vadd.f32 %v2847_v12, %v2256_v31  ;;  %v2933_v52 = vadd.f32 %v2932_v13, %v2257_v33  ;;  %v2741_v44 = vrot.slane %v2740_v0, 2  ;;  %v3247_v12 = vld [vmem:[%s6419_s1 + $0x198] sm:$0xff] }
 0x234   : > { %v2259_v7 = vsel %vm6844_vm4, %v1867_v19, 0.0  ;;  %vm6845_vm0 = vcmp.le.f32.partialorder %v3508_v56, %v3905_v6  ;;  %v2572_v18 = vadd.f32 %v2571_v58, %v2570_v48  ;;  %v2657_v50 = vadd.f32 %v2656_v57, %v2655_v60  ;;  %v3249_v56 = vld [vmem:[%s6419_s1 + $0x1a0] sm:$0xff] }
 0x235   : > { %v2260_v51 = vsel %vm6845_vm0, %v1867_v19, 0.0  ;;  %v2764_v38 = vadd.f32 %v2763_v20, %v2258_v40  ;;  %v2849_v1 = vadd.f32 %v2848_v47, %v2259_v7  ;;  %v2742_v14 = vadd.f32 %v2741_v44, %v2740_v0 }
 0x236   : > { %v2934_v27 = vadd.f32 %v2933_v52, %v2260_v51  ;;  %2096 = vperm.xlu2 %3192, %v1818_v8   ;;  %v1820_v13 = vmul.f32 %v3247_v12, %v3247_v12  ;;  %v1819_v25 = vmul.f32 %v3248_v26, %v3248_v26  ;;  %v1821_v48 = vmul.f32 %v3249_v56, %v3249_v56 }
 0x237   : > { %2091 = vperm.xlu1 %3191, %v1817_v54   ;;  %2086 = vperm.xlu0 %3190, %v1816_v39   ;;  %v2573_v8 = vrot.slane %v2572_v18, 1  ;;  %v2261_v0 = vsel %vm6846_vm5, %v5347_v2, 0.0  ;;  %v2262_v60 = vsel %vm6847_vm6, %v5347_v2, 0.0  ;;  %v2658_v40 = vrot.slane %v2657_v50, 1 }
 0x238   : > { %v5557_v19 = vpop.permute.xlu2 %1931  ;;  %v2743_v31 = vrot.slane %v2742_v14, 1  ;;  %v2263_v54 = vsel %vm6848_vm7, %v5347_v2, 0.0  ;;  %v2765_v20 = vadd.f32 %v2764_v38, %v2261_v0  ;;  %vm2750_vm10 = vcmask 1040384  }
 0x239   : > { %v1882_v39 = vpop.permute.xlu1 %1881  ;;  %v1877_v33 = vpop.permute.xlu0 %1876  ;;  %vm2752_vm2 = vcmask 1041408   ;;  %vm6849_vm3 = vcmp.le.f32.partialorder %v3469_v41, %v3895_v32  ;;  %v2850_v47 = vadd.f32 %v2849_v1, %v2262_v60  ;;  %v2935_v52 = vadd.f32 %v2934_v27, %v2263_v54 }
 0x23a   : > { %v2264_v58 = vsel %vm6849_vm3, %v1877_v33, 0.0  ;;  %v2574_v57 = vadd.f32 %v2573_v8, %v2572_v18  ;;  %vm6850_vm4 = vcmp.le.f32.partialorder %v3469_v41, %v3903_v46  ;;  %vm6851_vm0 = vcmp.le.f32.partialorder %v3469_v41, %v3905_v6 }
 0x23b   : > { %v2265_v44 = vsel %vm6850_vm4, %v1877_v33, 0.0  ;;  %v2266_v37 = vsel %vm6851_vm0, %v1877_v33, 0.0  ;;  %v2766_v2 = vadd.f32 %v2765_v20, %v2264_v58  ;;  %v2659_v7 = vadd.f32 %v2658_v40, %v2657_v50  ;;  %v2489_v50 = vld [vmem:[#allocation2] sm:$0x7]  ;;  %v3251_v58 = vld [vmem:[%s6419_s1 + $0x1b8] sm:$0xff] }
 0x23c   : > { %vm6852_vm5 = vcmp.le.f32.partialorder %v3525_v63, %v3895_v32  ;;  %v2851_v38 = vadd.f32 %v2850_v47, %v2265_v44  ;;  %v2936_v12 = vadd.f32 %v2935_v52, %v2266_v37  ;;  %v2744_v26 = vadd.f32 %v2743_v31, %v2742_v14  ;;  %v3250_v14 = vld [vmem:[%s6419_s1 + $0x1b0] sm:$0xff] }
 0x23d   : > { %v2267_v51 = vsel %vm6852_vm5, %v1882_v39, 0.0  ;;  %vm6853_vm6 = vcmp.le.f32.partialorder %v3525_v63, %v3903_v46  ;;  %vm6854_vm7 = vcmp.le.f32.partialorder %v3525_v63, %v3905_v6  ;;  %v2748_v41 = vrot.slane %v2659_v7, 7 }
 0x23e   : > { %v2268_v27 = vsel %vm6853_vm6, %v1882_v39, 0.0  ;;  %v2269_v1 = vsel %vm6854_vm7, %v1882_v39, 0.0  ;;  %v2767_v18 = vadd.f32 %v2766_v2, %v2267_v51  ;;  %2111 = vperm.xlu2 %3192, %v1821_v48   ;;  %v2749_v0 = vrot.slane %v2744_v26, 6 }
 0x23f   : > { %v2852_v56 = vadd.f32 %v2851_v38, %v2268_v27  ;;  %v2937_v8 = vadd.f32 %v2936_v12, %v2269_v1  ;;  %2106 = vperm.xlu1 %3191, %v1820_v13   ;;  %2101 = vperm.xlu0 %3190, %v1819_v25   ;;  %v2751_v60 = vsel %vm2750_vm10, %v2574_v57, %v2748_v41 }
 0x240   : > { %v1823_v40 = vmul.f32 %v3250_v14, %v3250_v14  ;;  %vm6855_vm3 = vcmp.le.f32.partialorder %v3523_v62, %v3895_v32  ;;  %v5589_v31 = vpop.permute.xlu2 %1946  ;;  %v2753_v48 = vsel %vm2752_vm2, %v2751_v60, %v2749_v0  ;;  %vm6856_vm4 = vcmp.le.f32.partialorder %v3523_v62, %v3903_v46 }
 0x241   : > { %v2270_v63 = vsel %vm6855_vm3, %v5410_v59, 0.0  ;;  %v2271_v13 = vsel %vm6856_vm4, %v5410_v59, 0.0  ;;  %vm6857_vm0 = vcmp.le.f32.partialorder %v3523_v62, %v3905_v6  ;;  %v1897_v54 = vpop.permute.xlu1 %1896  ;;  %v1892_v39 = vpop.permute.xlu0 %1891  ;;  %v2755_v20 = vadd.f32 %v2753_v48, %v2489_v50  ;;  %v3252_v62 = vld [vmem:[%s6419_s1 + $0x1a8] sm:$0xff] }
 0x242   : > { %v2272_v25 = vsel %vm6857_vm0, %v5410_v59, 0.0  ;;  %v2768_v33 = vadd.f32 %v2767_v18, %v2270_v63  ;;  %v1824_v47 = vmul.f32 %v3251_v58, %v3251_v58  ;;  %vm6858_vm5 = vcmp.le.f32.partialorder %v3480_v45, %v3895_v32  ;;  %v3254_v63 = vld [vmem:[%s6419_s1 + $0x1d0] sm:$0xff] }
 0x243   : > { %v2273_v52 = vsel %vm6858_vm5, %v1892_v39, 0.0  ;;  %v2853_v57 = vadd.f32 %v2852_v56, %v2271_v13  ;;  %v2938_v44 = vadd.f32 %v2937_v8, %v2272_v25  ;;  %v1822_v59 = vmul.f32 %v3252_v62, %v3252_v62  ;;  %2760 = vst.msk [vmem:[#allocation2] sm:$0x7] %vm5326_vm13, %v2755_v20  ;;  %v3253_v8 = vld [vmem:[%s6419_s1 + $0x1c8] sm:$0xff] }
 0x244   : > { %vm6859_vm6 = vcmp.le.f32.partialorder %v3480_v45, %v3903_v46  ;;  %vm6860_vm7 = vcmp.le.f32.partialorder %v3480_v45, %v3905_v6  ;;  %v2769_v7 = vadd.f32 %v2768_v33, %v2273_v52  ;;  %vm6861_vm3 = vcmp.le.f32.partialorder %v3540_v5, %v3895_v32 }
 0x245   : > { %v2274_v37 = vsel %vm6859_vm6, %v1892_v39, 0.0  ;;  %v2275_v2 = vsel %vm6860_vm7, %v1892_v39, 0.0  ;;  %v2276_v51 = vsel %vm6861_vm3, %v1897_v54, 0.0  ;;  %vm6862_vm4 = vcmp.le.f32.partialorder %v3540_v5, %v3903_v46  ;;  %v3255_v39 = vld [vmem:[%s6419_s1 + $0x1c0] sm:$0xff] }
 0x246   : > { %v2854_v38 = vadd.f32 %v2853_v57, %v2274_v37  ;;  %v2939_v12 = vadd.f32 %v2938_v44, %v2275_v2  ;;  %v2277_v26 = vsel %vm6862_vm4, %v1897_v54, 0.0  ;;  %vm6863_vm0 = vcmp.le.f32.partialorder %v3540_v5, %v3905_v6  ;;  %2126 = vperm.xlu2 %3192, %v1824_v47  }
 0x247   : > { %v2278_v27 = vsel %vm6863_vm0, %v1897_v54, 0.0  ;;  %v2770_v45 = vadd.f32 %v2769_v7, %v2276_v51  ;;  %2121 = vperm.xlu1 %3191, %v1823_v40   ;;  %2116 = vperm.xlu0 %3190, %v1822_v59   ;;  %vm6864_vm5 = vcmp.le.f32.partialorder %v3538_v4, %v3895_v32  ;;  %v1826_v50 = vmul.f32 %v3253_v8, %v3253_v8  ;;  %v3256_v7 = vld [vmem:[%s6419_s1 + $0x1e0] sm:$0xff] }
 0x248   : > { %v2855_v1 = vadd.f32 %v2854_v38, %v2277_v26  ;;  %v2940_v18 = vadd.f32 %v2939_v12, %v2278_v27  ;;  %v2279_v41 = vsel %vm6864_vm5, %v5452_v36, 0.0  ;;  %v5630_v56 = vpop.permute.xlu2 %1961  ;;  %vm6865_vm6 = vcmp.le.f32.partialorder %v3538_v4, %v3903_v46 }
 0x249   : > { %v2280_v5 = vsel %vm6865_vm6, %v5452_v36, 0.0  ;;  %vm6866_vm7 = vcmp.le.f32.partialorder %v3538_v4, %v3905_v6  ;;  %v1912_v60 = vpop.permute.xlu1 %1911  ;;  %v1907_v14 = vpop.permute.xlu0 %1906  ;;  %v2771_v40 = vadd.f32 %v2770_v45, %v2279_v41  ;;  %v1827_v48 = vmul.f32 %v3254_v63, %v3254_v63  ;;  %v3257_v45 = vld [vmem:[%s6419_s1 + $0x1e8] sm:$0xff] }
 0x24a   : > { %v2281_v0 = vsel %vm6866_vm7, %v5452_v36, 0.0  ;;  %vm6867_vm3 = vcmp.le.f32.partialorder %v3491_v49, %v3895_v32  ;;  %v2856_v25 = vadd.f32 %v2855_v1, %v2280_v5  ;;  %v1825_v4 = vmul.f32 %v3255_v39, %v3255_v39 }
 0x24b   : > { %v2282_v13 = vsel %vm6867_vm3, %v1907_v14, 0.0  ;;  %v2941_v54 = vadd.f32 %v2940_v18, %v2281_v0  ;;  %vm6868_vm4 = vcmp.le.f32.partialorder %v3491_v49, %v3903_v46  ;;  %vm6869_vm0 = vcmp.le.f32.partialorder %v3491_v49, %v3905_v6 }
 0x24c   : > { %v2283_v36 = vsel %vm6868_vm4, %v1907_v14, 0.0  ;;  %v2284_v33 = vsel %vm6869_vm0, %v1907_v14, 0.0  ;;  %v2772_v20 = vadd.f32 %v2771_v40, %v2282_v13  ;;  %vm6870_vm5 = vcmp.le.f32.partialorder %v3555_v11, %v3895_v32 }
 0x24d   : > { %v2285_v58 = vsel %vm6870_vm5, %v1912_v60, 0.0  ;;  %v2857_v47 = vadd.f32 %v2856_v25, %v2283_v36  ;;  %v2942_v52 = vadd.f32 %v2941_v54, %v2284_v33  ;;  %vm6871_vm6 = vcmp.le.f32.partialorder %v3555_v11, %v3903_v46 }
 0x24e   : > { %v2286_v57 = vsel %vm6871_vm6, %v1912_v60, 0.0  ;;  %vm6872_vm7 = vcmp.le.f32.partialorder %v3555_v11, %v3905_v6  ;;  %v2773_v62 = vadd.f32 %v2772_v20, %v2285_v58  ;;  %2141 = vperm.xlu2 %3192, %v1827_v48   ;;  %vm6873_vm3 = vcmp.le.f32.partialorder %v3553_v10, %v3895_v32 }
 0x24f   : > { %v2287_v44 = vsel %vm6872_vm7, %v1912_v60, 0.0  ;;  %v2858_v59 = vadd.f32 %v2857_v47, %v2286_v57  ;;  %2136 = vperm.xlu1 %3191, %v1826_v50   ;;  %2131 = vperm.xlu0 %3190, %v1825_v4   ;;  %v2288_v49 = vsel %vm6873_vm3, %v5512_v24, 0.0  ;;  %v1829_v51 = vmul.f32 %v3256_v7, %v3256_v7  ;;  %v3258_v50 = vld [vmem:[%s6419_s1 + $0x1d8] sm:$0xff] }
 0x250   : > { %v2943_v37 = vadd.f32 %v2942_v52, %v2287_v44  ;;  %v5671_v2 = vpop.permute.xlu2 %1976  ;;  %vm6874_vm4 = vcmp.le.f32.partialorder %v3553_v10, %v3903_v46  ;;  %vm6875_vm0 = vcmp.le.f32.partialorder %v3553_v10, %v3905_v6  ;;  %v2774_v27 = vadd.f32 %v2773_v62, %v2288_v49  ;;  %v3259_v4 = vld [vmem:[%s6419_s1 + $0x1f8] sm:$0xff]  ;;  %v3260_v52 = vld [vmem:[%s6419_s1 + $0x200] sm:$0xff] }
 0x251   : > { %v2289_v11 = vsel %vm6874_vm4, %v5512_v24, 0.0  ;;  %v2290_v38 = vsel %vm6875_vm0, %v5512_v24, 0.0  ;;  %v1927_v12 = vpop.permute.xlu1 %1926  ;;  %v1922_v26 = vpop.permute.xlu0 %1921  ;;  %v1830_v1 = vmul.f32 %v3257_v45, %v3257_v45  ;;  %vm6876_vm5 = vcmp.le.f32.partialorder %v3506_v55, %v3895_v32 }
 0x252   : > { %v2291_v18 = vsel %vm6876_vm5, %v1922_v26, 0.0  ;;  %v2859_v41 = vadd.f32 %v2858_v59, %v2289_v11  ;;  %v2944_v8 = vadd.f32 %v2943_v37, %v2290_v38  ;;  %v1828_v10 = vmul.f32 %v3258_v50, %v3258_v50  ;;  %v3261_v37 = vld [vmem:[%s6419_s1 + $0x1f0] sm:$0xff] }
 0x253   : > { %vm6877_vm6 = vcmp.le.f32.partialorder %v3506_v55, %v3903_v46  ;;  %vm6878_vm7 = vcmp.le.f32.partialorder %v3506_v55, %v3905_v6  ;;  %v2775_v0 = vadd.f32 %v2774_v27, %v2291_v18  ;;  %vm6879_vm3 = vcmp.le.f32.partialorder %v3570_v17, %v3895_v32 }
 0x254   : > { %v2292_v24 = vsel %vm6877_vm6, %v1922_v26, 0.0  ;;  %v2293_v5 = vsel %vm6878_vm7, %v1922_v26, 0.0  ;;  %v2294_v60 = vsel %vm6879_vm3, %v1927_v12, 0.0  ;;  %vm6880_vm4 = vcmp.le.f32.partialorder %v3570_v17, %v3903_v46 }
 0x255   : > { %v2860_v14 = vadd.f32 %v2859_v41, %v2292_v24  ;;  %v2945_v40 = vadd.f32 %v2944_v8, %v2293_v5  ;;  %v2295_v63 = vsel %vm6880_vm4, %v1927_v12, 0.0  ;;  %vm6881_vm0 = vcmp.le.f32.partialorder %v3570_v17, %v3905_v6  ;;  %v3262_v41 = vld [vmem:[%s6419_s1 + $0x210] sm:$0xff] }
 0x256   : > { %v2296_v48 = vsel %vm6881_vm0, %v1927_v12, 0.0  ;;  %v2776_v13 = vadd.f32 %v2775_v0, %v2294_v60  ;;  %2156 = vperm.xlu2 %3192, %v1830_v1   ;;  %vm6882_vm5 = vcmp.le.f32.partialorder %v3568_v16, %v3895_v32  ;;  %v1832_v36 = vmul.f32 %v3259_v4, %v3259_v4  ;;  %v3263_v0 = vld [vmem:[%s6419_s1 + $0x218] sm:$0xff] }
 0x257   : > { %v2861_v25 = vadd.f32 %v2860_v14, %v2295_v63  ;;  %v2946_v54 = vadd.f32 %v2945_v40, %v2296_v48  ;;  %2151 = vperm.xlu1 %3191, %v1829_v51   ;;  %2146 = vperm.xlu0 %3190, %v1828_v10   ;;  %v2297_v55 = vsel %vm6882_vm5, %v5557_v19, 0.0  ;;  %vm6883_vm6 = vcmp.le.f32.partialorder %v3568_v16, %v3903_v46  ;;  %v3264_v48 = vld [vmem:[%s6419_s1 + $0x208] sm:$0xff] }
 0x258   : > { %v5712_v39 = vpop.permute.xlu2 %1991  ;;  %v2298_v17 = vsel %vm6883_vm6, %v5557_v19, 0.0  ;;  %vm6884_vm7 = vcmp.le.f32.partialorder %v3568_v16, %v3905_v6  ;;  %v2777_v47 = vadd.f32 %v2776_v13, %v2297_v55  ;;  %v1833_v57 = vmul.f32 %v3260_v52, %v3260_v52  ;;  %v3265_v52 = vld [vmem:[%s6419_s1 + $0x228] sm:$0xff] }
 0x259   : > { %v2299_v33 = vsel %vm6884_vm7, %v5557_v19, 0.0  ;;  %v1942_v20 = vpop.permute.xlu1 %1941  ;;  %v1937_v58 = vpop.permute.xlu0 %1936  ;;  %vm6885_vm3 = vcmp.le.f32.partialorder %v3521_v61, %v3895_v32  ;;  %v2862_v62 = vadd.f32 %v2861_v25, %v2298_v17  ;;  %v1831_v16 = vmul.f32 %v3261_v37, %v3261_v37 }
 0x25a   : > { %v2300_v44 = vsel %vm6885_vm3, %v1937_v58, 0.0  ;;  %v2947_v59 = vadd.f32 %v2946_v54, %v2299_v33  ;;  %vm6886_vm4 = vcmp.le.f32.partialorder %v3521_v61, %v3903_v46  ;;  %vm6887_vm0 = vcmp.le.f32.partialorder %v3521_v61, %v3905_v6 }
 0x25b   : > { %v2301_v19 = vsel %vm6886_vm4, %v1937_v58, 0.0  ;;  %v2302_v49 = vsel %vm6887_vm0, %v1937_v58, 0.0  ;;  %v2778_v7 = vadd.f32 %v2777_v47, %v2300_v44  ;;  %vm6888_vm5 = vcmp.le.f32.partialorder %v3585_v23, %v3895_v32 }
 0x25c   : > { %v2303_v51 = vsel %vm6888_vm5, %v1942_v20, 0.0  ;;  %v2863_v11 = vadd.f32 %v2862_v62, %v2301_v19  ;;  %v2948_v38 = vadd.f32 %v2947_v59, %v2302_v49  ;;  %vm6889_vm6 = vcmp.le.f32.partialorder %v3585_v23, %v3903_v46 }
 0x25d   : > { %v2304_v12 = vsel %vm6889_vm6, %v1942_v20, 0.0  ;;  %vm6890_vm7 = vcmp.le.f32.partialorder %v3585_v23, %v3905_v6  ;;  %v2779_v27 = vadd.f32 %v2778_v7, %v2303_v51  ;;  %vm6891_vm3 = vcmp.le.f32.partialorder %v3583_v22, %v3895_v32 }
 0x25e   : > { %v2305_v26 = vsel %vm6890_vm7, %v1942_v20, 0.0  ;;  %v2864_v45 = vadd.f32 %v2863_v11, %v2304_v12  ;;  %2171 = vperm.xlu2 %3192, %v1833_v57   ;;  %v2306_v61 = vsel %vm6891_vm3, %v5589_v31, 0.0  ;;  %v1835_v8 = vmul.f32 %v3262_v41, %v3262_v41  ;;  %v3267_v11 = vld [vmem:[%s6419_s1 + $0x220] sm:$0xff] }
 0x25f   : > { %v2949_v1 = vadd.f32 %v2948_v38, %v2305_v26  ;;  %2166 = vperm.xlu1 %3191, %v1832_v36   ;;  %2161 = vperm.xlu0 %3190, %v1831_v16   ;;  %vm6892_vm4 = vcmp.le.f32.partialorder %v3583_v22, %v3903_v46  ;;  %vm6893_vm0 = vcmp.le.f32.partialorder %v3583_v22, %v3905_v6  ;;  %v3266_v16 = vld [vmem:[%s6419_s1 + $0x230] sm:$0xff] }
 0x260   : > { %v5753_v18 = vpop.permute.xlu2 %2006  ;;  %v2307_v23 = vsel %vm6892_vm4, %v5589_v31, 0.0  ;;  %v2308_v50 = vsel %vm6893_vm0, %v5589_v31, 0.0  ;;  %v2780_v5 = vadd.f32 %v2779_v27, %v2306_v61  ;;  %v1836_v60 = vmul.f32 %v3263_v0, %v3263_v0 }
 0x261   : > { %v1957_v10 = vpop.permute.xlu1 %1956  ;;  %v1952_v24 = vpop.permute.xlu0 %1951  ;;  %vm6894_vm5 = vcmp.le.f32.partialorder %v3536_v3, %v3895_v32  ;;  %v2865_v40 = vadd.f32 %v2864_v45, %v2307_v23  ;;  %v2950_v63 = vadd.f32 %v2949_v1, %v2308_v50  ;;  %v1834_v22 = vmul.f32 %v3264_v48, %v3264_v48 }
 0x262   : > { %v2309_v14 = vsel %vm6894_vm5, %v1952_v24, 0.0  ;;  %vm6895_vm6 = vcmp.le.f32.partialorder %v3536_v3, %v3903_v46  ;;  %vm6896_vm7 = vcmp.le.f32.partialorder %v3536_v3, %v3905_v6  ;;  %vm6897_vm3 = vcmp.le.f32.partialorder %v3600_v29, %v3895_v32 }
 0x263   : > { %v2310_v31 = vsel %vm6895_vm6, %v1952_v24, 0.0  ;;  %v2311_v13 = vsel %vm6896_vm7, %v1952_v24, 0.0  ;;  %v2781_v25 = vadd.f32 %v2780_v5, %v2309_v14  ;;  %v2312_v54 = vsel %vm6897_vm3, %v1957_v10, 0.0 }
 0x264   : > { %v2866_v55 = vadd.f32 %v2865_v40, %v2310_v31  ;;  %v2951_v4 = vadd.f32 %v2950_v63, %v2311_v13  ;;  %vm6898_vm4 = vcmp.le.f32.partialorder %v3600_v29, %v3903_v46  ;;  %vm6899_vm0 = vcmp.le.f32.partialorder %v3600_v29, %v3905_v6  ;;  %v3269_v40 = vld [vmem:[%s6419_s1 + $0x248] sm:$0xff]  ;;  %v3270_v13 = vld [vmem:[%s6419_s1 + $0x238] sm:$0xff] }
 0x265   : > { %v2313_v36 = vsel %vm6898_vm4, %v1957_v10, 0.0  ;;  %v2314_v17 = vsel %vm6899_vm0, %v1957_v10, 0.0  ;;  %v2782_v33 = vadd.f32 %v2781_v25, %v2312_v54  ;;  %vm6900_vm5 = vcmp.le.f32.partialorder %v3598_v28, %v3895_v32  ;;  %v3268_v10 = vld [vmem:[%s6419_s1 + $0x240] sm:$0xff] }
 0x266   : > { %v2867_v20 = vadd.f32 %v2866_v55, %v2313_v36  ;;  %v2952_v58 = vadd.f32 %v2951_v4, %v2314_v17  ;;  %2186 = vperm.xlu2 %3192, %v1836_v60   ;;  %v2315_v3 = vsel %vm6900_vm5, %v5630_v56, 0.0  ;;  %v1838_v57 = vmul.f32 %v3265_v52, %v3265_v52 }
 0x267   : > { %2181 = vperm.xlu1 %3191, %v1835_v8   ;;  %2176 = vperm.xlu0 %3190, %v1834_v22   ;;  %vm6901_vm6 = vcmp.le.f32.partialorder %v3598_v28, %v3903_v46  ;;  %vm6902_vm7 = vcmp.le.f32.partialorder %v3598_v28, %v3905_v6  ;;  %v2783_v37 = vadd.f32 %v2782_v33, %v2315_v3 }
 0x268   : > { %v5794_v47 = vpop.permute.xlu2 %2021  ;;  %v2316_v29 = vsel %vm6901_vm6, %v5630_v56, 0.0  ;;  %v2317_v44 = vsel %vm6902_vm7, %v5630_v56, 0.0  ;;  %v1839_v19 = vmul.f32 %v3266_v16, %v3266_v16  ;;  %vm6903_vm3 = vcmp.le.f32.partialorder %v3551_v9, %v3895_v32  ;;  %v3272_v16 = vld [vmem:[%s6419_s1 + $0x260] sm:$0xff] }
 0x269   : > { %v1972_v62 = vpop.permute.xlu1 %1971  ;;  %v1967_v59 = vpop.permute.xlu0 %1966  ;;  %v2868_v7 = vadd.f32 %v2867_v20, %v2316_v29  ;;  %v2953_v51 = vadd.f32 %v2952_v58, %v2317_v44  ;;  %v1837_v28 = vmul.f32 %v3267_v11, %v3267_v11  ;;  %vm6904_vm4 = vcmp.le.f32.partialorder %v3551_v9, %v3903_v46  ;;  %v3273_v11 = vld [vmem:[%s6419_s1 + $0x250] sm:$0xff] }
 0x26a   : > { %v2318_v49 = vsel %vm6903_vm3, %v1967_v59, 0.0  ;;  %v2319_v56 = vsel %vm6904_vm4, %v1967_v59, 0.0  ;;  %vm6905_vm0 = vcmp.le.f32.partialorder %v3551_v9, %v3905_v6  ;;  %vm6906_vm5 = vcmp.le.f32.partialorder %v3615_v35, %v3895_v32 }
 0x26b   : > { %v2320_v38 = vsel %vm6905_vm0, %v1967_v59, 0.0  ;;  %v2784_v12 = vadd.f32 %v2783_v37, %v2318_v49  ;;  %v2321_v26 = vsel %vm6906_vm5, %v1972_v62, 0.0  ;;  %v2869_v27 = vadd.f32 %v2868_v7, %v2319_v56 }
 0x26c   : > { %v2954_v45 = vadd.f32 %v2953_v51, %v2320_v38  ;;  %vm6907_vm6 = vcmp.le.f32.partialorder %v3615_v35, %v3903_v46  ;;  %vm6908_vm7 = vcmp.le.f32.partialorder %v3615_v35, %v3905_v6  ;;  %vm6909_vm3 = vcmp.le.f32.partialorder %v3613_v34, %v3895_v32 }
 0x26d   : > { %v2322_v1 = vsel %vm6907_vm6, %v1972_v62, 0.0  ;;  %v2323_v61 = vsel %vm6908_vm7, %v1972_v62, 0.0  ;;  %v2785_v41 = vadd.f32 %v2784_v12, %v2321_v26  ;;  %v2324_v9 = vsel %vm6909_vm3, %v5671_v2, 0.0 }
 0x26e   : > { %v2870_v8 = vadd.f32 %v2869_v27, %v2322_v1  ;;  %v2955_v23 = vadd.f32 %v2954_v45, %v2323_v61  ;;  %2201 = vperm.xlu2 %3192, %v1839_v19   ;;  %v1841_v24 = vmul.f32 %v3268_v10, %v3268_v10  ;;  %vm6910_vm4 = vcmp.le.f32.partialorder %v3613_v34, %v3903_v46 }
 0x26f   : > { %2196 = vperm.xlu1 %3191, %v1838_v57   ;;  %2191 = vperm.xlu0 %3190, %v1837_v28   ;;  %v2325_v35 = vsel %vm6910_vm4, %v5671_v2, 0.0  ;;  %vm6911_vm0 = vcmp.le.f32.partialorder %v3613_v34, %v3905_v6  ;;  %v2786_v14 = vadd.f32 %v2785_v41, %v2324_v9  ;;  %v1842_v63 = vmul.f32 %v3269_v40, %v3269_v40  ;;  %v3271_v57 = vld [vmem:[%s6419_s1 + $0x258] sm:$0xff] }
 0x270   : > { %v5835_v50 = vpop.permute.xlu2 %2036  ;;  %v2326_v5 = vsel %vm6911_vm0, %v5671_v2, 0.0  ;;  %vm6912_vm5 = vcmp.le.f32.partialorder %v3566_v15, %v3895_v32  ;;  %v2871_v22 = vadd.f32 %v2870_v8, %v2325_v35  ;;  %v1840_v34 = vmul.f32 %v3270_v13, %v3270_v13  ;;  %v6931_v40 = vld [vmem:[#allocation6_spill] sm:$0xff] }
 0x271   : > { %v1987_v0 = vpop.permute.xlu1 %1986  ;;  %v1982_v60 = vpop.permute.xlu0 %1981  ;;  %v2956_v31 = vadd.f32 %v2955_v23, %v2326_v5  ;;  %vm6913_vm6 = vcmp.le.f32.partialorder %v3566_v15, %v3903_v46  ;;  %vm6914_vm7 = vcmp.le.f32.partialorder %v3566_v15, %v3905_v6  ;;  %vm6915_vm3 = vcmp.le.f32.partialorder %v3630_v43, %v3895_v32  ;;  %v3274_v23 = vld [vmem:[%s6419_s1 + $0x270] sm:$0xff] }
 0x272   : > { %v2327_v48 = vsel %vm6912_vm5, %v1982_v60, 0.0  ;;  %v2328_v2 = vsel %vm6913_vm6, %v1982_v60, 0.0  ;;  %v2329_v25 = vsel %vm6914_vm7, %v1982_v60, 0.0  ;;  %v2330_v55 = vsel %vm6915_vm3, %v1987_v0, 0.0 }
 0x273   : > { %v2787_v54 = vadd.f32 %v2786_v14, %v2327_v48  ;;  %v2872_v4 = vadd.f32 %v2871_v22, %v2328_v2  ;;  %v2957_v36 = vadd.f32 %v2956_v31, %v2329_v25  ;;  %vm6916_vm4 = vcmp.le.f32.partialorder %v3630_v43, %v3903_v46  ;;  %v6935_v25 = vld [vmem:[#allocation13_spill] sm:$0xff] }
 0x274   : > { %v2331_v17 = vsel %vm6916_vm4, %v1987_v0, 0.0  ;;  %vm6917_vm0 = vcmp.le.f32.partialorder %v3630_v43, %v3905_v6  ;;  %vm6918_vm5 = vcmp.le.f32.partialorder %v3628_v42, %v3895_v32  ;;  %v1844_v29 = vmul.f32 %v3271_v57, %v3271_v57 }
 0x275   : > { %v2332_v33 = vsel %vm6917_vm0, %v1987_v0, 0.0  ;;  %v2788_v20 = vadd.f32 %v2787_v54, %v2330_v55  ;;  %v2873_v58 = vadd.f32 %v2872_v4, %v2331_v17  ;;  %v2333_v15 = vsel %vm6918_vm5, %v5712_v39, 0.0  ;;  %v3275_v0 = vld [vmem:[%s6419_s1 + $0x278] sm:$0xff] }
 0x276   : > { %v2958_v3 = vadd.f32 %v2957_v36, %v2332_v33  ;;  %2216 = vperm.xlu2 %3192, %v1842_v63   ;;  %vm6919_vm6 = vcmp.le.f32.partialorder %v3628_v42, %v3903_v46  ;;  %vm6920_vm7 = vcmp.le.f32.partialorder %v3628_v42, %v3905_v6  ;;  %v1845_v19 = vmul.f32 %v3272_v16, %v3272_v16 }
 0x277   : > { %2211 = vperm.xlu1 %3191, %v1841_v24   ;;  %2206 = vperm.xlu0 %3190, %v1840_v34   ;;  %v2334_v43 = vsel %vm6919_vm6, %v5712_v39, 0.0  ;;  %v2335_v44 = vsel %vm6920_vm7, %v5712_v39, 0.0  ;;  %v2789_v37 = vadd.f32 %v2788_v20, %v2333_v15  ;;  %vm6921_vm3 = vcmp.le.f32.partialorder %v3581_v21, %v3895_v32 }
 0x278   : > { %v5876_v52 = vpop.permute.xlu2 %2051  ;;  %v2874_v7 = vadd.f32 %v2873_v58, %v2334_v43  ;;  %v2959_v51 = vadd.f32 %v2958_v3, %v2335_v44  ;;  %v1843_v42 = vmul.f32 %v3273_v11, %v3273_v11  ;;  %vm6922_vm4 = vcmp.le.f32.partialorder %v3581_v21, %v3903_v46  ;;  %v6939_v3 = vld [vmem:[#allocation12_spill] sm:$0xff] }
 0x279   : > { %v2002_v62 = vpop.permute.xlu1 %2001  ;;  %v1997_v59 = vpop.permute.xlu0 %1996  ;;  %vm6923_vm0 = vcmp.le.f32.partialorder %v3581_v21, %v3905_v6  ;;  %vm6924_vm5 = vcmp.le.f32.partialorder %v3645_v53, %v3895_v32  ;;  %vm6925_vm6 = vcmp.le.f32.partialorder %v3645_v53, %v3903_v46  ;;  %vm6926_vm7 = vcmp.le.f32.partialorder %v3645_v53, %v3905_v6  ;;  %v6927_v21 = vld [vmem:[#allocation10_spill] sm:$0xff] }
 0x27a   : > { %v2336_v49 = vsel %vm6921_vm3, %v1997_v59, 0.0  ;;  %v2337_v39 = vsel %vm6922_vm4, %v1997_v59, 0.0  ;;  %v2338_v28 = vsel %vm6923_vm0, %v1997_v59, 0.0  ;;  %v2339_v38 = vsel %vm6924_vm5, %v2002_v62, 0.0  ;;  %v6943_v59 = vld [vmem:[#allocation7_spill] sm:$0xff] }
 0x27b   : > { %v2790_v56 = vadd.f32 %v2789_v37, %v2336_v49  ;;  %v2875_v12 = vadd.f32 %v2874_v7, %v2337_v39  ;;  %v2960_v26 = vadd.f32 %v2959_v51, %v2338_v28  ;;  %v2340_v27 = vsel %vm6925_vm6, %v2002_v62, 0.0 }
 0x27c   : > { %v2341_v45 = vsel %vm6926_vm7, %v2002_v62, 0.0  ;;  %vm6928_vm3 = vcmp.le.f32.partialorder %v6927_v21, %v3895_v32  ;;  %v1847_v9 = vmul.f32 %v3274_v23, %v3274_v23  ;;  %vm6929_vm4 = vcmp.le.f32.partialorder %v6927_v21, %v3903_v46 }
 0x27d   : > { %v2791_v1 = vadd.f32 %v2790_v56, %v2339_v38  ;;  %v2876_v61 = vadd.f32 %v2875_v12, %v2340_v27  ;;  %v2961_v41 = vadd.f32 %v2960_v26, %v2341_v45  ;;  %v2342_v8 = vsel %vm6928_vm3, %v5753_v18, 0.0  ;;  %v6951_v45 = vld [vmem:[#allocation15_spill] sm:$0xff] }
 0x27e   : > { %2231 = vperm.xlu2 %3192, %v1845_v19   ;;  %v2343_v53 = vsel %vm6929_vm4, %v5753_v18, 0.0  ;;  %vm6930_vm0 = vcmp.le.f32.partialorder %v6927_v21, %v3905_v6  ;;  %v1848_v60 = vmul.f32 %v3275_v0, %v3275_v0  ;;  %vm6932_vm5 = vcmp.le.f32.partialorder %v6931_v40, %v3895_v32 }
 0x27f   : > { %2226 = vperm.xlu1 %3191, %v1844_v29   ;;  %2221 = vperm.xlu0 %3190, %v1843_v42   ;;  %v2344_v10 = vsel %vm6930_vm0, %v5753_v18, 0.0  ;;  %v2792_v5 = vadd.f32 %v2791_v1, %v2342_v8  ;;  %v2877_v48 = vadd.f32 %v2876_v61, %v2343_v53  ;;  %v3276_v18 = vld [vmem:[%s6419_s1 + $0x268] sm:$0xff]  ;;  %vm6933_vm6 = vcmp.le.f32.partialorder %v6931_v40, %v3903_v46 }
 0x280   : > { %v5931_v14 = vpop.permute.xlu2 %2066  ;;  %v2962_v22 = vadd.f32 %v2961_v41, %v2344_v10  ;;  %v1846_v31 = vmul.f32 %v3276_v18, %v3276_v18  ;;  %vm6934_vm7 = vcmp.le.f32.partialorder %v6931_v40, %v3905_v6  ;;  %vm6936_vm3 = vcmp.le.f32.partialorder %v6935_v25, %v3895_v32 }
 0x281   : > { %v2017_v24 = vpop.permute.xlu1 %2016  ;;  %v2012_v35 = vpop.permute.xlu0 %2011  ;;  %vm6937_vm4 = vcmp.le.f32.partialorder %v6935_v25, %v3903_v46  ;;  %vm6938_vm0 = vcmp.le.f32.partialorder %v6935_v25, %v3905_v6 }
 0x282   : > { %v2345_v63 = vsel %vm6932_vm5, %v2012_v35, 0.0  ;;  %v2346_v13 = vsel %vm6933_vm6, %v2012_v35, 0.0  ;;  %v2347_v34 = vsel %vm6934_vm7, %v2012_v35, 0.0  ;;  %v2348_v54 = vsel %vm6936_vm3, %v2017_v24, 0.0 }
 0x283   : > { %v2793_v2 = vadd.f32 %v2792_v5, %v2345_v63  ;;  %v2878_v55 = vadd.f32 %v2877_v48, %v2346_v13  ;;  %v2963_v4 = vadd.f32 %v2962_v22, %v2347_v34  ;;  %v2349_v36 = vsel %vm6937_vm4, %v2017_v24, 0.0 }
 0x284   : > { %v2350_v17 = vsel %vm6938_vm0, %v2017_v24, 0.0  ;;  %vm6940_vm5 = vcmp.le.f32.partialorder %v6939_v3, %v3895_v32  ;;  %vm6941_vm6 = vcmp.le.f32.partialorder %v6939_v3, %v3903_v46  ;;  %vm6942_vm7 = vcmp.le.f32.partialorder %v6939_v3, %v3905_v6 }
 0x285   : > { %v2794_v33 = vadd.f32 %v2793_v2, %v2348_v54  ;;  %v2879_v20 = vadd.f32 %v2878_v55, %v2349_v36  ;;  %v2964_v58 = vadd.f32 %v2963_v4, %v2350_v17  ;;  %v2351_v15 = vsel %vm6940_vm5, %v5794_v47, 0.0  ;;  %v6963_v2 = vld [vmem:[#allocation18_spill] sm:$0xff] }
 0x286   : > { %2246 = vperm.xlu2 %3192, %v1848_v60   ;;  %v2352_v57 = vsel %vm6941_vm6, %v5794_v47, 0.0  ;;  %v2353_v29 = vsel %vm6942_vm7, %v5794_v47, 0.0  ;;  %vm6944_vm3 = vcmp.le.f32.partialorder %v6943_v59, %v3895_v32  ;;  %vm6945_vm4 = vcmp.le.f32.partialorder %v6943_v59, %v3903_v46  ;;  %v6947_v47 = vld [vmem:[#allocation16_spill] sm:$0xff]  ;;  %v6959_v60 = vld [vmem:[#allocation19_spill] sm:$0xff] }
 0x287   : > { %2241 = vperm.xlu1 %3191, %v1847_v9   ;;  %2236 = vperm.xlu0 %3190, %v1846_v31   ;;  %v2795_v62 = vadd.f32 %v2794_v33, %v2351_v15  ;;  %v2880_v16 = vadd.f32 %v2879_v20, %v2352_v57  ;;  %v2965_v19 = vadd.f32 %v2964_v58, %v2353_v29  ;;  %v6955_v9 = vld [vmem:[#allocation8_spill] sm:$0xff]  ;;  %v6967_v33 = vld [vmem:[#allocation9_spill] sm:$0xff] }
 0x288   : > { %vm6946_vm0 = vcmp.le.f32.partialorder %v6943_v59, %v3905_v6  ;;  %v5975_v11 = vpop.permute.xlu2 %2081  ;;  %vm6948_vm5 = vcmp.le.f32.partialorder %v6947_v47, %v3895_v32  ;;  %vm6949_vm6 = vcmp.le.f32.partialorder %v6947_v47, %v3903_v46  ;;  %vm6950_vm7 = vcmp.le.f32.partialorder %v6947_v47, %v3905_v6 }
 0x289   : > { %v2032_v43 = vpop.permute.xlu1 %2031  ;;  %v2027_v44 = vpop.permute.xlu0 %2026 }
 0x28a   : > { %v2354_v37 = vsel %vm6944_vm3, %v2027_v44, 0.0  ;;  %v2355_v49 = vsel %vm6945_vm4, %v2027_v44, 0.0  ;;  %v2356_v7 = vsel %vm6946_vm0, %v2027_v44, 0.0  ;;  %v2357_v42 = vsel %vm6948_vm5, %v2032_v43, 0.0 }
 0x28b   : > { %v2796_v51 = vadd.f32 %v2795_v62, %v2354_v37  ;;  %v2881_v39 = vadd.f32 %v2880_v16, %v2355_v49  ;;  %v2966_v28 = vadd.f32 %v2965_v19, %v2356_v7  ;;  %v2358_v56 = vsel %vm6949_vm6, %v2032_v43, 0.0  ;;  %v6975_v7 = vld [vmem:[#allocation21_spill] sm:$0xff] }
 0x28c   : > { %v2359_v38 = vsel %vm6950_vm7, %v2032_v43, 0.0  ;;  %vm6952_vm3 = vcmp.le.f32.partialorder %v6951_v45, %v3895_v32  ;;  %vm6953_vm4 = vcmp.le.f32.partialorder %v6951_v45, %v3903_v46  ;;  %vm6954_vm0 = vcmp.le.f32.partialorder %v6951_v45, %v3905_v6  ;;  %v6971_v43 = vld [vmem:[#allocation22_spill] sm:$0xff] }
 0x28d   : > { %v2797_v12 = vadd.f32 %v2796_v51, %v2357_v42  ;;  %v2882_v26 = vadd.f32 %v2881_v39, %v2358_v56  ;;  %v2967_v27 = vadd.f32 %v2966_v28, %v2359_v38  ;;  %v2360_v1 = vsel %vm6952_vm3, %v5835_v50, 0.0 }
 0x28e   : > { %v2361_v61 = vsel %vm6953_vm4, %v5835_v50, 0.0  ;;  %v2362_v41 = vsel %vm6954_vm0, %v5835_v50, 0.0  ;;  %vm6956_vm5 = vcmp.le.f32.partialorder %v6955_v9, %v3895_v32  ;;  %vm6957_vm6 = vcmp.le.f32.partialorder %v6955_v9, %v3903_v46 }
 0x28f   : > { %v2798_v23 = vadd.f32 %v2797_v12, %v2360_v1  ;;  %v2883_v10 = vadd.f32 %v2882_v26, %v2361_v61  ;;  %v2968_v24 = vadd.f32 %v2967_v27, %v2362_v41  ;;  %vm6958_vm7 = vcmp.le.f32.partialorder %v6955_v9, %v3905_v6  ;;  %v6979_v12 = vld [vmem:[#allocation11_spill] sm:$0xff] }
 0x290   : > { %vm6960_vm3 = vcmp.le.f32.partialorder %v6959_v60, %v3895_v32  ;;  %vm6961_vm4 = vcmp.le.f32.partialorder %v6959_v60, %v3903_v46  ;;  %vm6962_vm0 = vcmp.le.f32.partialorder %v6959_v60, %v3905_v6  ;;  %v6016_v31 = vpop.permute.xlu2 %2096 }
 0x291   : > { %v2047_v21 = vpop.permute.xlu1 %2046  ;;  %v2042_v8 = vpop.permute.xlu0 %2041 }
 0x292   : > { %v2363_v53 = vsel %vm6956_vm5, %v2042_v8, 0.0  ;;  %v2364_v35 = vsel %vm6957_vm6, %v2042_v8, 0.0  ;;  %v2365_v5 = vsel %vm6958_vm7, %v2042_v8, 0.0  ;;  %v2366_v50 = vsel %vm6960_vm3, %v2047_v21, 0.0 }
 0x293   : > { %v2799_v0 = vadd.f32 %v2798_v23, %v2363_v53  ;;  %v2884_v40 = vadd.f32 %v2883_v10, %v2364_v35  ;;  %v2969_v63 = vadd.f32 %v2968_v24, %v2365_v5  ;;  %v2367_v48 = vsel %vm6961_vm4, %v2047_v21, 0.0  ;;  %v6987_v5 = vld [vmem:[#allocation24_spill] sm:$0xff] }
 0x294   : > { %v2368_v22 = vsel %vm6962_vm0, %v2047_v21, 0.0  ;;  %vm6964_vm5 = vcmp.le.f32.partialorder %v6963_v2, %v3895_v32  ;;  %vm6965_vm6 = vcmp.le.f32.partialorder %v6963_v2, %v3903_v46  ;;  %vm6966_vm7 = vcmp.le.f32.partialorder %v6963_v2, %v3905_v6  ;;  %v6983_v21 = vld [vmem:[#allocation25_spill] sm:$0xff] }
 0x295   : > { %v2800_v18 = vadd.f32 %v2799_v0, %v2366_v50  ;;  %v2885_v13 = vadd.f32 %v2884_v40, %v2367_v48  ;;  %v2970_v34 = vadd.f32 %v2969_v63, %v2368_v22  ;;  %v2369_v25 = vsel %vm6964_vm5, %v5876_v52, 0.0 }
 0x296   : > { %v2370_v54 = vsel %vm6965_vm6, %v5876_v52, 0.0  ;;  %v2371_v55 = vsel %vm6966_vm7, %v5876_v52, 0.0  ;;  %vm6968_vm3 = vcmp.le.f32.partialorder %v6967_v33, %v3895_v32  ;;  %vm6969_vm4 = vcmp.le.f32.partialorder %v6967_v33, %v3903_v46 }
 0x297   : > { %v2801_v17 = vadd.f32 %v2800_v18, %v2369_v25  ;;  %v2886_v58 = vadd.f32 %v2885_v13, %v2370_v54  ;;  %v2971_v3 = vadd.f32 %v2970_v34, %v2371_v55  ;;  %vm6970_vm0 = vcmp.le.f32.partialorder %v6967_v33, %v3905_v6  ;;  %v6991_v18 = vld [vmem:[#allocation14_spill] sm:$0xff] }
 0x298   : > { %vm6972_vm5 = vcmp.le.f32.partialorder %v6971_v43, %v3895_v32  ;;  %vm6973_vm6 = vcmp.le.f32.partialorder %v6971_v43, %v3903_v46  ;;  %vm6974_vm7 = vcmp.le.f32.partialorder %v6971_v43, %v3905_v6  ;;  %v6052_v47 = vpop.permute.xlu2 %2111 }
 0x299   : > { %v2062_v4 = vpop.permute.xlu1 %2061  ;;  %v2057_v36 = vpop.permute.xlu0 %2056 }
 0x29a   : > { %v2372_v20 = vsel %vm6968_vm3, %v2057_v36, 0.0  ;;  %v2373_v15 = vsel %vm6969_vm4, %v2057_v36, 0.0  ;;  %v2374_v57 = vsel %vm6970_vm0, %v2057_v36, 0.0  ;;  %v2375_v52 = vsel %vm6972_vm5, %v2062_v4, 0.0 }
 0x29b   : > { %v2802_v29 = vadd.f32 %v2801_v17, %v2372_v20  ;;  %v2887_v44 = vadd.f32 %v2886_v58, %v2373_v15  ;;  %v2972_v62 = vadd.f32 %v2971_v3, %v2374_v57  ;;  %v2376_v59 = vsel %vm6973_vm6, %v2062_v4, 0.0  ;;  %v6999_v57 = vld [vmem:[#allocation27_spill] sm:$0xff] }
 0x29c   : > { %v2377_v37 = vsel %vm6974_vm7, %v2062_v4, 0.0  ;;  %vm6976_vm3 = vcmp.le.f32.partialorder %v6975_v7, %v3895_v32  ;;  %vm6977_vm4 = vcmp.le.f32.partialorder %v6975_v7, %v3903_v46  ;;  %vm6978_vm0 = vcmp.le.f32.partialorder %v6975_v7, %v3905_v6 }
 0x29d   : > { %v2803_v16 = vadd.f32 %v2802_v29, %v2375_v52  ;;  %v2888_v19 = vadd.f32 %v2887_v44, %v2376_v59  ;;  %v2973_v49 = vadd.f32 %v2972_v62, %v2377_v37  ;;  %v2378_v51 = vsel %vm6976_vm3, %v5931_v14, 0.0  ;;  %v7003_v37 = vld [vmem:[#allocation17_spill] sm:$0xff] }
 0x29e   : > { %v2379_v42 = vsel %vm6977_vm4, %v5931_v14, 0.0  ;;  %v2380_v39 = vsel %vm6978_vm0, %v5931_v14, 0.0  ;;  %vm6980_vm5 = vcmp.le.f32.partialorder %v6979_v12, %v3895_v32  ;;  %vm6981_vm6 = vcmp.le.f32.partialorder %v6979_v12, %v3903_v46 }
 0x29f   : > { %v2804_v38 = vadd.f32 %v2803_v16, %v2378_v51  ;;  %v2889_v27 = vadd.f32 %v2888_v19, %v2379_v42  ;;  %v2974_v45 = vadd.f32 %v2973_v49, %v2380_v39  ;;  %vm6982_vm7 = vcmp.le.f32.partialorder %v6979_v12, %v3905_v6 }
 0x2a0   : > { %vm6984_vm3 = vcmp.le.f32.partialorder %v6983_v21, %v3895_v32  ;;  %vm6985_vm4 = vcmp.le.f32.partialorder %v6983_v21, %v3903_v46  ;;  %vm6986_vm0 = vcmp.le.f32.partialorder %v6983_v21, %v3905_v6  ;;  %v2127_v22 = vpop.permute.xlu2 %2126 }
 0x2a1   : > { %v2077_v28 = vpop.permute.xlu1 %2076  ;;  %v2072_v56 = vpop.permute.xlu0 %2071 }
 0x2a2   : > { %v2381_v26 = vsel %vm6980_vm5, %v2072_v56, 0.0  ;;  %v2382_v1 = vsel %vm6981_vm6, %v2072_v56, 0.0  ;;  %v2383_v61 = vsel %vm6982_vm7, %v2072_v56, 0.0  ;;  %v2384_v14 = vsel %vm6984_vm3, %v2077_v28, 0.0 }
 0x2a3   : > { %v2805_v41 = vadd.f32 %v2804_v38, %v2381_v26  ;;  %v2890_v8 = vadd.f32 %v2889_v27, %v2382_v1  ;;  %v2975_v23 = vadd.f32 %v2974_v45, %v2383_v61  ;;  %v2385_v9 = vsel %vm6985_vm4, %v2077_v28, 0.0  ;;  %v7011_v61 = vld [vmem:[#allocation30_spill] sm:$0xff] }
 0x2a4   : > { %v2386_v53 = vsel %vm6986_vm0, %v2077_v28, 0.0  ;;  %vm6988_vm5 = vcmp.le.f32.partialorder %v6987_v5, %v3895_v32  ;;  %vm6989_vm6 = vcmp.le.f32.partialorder %v6987_v5, %v3903_v46  ;;  %vm6990_vm7 = vcmp.le.f32.partialorder %v6987_v5, %v3905_v6 }
 0x2a5   : > { %v2806_v10 = vadd.f32 %v2805_v41, %v2384_v14  ;;  %v2891_v24 = vadd.f32 %v2890_v8, %v2385_v9  ;;  %v2976_v35 = vadd.f32 %v2975_v23, %v2386_v53  ;;  %v2387_v0 = vsel %vm6988_vm5, %v5975_v11, 0.0  ;;  %v7015_v53 = vld [vmem:[#allocation20_spill] sm:$0xff] }
 0x2a6   : > { %v2388_v60 = vsel %vm6989_vm6, %v5975_v11, 0.0  ;;  %v2389_v50 = vsel %vm6990_vm7, %v5975_v11, 0.0  ;;  %vm6992_vm3 = vcmp.le.f32.partialorder %v6991_v18, %v3895_v32  ;;  %vm6993_vm4 = vcmp.le.f32.partialorder %v6991_v18, %v3903_v46  ;;  %v6995_v11 = vld [vmem:[#allocation28_spill] sm:$0xff] }
 0x2a7   : > { %v2807_v48 = vadd.f32 %v2806_v10, %v2387_v0  ;;  %v2892_v34 = vadd.f32 %v2891_v24, %v2388_v60  ;;  %v2977_v2 = vadd.f32 %v2976_v35, %v2389_v50  ;;  %vm6994_vm0 = vcmp.le.f32.partialorder %v6991_v18, %v3905_v6  ;;  %v7019_v50 = vld [vmem:[#allocation34_spill] sm:$0xff] }
 0x2a8   : > { %vm6996_vm5 = vcmp.le.f32.partialorder %v6995_v11, %v3895_v32  ;;  %vm6997_vm6 = vcmp.le.f32.partialorder %v6995_v11, %v3903_v46  ;;  %vm6998_vm7 = vcmp.le.f32.partialorder %v6995_v11, %v3905_v6  ;;  %v2142_v39 = vpop.permute.xlu2 %2141 }
 0x2a9   : > { %v2092_v40 = vpop.permute.xlu1 %2091  ;;  %v2087_v63 = vpop.permute.xlu0 %2086 }
 0x2aa   : > { %v2390_v13 = vsel %vm6992_vm3, %v2087_v63, 0.0  ;;  %v2391_v25 = vsel %vm6993_vm4, %v2087_v63, 0.0  ;;  %v2392_v54 = vsel %vm6994_vm0, %v2087_v63, 0.0  ;;  %v2393_v4 = vsel %vm6996_vm5, %v2092_v40, 0.0 }
 0x2ab   : > { %v2808_v55 = vadd.f32 %v2807_v48, %v2390_v13  ;;  %v2893_v36 = vadd.f32 %v2892_v34, %v2391_v25  ;;  %v2978_v17 = vadd.f32 %v2977_v2, %v2392_v54  ;;  %v2394_v33 = vsel %vm6997_vm6, %v2092_v40, 0.0  ;;  %v7023_v54 = vld [vmem:[#allocation33_spill] sm:$0xff] }
 0x2ac   : > { %v2395_v20 = vsel %vm6998_vm7, %v2092_v40, 0.0  ;;  %vm7000_vm3 = vcmp.le.f32.partialorder %v6999_v57, %v3895_v32  ;;  %vm7001_vm4 = vcmp.le.f32.partialorder %v6999_v57, %v3903_v46  ;;  %vm7002_vm0 = vcmp.le.f32.partialorder %v6999_v57, %v3905_v6 }
 0x2ad   : > { %v2809_v58 = vadd.f32 %v2808_v55, %v2393_v4  ;;  %v2894_v3 = vadd.f32 %v2893_v36, %v2394_v33  ;;  %v2979_v15 = vadd.f32 %v2978_v17, %v2395_v20  ;;  %v2396_v29 = vsel %vm7000_vm3, %v6016_v31, 0.0  ;;  %v7027_v20 = vld [vmem:[#allocation23_spill] sm:$0xff] }
 0x2ae   : > { %v2397_v43 = vsel %vm7001_vm4, %v6016_v31, 0.0  ;;  %v2398_v52 = vsel %vm7002_vm0, %v6016_v31, 0.0  ;;  %vm7004_vm5 = vcmp.le.f32.partialorder %v7003_v37, %v3895_v32  ;;  %vm7005_vm6 = vcmp.le.f32.partialorder %v7003_v37, %v3903_v46  ;;  %v7007_v31 = vld [vmem:[#allocation31_spill] sm:$0xff] }
 0x2af   : > { %v2810_v59 = vadd.f32 %v2809_v58, %v2396_v29  ;;  %v2895_v19 = vadd.f32 %v2894_v3, %v2397_v43  ;;  %v2980_v49 = vadd.f32 %v2979_v15, %v2398_v52  ;;  %vm7006_vm7 = vcmp.le.f32.partialorder %v7003_v37, %v3905_v6  ;;  %v7031_v52 = vld [vmem:[#allocation37_spill] sm:$0xff] }
 0x2b0   : > { %vm7008_vm3 = vcmp.le.f32.partialorder %v7007_v31, %v3895_v32  ;;  %vm7009_vm4 = vcmp.le.f32.partialorder %v7007_v31, %v3903_v46  ;;  %vm7010_vm0 = vcmp.le.f32.partialorder %v7007_v31, %v3905_v6  ;;  %v2157_v34 = vpop.permute.xlu2 %2156 }
 0x2b1   : > { %v2107_v44 = vpop.permute.xlu1 %2106  ;;  %v2102_v62 = vpop.permute.xlu0 %2101 }
 0x2b2   : > { %v2399_v16 = vsel %vm7004_vm5, %v2102_v62, 0.0  ;;  %v2400_v7 = vsel %vm7005_vm6, %v2102_v62, 0.0  ;;  %v2401_v51 = vsel %vm7006_vm7, %v2102_v62, 0.0  ;;  %v2402_v28 = vsel %vm7008_vm3, %v2107_v44, 0.0 }
 0x2b3   : > { %v2811_v42 = vadd.f32 %v2810_v59, %v2399_v16  ;;  %v2896_v56 = vadd.f32 %v2895_v19, %v2400_v7  ;;  %v2981_v38 = vadd.f32 %v2980_v49, %v2401_v51  ;;  %v2403_v12 = vsel %vm7009_vm4, %v2107_v44, 0.0  ;;  %v7035_v7 = vld [vmem:[#allocation36_spill] sm:$0xff] }
 0x2b4   : > { %v2404_v26 = vsel %vm7010_vm0, %v2107_v44, 0.0  ;;  %vm7012_vm5 = vcmp.le.f32.partialorder %v7011_v61, %v3895_v32  ;;  %vm7013_vm6 = vcmp.le.f32.partialorder %v7011_v61, %v3903_v46  ;;  %vm7014_vm7 = vcmp.le.f32.partialorder %v7011_v61, %v3905_v6 }
 0x2b5   : > { %v2812_v27 = vadd.f32 %v2811_v42, %v2402_v28  ;;  %v2897_v45 = vadd.f32 %v2896_v56, %v2403_v12  ;;  %v2982_v1 = vadd.f32 %v2981_v38, %v2404_v26  ;;  %v2405_v41 = vsel %vm7012_vm5, %v6052_v47, 0.0  ;;  %v7039_v26 = vld [vmem:[#allocation26_spill] sm:$0xff] }
 0x2b6   : > { %v2406_v21 = vsel %vm7013_vm6, %v6052_v47, 0.0  ;;  %v2407_v14 = vsel %vm7014_vm7, %v6052_v47, 0.0  ;;  %vm7016_vm3 = vcmp.le.f32.partialorder %v7015_v53, %v3895_v32  ;;  %vm7017_vm4 = vcmp.le.f32.partialorder %v7015_v53, %v3903_v46 }
 0x2b7   : > { %v2813_v9 = vadd.f32 %v2812_v27, %v2405_v41  ;;  %v2898_v24 = vadd.f32 %v2897_v45, %v2406_v21  ;;  %v2983_v35 = vadd.f32 %v2982_v1, %v2407_v14  ;;  %vm7018_vm0 = vcmp.le.f32.partialorder %v7015_v53, %v3905_v6  ;;  %v7043_v14 = vld [vmem:[#allocation40_spill] sm:$0xff] }
 0x2b8   : > { %vm7020_vm5 = vcmp.le.f32.partialorder %v7019_v50, %v3895_v32  ;;  %vm7021_vm6 = vcmp.le.f32.partialorder %v7019_v50, %v3903_v46  ;;  %vm7022_vm7 = vcmp.le.f32.partialorder %v7019_v50, %v3905_v6  ;;  %v2172_v42 = vpop.permute.xlu2 %2171 }
 0x2b9   : > { %v2122_v8 = vpop.permute.xlu1 %2121  ;;  %v2117_v23 = vpop.permute.xlu0 %2116 }
 0x2ba   : > { %v2408_v10 = vsel %vm7016_vm3, %v2117_v23, 0.0  ;;  %v2409_v5 = vsel %vm7017_vm4, %v2117_v23, 0.0  ;;  %v2410_v0 = vsel %vm7018_vm0, %v2117_v23, 0.0  ;;  %v2411_v47 = vsel %vm7020_vm5, %v2122_v8, 0.0 }
 0x2bb   : > { %v2814_v60 = vadd.f32 %v2813_v9, %v2408_v10  ;;  %v2899_v40 = vadd.f32 %v2898_v24, %v2409_v5  ;;  %v2984_v63 = vadd.f32 %v2983_v35, %v2410_v0  ;;  %v2412_v48 = vsel %vm7021_vm6, %v2122_v8, 0.0  ;;  %v7047_v5 = vld [vmem:[#allocation39_spill] sm:$0xff] }
 0x2bc   : > { %v2413_v18 = vsel %vm7022_vm7, %v2122_v8, 0.0  ;;  %vm7024_vm3 = vcmp.le.f32.partialorder %v7023_v54, %v3895_v32  ;;  %vm7025_vm4 = vcmp.le.f32.partialorder %v7023_v54, %v3903_v46  ;;  %vm7026_vm0 = vcmp.le.f32.partialorder %v7023_v54, %v3905_v6 }
 0x2bd   : > { %v2815_v13 = vadd.f32 %v2814_v60, %v2411_v47  ;;  %v2900_v2 = vadd.f32 %v2899_v40, %v2412_v48  ;;  %v2985_v25 = vadd.f32 %v2984_v63, %v2413_v18  ;;  %v2414_v55 = vsel %vm7024_vm3, %v2127_v22, 0.0  ;;  %v7051_v18 = vld [vmem:[#allocation29_spill] sm:$0xff] }
 0x2be   : > { %v2415_v11 = vsel %vm7025_vm4, %v2127_v22, 0.0  ;;  %v2416_v4 = vsel %vm7026_vm0, %v2127_v22, 0.0  ;;  %vm7028_vm5 = vcmp.le.f32.partialorder %v7027_v20, %v3895_v32  ;;  %vm7029_vm6 = vcmp.le.f32.partialorder %v7027_v20, %v3903_v46 }
 0x2bf   : > { %v2816_v33 = vadd.f32 %v2815_v13, %v2414_v55  ;;  %v2901_v3 = vadd.f32 %v2900_v2, %v2415_v11  ;;  %v2986_v15 = vadd.f32 %v2985_v25, %v2416_v4  ;;  %vm7030_vm7 = vcmp.le.f32.partialorder %v7027_v20, %v3905_v6 }
 0x2c0   : > { %vm7032_vm3 = vcmp.le.f32.partialorder %v7031_v52, %v3895_v32  ;;  %vm7033_vm4 = vcmp.le.f32.partialorder %v7031_v52, %v3903_v46  ;;  %vm7034_vm0 = vcmp.le.f32.partialorder %v7031_v52, %v3905_v6  ;;  %v2187_v48 = vpop.permute.xlu2 %2186 }
 0x2c1   : > { %v2137_v36 = vpop.permute.xlu1 %2136  ;;  %v2132_v17 = vpop.permute.xlu0 %2131 }
 0x2c2   : > { %v2417_v58 = vsel %vm7028_vm5, %v2132_v17, 0.0  ;;  %v2418_v57 = vsel %vm7029_vm6, %v2132_v17, 0.0  ;;  %v2419_v29 = vsel %vm7030_vm7, %v2132_v17, 0.0  ;;  %v2420_v22 = vsel %vm7032_vm3, %v2137_v36, 0.0 }
 0x2c3   : > { %v2817_v43 = vadd.f32 %v2816_v33, %v2417_v58  ;;  %v2902_v44 = vadd.f32 %v2901_v3, %v2418_v57  ;;  %v2987_v62 = vadd.f32 %v2986_v15, %v2419_v29  ;;  %v2421_v59 = vsel %vm7033_vm4, %v2137_v36, 0.0  ;;  %v7059_v57 = vld [vmem:[#allocation42_spill] sm:$0xff] }
 0x2c4   : > { %v2422_v37 = vsel %vm7034_vm0, %v2137_v36, 0.0  ;;  %vm7036_vm5 = vcmp.le.f32.partialorder %v7035_v7, %v3895_v32  ;;  %vm7037_vm6 = vcmp.le.f32.partialorder %v7035_v7, %v3903_v46  ;;  %vm7038_vm7 = vcmp.le.f32.partialorder %v7035_v7, %v3905_v6 }
 0x2c5   : > { %v2818_v16 = vadd.f32 %v2817_v43, %v2420_v22  ;;  %v2903_v19 = vadd.f32 %v2902_v44, %v2421_v59  ;;  %v2988_v49 = vadd.f32 %v2987_v62, %v2422_v37  ;;  %v2423_v51 = vsel %vm7036_vm5, %v2142_v39, 0.0  ;;  %v7063_v59 = vld [vmem:[#allocation32_spill] sm:$0xff] }
 0x2c6   : > { %v2424_v31 = vsel %vm7037_vm6, %v2142_v39, 0.0  ;;  %v2425_v28 = vsel %vm7038_vm7, %v2142_v39, 0.0  ;;  %vm7040_vm3 = vcmp.le.f32.partialorder %v7039_v26, %v3895_v32  ;;  %vm7041_vm4 = vcmp.le.f32.partialorder %v7039_v26, %v3903_v46 }
 0x2c7   : > { %v2819_v12 = vadd.f32 %v2818_v16, %v2423_v51  ;;  %v2904_v45 = vadd.f32 %v2903_v19, %v2424_v31  ;;  %v2989_v1 = vadd.f32 %v2988_v49, %v2425_v28  ;;  %vm7042_vm0 = vcmp.le.f32.partialorder %v7039_v26, %v3905_v6 }
 0x2c8   : > { %vm7044_vm5 = vcmp.le.f32.partialorder %v7043_v14, %v3895_v32  ;;  %vm7045_vm6 = vcmp.le.f32.partialorder %v7043_v14, %v3903_v46  ;;  %vm7046_vm7 = vcmp.le.f32.partialorder %v7043_v14, %v3905_v6  ;;  %v2202_v31 = vpop.permute.xlu2 %2201 }
 0x2c9   : > { %v2152_v56 = vpop.permute.xlu1 %2151  ;;  %v2147_v38 = vpop.permute.xlu0 %2146 }
 0x2ca   : > { %v2426_v27 = vsel %vm7040_vm3, %v2147_v38, 0.0  ;;  %v2427_v61 = vsel %vm7041_vm4, %v2147_v38, 0.0  ;;  %v2428_v41 = vsel %vm7042_vm0, %v2147_v38, 0.0  ;;  %v2429_v39 = vsel %vm7044_vm5, %v2152_v56, 0.0 }
 0x2cb   : > { %v2820_v21 = vadd.f32 %v2819_v12, %v2426_v27  ;;  %v2905_v8 = vadd.f32 %v2904_v45, %v2427_v61  ;;  %v2990_v23 = vadd.f32 %v2989_v1, %v2428_v41  ;;  %v2430_v9 = vsel %vm7045_vm6, %v2152_v56, 0.0  ;;  %v7071_v61 = vld [vmem:[#allocation45_spill] sm:$0xff] }
 0x2cc   : > { %v2431_v53 = vsel %vm7046_vm7, %v2152_v56, 0.0  ;;  %vm7048_vm3 = vcmp.le.f32.partialorder %v7047_v5, %v3895_v32  ;;  %vm7049_vm4 = vcmp.le.f32.partialorder %v7047_v5, %v3903_v46  ;;  %vm7050_vm0 = vcmp.le.f32.partialorder %v7047_v5, %v3905_v6 }
 0x2cd   : > { %v2821_v10 = vadd.f32 %v2820_v21, %v2429_v39  ;;  %v2906_v24 = vadd.f32 %v2905_v8, %v2430_v9  ;;  %v2991_v35 = vadd.f32 %v2990_v23, %v2431_v53  ;;  %v2432_v0 = vsel %vm7048_vm3, %v2157_v34, 0.0  ;;  %v7075_v9 = vld [vmem:[#allocation35_spill] sm:$0xff] }
 0x2ce   : > { %v2433_v60 = vsel %vm7049_vm4, %v2157_v34, 0.0  ;;  %v2434_v50 = vsel %vm7050_vm0, %v2157_v34, 0.0  ;;  %vm7052_vm5 = vcmp.le.f32.partialorder %v7051_v18, %v3895_v32  ;;  %vm7053_vm6 = vcmp.le.f32.partialorder %v7051_v18, %v3903_v46  ;;  %v7055_v34 = vld [vmem:[#allocation43_spill] sm:$0xff] }
 0x2cf   : > { %v2822_v63 = vadd.f32 %v2821_v10, %v2432_v0  ;;  %v2907_v2 = vadd.f32 %v2906_v24, %v2433_v60  ;;  %v2992_v25 = vadd.f32 %v2991_v35, %v2434_v50  ;;  %vm7054_vm7 = vcmp.le.f32.partialorder %v7051_v18, %v3905_v6  ;;  %v7079_v60 = vld [vmem:[#allocation48_spill] sm:$0xff] }
 0x2d0   : > { %vm7056_vm3 = vcmp.le.f32.partialorder %v7055_v34, %v3895_v32  ;;  %vm7057_vm4 = vcmp.le.f32.partialorder %v7055_v34, %v3903_v46  ;;  %vm7058_vm0 = vcmp.le.f32.partialorder %v7055_v34, %v3905_v6 }
 0x2d1   : > { %v2167_v47 = vpop.permute.xlu1 %2166  ;;  %v2162_v40 = vpop.permute.xlu0 %2161 }
 0x2d2   : > { %v2435_v13 = vsel %vm7052_vm5, %v2162_v40, 0.0  ;;  %v2436_v54 = vsel %vm7053_vm6, %v2162_v40, 0.0  ;;  %v2437_v55 = vsel %vm7054_vm7, %v2162_v40, 0.0  ;;  %v2438_v4 = vsel %vm7056_vm3, %v2167_v47, 0.0 }
 0x2d3   : > { %v2823_v11 = vadd.f32 %v2822_v63, %v2435_v13  ;;  %v2908_v36 = vadd.f32 %v2907_v2, %v2436_v54  ;;  %v2993_v17 = vadd.f32 %v2992_v25, %v2437_v55  ;;  %v2439_v33 = vsel %vm7057_vm4, %v2167_v47, 0.0  ;;  %v2217_v13 = vpop.permute.xlu2 %2216  ;;  %v7082_v54 = vld [vmem:[#allocation47_spill] sm:$0xff] }
 0x2d4   : > { %v2440_v20 = vsel %vm7058_vm0, %v2167_v47, 0.0  ;;  %vm7060_vm5 = vcmp.le.f32.partialorder %v7059_v57, %v3895_v32  ;;  %vm7061_vm6 = vcmp.le.f32.partialorder %v7059_v57, %v3903_v46  ;;  %vm7062_vm7 = vcmp.le.f32.partialorder %v7059_v57, %v3905_v6 }
 0x2d5   : > { %v2824_v58 = vadd.f32 %v2823_v11, %v2438_v4  ;;  %v2909_v3 = vadd.f32 %v2908_v36, %v2439_v33  ;;  %v2994_v15 = vadd.f32 %v2993_v17, %v2440_v20  ;;  %v2441_v29 = vsel %vm7060_vm5, %v2172_v42, 0.0  ;;  %v7086_v33 = vld [vmem:[#allocation38_spill] sm:$0xff] }
 0x2d6   : > { %v2442_v43 = vsel %vm7061_vm6, %v2172_v42, 0.0  ;;  %v2443_v52 = vsel %vm7062_vm7, %v2172_v42, 0.0  ;;  %vm7064_vm3 = vcmp.le.f32.partialorder %v7063_v59, %v3895_v32  ;;  %vm7065_vm4 = vcmp.le.f32.partialorder %v7063_v59, %v3903_v46  ;;  %v7067_v42 = vld [vmem:[#allocation46_spill] sm:$0xff] }
 0x2d7   : > { %v2825_v62 = vadd.f32 %v2824_v58, %v2441_v29  ;;  %v2910_v16 = vadd.f32 %v2909_v3, %v2442_v43  ;;  %v2995_v19 = vadd.f32 %v2994_v15, %v2443_v52  ;;  %vm7066_vm0 = vcmp.le.f32.partialorder %v7063_v59, %v3905_v6  ;;  %v7090_v43 = vld [vmem:[#allocation50_spill] sm:$0xff] }
 0x2d8   : > { %vm7068_vm5 = vcmp.le.f32.partialorder %v7067_v42, %v3895_v32  ;;  %vm7069_vm6 = vcmp.le.f32.partialorder %v7067_v42, %v3903_v46  ;;  %vm7070_vm7 = vcmp.le.f32.partialorder %v7067_v42, %v3905_v6 }
 0x2d9   : > { %v2182_v22 = vpop.permute.xlu1 %2181  ;;  %v2177_v44 = vpop.permute.xlu0 %2176 }
 0x2da   : > { %v2444_v37 = vsel %vm7064_vm3, %v2177_v44, 0.0  ;;  %v2445_v49 = vsel %vm7065_vm4, %v2177_v44, 0.0  ;;  %v2446_v7 = vsel %vm7066_vm0, %v2177_v44, 0.0  ;;  %v2447_v28 = vsel %vm7068_vm5, %v2182_v22, 0.0 }
 0x2db   : > { %v2826_v51 = vadd.f32 %v2825_v62, %v2444_v37  ;;  %v2911_v56 = vadd.f32 %v2910_v16, %v2445_v49  ;;  %v2996_v38 = vadd.f32 %v2995_v19, %v2446_v7  ;;  %v2448_v12 = vsel %vm7069_vm6, %v2182_v22, 0.0  ;;  %v7094_v49 = vld [vmem:[#allocation49_spill] sm:$0xff] }
 0x2dc   : > { %v2449_v26 = vsel %vm7070_vm7, %v2182_v22, 0.0  ;;  %vm7072_vm3 = vcmp.le.f32.partialorder %v7071_v61, %v3895_v32  ;;  %vm7073_vm4 = vcmp.le.f32.partialorder %v7071_v61, %v3903_v46  ;;  %vm7074_vm0 = vcmp.le.f32.partialorder %v7071_v61, %v3905_v6 }
 0x2dd   : > { %v2827_v27 = vadd.f32 %v2826_v51, %v2447_v28  ;;  %v2912_v45 = vadd.f32 %v2911_v56, %v2448_v12  ;;  %v2997_v1 = vadd.f32 %v2996_v38, %v2449_v26  ;;  %v2450_v41 = vsel %vm7072_vm3, %v2187_v48, 0.0  ;;  %v2232_v51 = vpop.permute.xlu2 %2231  ;;  %v7097_v12 = vld [vmem:[#allocation41_spill] sm:$0xff] }
 0x2de   : > { %v2451_v21 = vsel %vm7073_vm4, %v2187_v48, 0.0  ;;  %v2452_v14 = vsel %vm7074_vm0, %v2187_v48, 0.0  ;;  %vm7076_vm5 = vcmp.le.f32.partialorder %v7075_v9, %v3895_v32  ;;  %vm7077_vm6 = vcmp.le.f32.partialorder %v7075_v9, %v3903_v46 }
 0x2df   : > { %v2828_v23 = vadd.f32 %v2827_v27, %v2450_v41  ;;  %v2913_v10 = vadd.f32 %v2912_v45, %v2451_v21  ;;  %v2998_v24 = vadd.f32 %v2997_v1, %v2452_v14  ;;  %vm7078_vm7 = vcmp.le.f32.partialorder %v7075_v9, %v3905_v6  ;;  %v7101_v21 = vld [vmem:[#allocation52_spill] sm:$0xff] }
 0x2e0   : > { %vm7080_vm3 = vcmp.le.f32.partialorder %v7079_v60, %v3895_v32  ;;  %vm7081_vm4 = vcmp.le.f32.partialorder %v7079_v60, %v3905_v6  ;;  %vm7083_vm0 = vcmp.le.f32.partialorder %v7082_v54, %v3895_v32  ;;  %v2468_v7 = vsel %vm1108_vm9, %v2217_v13, 0.0 }
 0x2e1   : > { %v2197_v39 = vpop.permute.xlu1 %2196  ;;  %v2192_v8 = vpop.permute.xlu0 %2191  ;;  %v2459_v55 = vsel %vm7083_vm0, %v2202_v31, 0.0  ;;  %vm7092_vm0 = vcmp.le.f32.partialorder %v7090_v43, %v3903_v46  ;;  %vm7099_vm9 = vcmp.le.f32.partialorder %v7097_v12, %v3903_v46 }
 0x2e2   : > { %v2453_v53 = vsel %vm7076_vm5, %v2192_v8, 0.0  ;;  %v2454_v35 = vsel %vm7077_vm6, %v2192_v8, 0.0  ;;  %v2455_v5 = vsel %vm7078_vm7, %v2192_v8, 0.0  ;;  %v2456_v50 = vsel %vm7080_vm3, %v2197_v39, 0.0 }
 0x2e3   : > { %v2829_v0 = vadd.f32 %v2828_v23, %v2453_v53  ;;  %v2914_v47 = vadd.f32 %v2913_v10, %v2454_v35  ;;  %v2999_v40 = vadd.f32 %v2998_v24, %v2455_v5  ;;  %v2457_v63 = vsel %vm1097_vm14, %v2197_v39, 0.0  ;;  %v7105_v35 = vld [vmem:[#allocation51_spill] sm:$0xff] }
 0x2e4   : > { %v2458_v48 = vsel %vm7081_vm4, %v2197_v39, 0.0  ;;  %vm7084_vm5 = vcmp.le.f32.partialorder %v7082_v54, %v3903_v46  ;;  %vm7085_vm6 = vcmp.le.f32.partialorder %v7082_v54, %v3905_v6  ;;  %vm7087_vm14 = vcmp.le.f32.partialorder %v7086_v33, %v3895_v32 }
 0x2e5   : > { %v2830_v18 = vadd.f32 %v2829_v0, %v2456_v50  ;;  %v2915_v2 = vadd.f32 %v2914_v47, %v2457_v63  ;;  %v3000_v25 = vadd.f32 %v2999_v40, %v2458_v48  ;;  %v2460_v11 = vsel %vm7084_vm5, %v2202_v31, 0.0  ;;  %v7109_v48 = vld [vmem:[#allocation44_spill] sm:$0xff] }
 0x2e6   : > { %v2461_v34 = vsel %vm7085_vm6, %v2202_v31, 0.0  ;;  %vm7088_vm7 = vcmp.le.f32.partialorder %v7086_v33, %v3903_v46  ;;  %vm7089_vm3 = vcmp.le.f32.partialorder %v7086_v33, %v3905_v6  ;;  %vm7091_vm4 = vcmp.le.f32.partialorder %v7090_v43, %v3895_v32 }
 0x2e7   : > { %v2831_v17 = vadd.f32 %v2830_v18, %v2459_v55  ;;  %v2916_v58 = vadd.f32 %v2915_v2, %v2460_v11  ;;  %v3001_v3 = vadd.f32 %v3000_v25, %v2461_v34  ;;  %vm7093_vm5 = vcmp.le.f32.partialorder %v7090_v43, %v3905_v6  ;;  %v2247_v25 = vpop.permute.xlu2 %2246  ;;  %v7113_v34 = vld [vmem:[#allocation54_spill] sm:$0xff] }
 0x2e8   : > { %vm7095_vm6 = vcmp.le.f32.partialorder %v7094_v49, %v3903_v46  ;;  %v3303_v63 = vmov 639.0   ;;  %v2487_v43 = vsel %vm1127_vm12, %v2247_v25, 0.0 }
 0x2e9   : > { %v2212_v4 = vpop.permute.xlu1 %2211  ;;  %v2207_v36 = vpop.permute.xlu0 %2206  ;;  %v2469_v31 = vsel %vm7095_vm6, %v2217_v13, 0.0  ;;  %vm7106_vm6 = vcmp.le.f32.partialorder %v7105_v35, %v3895_v32  ;;  %3193 = vrcp.f32 %v3303_v63 }
 0x2ea   : > { %v2462_v20 = vsel %vm7087_vm14, %v2207_v36, 0.0  ;;  %v2463_v15 = vsel %vm7088_vm7, %v2207_v36, 0.0  ;;  %v2464_v57 = vsel %vm7089_vm3, %v2207_v36, 0.0  ;;  %v2465_v52 = vsel %vm7091_vm4, %v2212_v4, 0.0 }
 0x2eb   : > { %v2832_v29 = vadd.f32 %v2831_v17, %v2462_v20  ;;  %v2917_v22 = vadd.f32 %v2916_v58, %v2463_v15  ;;  %v3002_v44 = vadd.f32 %v3001_v3, %v2464_v57  ;;  %v2466_v62 = vsel %vm7092_vm0, %v2212_v4, 0.0 }
 0x2ec   : > { %v2467_v59 = vsel %vm7093_vm5, %v2212_v4, 0.0  ;;  %vm7096_vm14 = vcmp.le.f32.partialorder %v7094_v49, %v3905_v6  ;;  %vm7098_vm7 = vcmp.le.f32.partialorder %v7097_v12, %v3895_v32  ;;  %vm7100_vm3 = vcmp.le.f32.partialorder %v7097_v12, %v3905_v6 }
 0x2ed   : > { %v2833_v37 = vadd.f32 %v2832_v29, %v2465_v52  ;;  %v2918_v16 = vadd.f32 %v2917_v22, %v2466_v62  ;;  %v3003_v19 = vadd.f32 %v3002_v44, %v2467_v59  ;;  %v2470_v42 = vsel %vm7096_vm14, %v2217_v13, 0.0 }
 0x2ee   : > { %vm7102_vm4 = vcmp.le.f32.partialorder %v7101_v21, %v3895_v32  ;;  %vm7103_vm0 = vcmp.le.f32.partialorder %v7101_v21, %v3903_v46  ;;  %vm7104_vm5 = vcmp.le.f32.partialorder %v7101_v21, %v3905_v6  ;;  %v2477_v5 = vsel %vm7106_vm6, %v2232_v51, 0.0 }
 0x2ef   : > { %v2834_v38 = vadd.f32 %v2833_v37, %v2468_v7  ;;  %v2919_v27 = vadd.f32 %v2918_v16, %v2469_v31  ;;  %v3004_v45 = vadd.f32 %v3003_v19, %v2470_v42  ;;  %vm7107_vm14 = vcmp.le.f32.partialorder %v7105_v35, %v3903_v46  ;;  %v3194_v44 = vpop.eup %3193 }
 0x2f0   : > { %v2478_v0 = vsel %vm7107_vm14, %v2232_v51, 0.0  ;;  %v2486_v15 = vsel %vm1126_vm8, %v2247_v25, 0.0  ;;  %v2488_v52 = vsel %vm1128_vm11, %v2247_v25, 0.0  ;;  %v3304_v16 = vmov 638.0  }
 0x2f1   : > { %v2227_v28 = vpop.permute.xlu1 %2226  ;;  %v2222_v56 = vpop.permute.xlu0 %2221  ;;  %3195 = vrcp.f32 %v3304_v16  ;;  %v3037_v49 = vmul.f32 639.0, %v3194_v44 }
 0x2f2   : > { %v2471_v26 = vsel %vm7098_vm7, %v2222_v56, 0.0  ;;  %v2472_v1 = vsel %vm7099_vm9, %v2222_v56, 0.0  ;;  %v2473_v61 = vsel %vm7100_vm3, %v2222_v56, 0.0  ;;  %v2474_v14 = vsel %vm7102_vm4, %v2227_v28, 0.0 }
 0x2f3   : > { %v2835_v41 = vadd.f32 %v2834_v38, %v2471_v26  ;;  %v2920_v39 = vadd.f32 %v2919_v27, %v2472_v1  ;;  %v3005_v8 = vadd.f32 %v3004_v45, %v2473_v61  ;;  %v2475_v23 = vsel %vm7103_vm0, %v2227_v28, 0.0 }
 0x2f4   : > { %v2476_v9 = vsel %vm7104_vm5, %v2227_v28, 0.0  ;;  %vm7108_vm7 = vcmp.le.f32.partialorder %v7105_v35, %v3905_v6  ;;  %vm7110_vm9 = vcmp.le.f32.partialorder %v7109_v48, %v3895_v32  ;;  %vm7111_vm3 = vcmp.le.f32.partialorder %v7109_v48, %v3903_v46  ;;  %v3031_v35 = vld [vmem:[#allocation2] sm:$0x7] }
 0x2f5   : > { %v2836_v53 = vadd.f32 %v2835_v41, %v2474_v14  ;;  %v2921_v10 = vadd.f32 %v2920_v39, %v2475_v23  ;;  %v3006_v24 = vadd.f32 %v3005_v8, %v2476_v9  ;;  %v2479_v60 = vsel %vm7108_vm7, %v2232_v51, 0.0  ;;  %v3030_v9 = vld [vmem:[%s304_s20] sm:$0x7] }
 0x2f6   : > { %vm7112_vm4 = vcmp.le.f32.partialorder %v7109_v48, %v3905_v6  ;;  %vm7114_vm0 = vcmp.le.f32.partialorder %v7113_v34, %v3895_v32  ;;  %v3038_v56 = vsub.f32 1.0, %v3037_v49 }
 0x2f7   : > { %v2837_v40 = vadd.f32 %v2836_v53, %v2477_v5  ;;  %v2922_v13 = vadd.f32 %v2921_v10, %v2478_v0  ;;  %v3007_v2 = vadd.f32 %v3006_v24, %v2479_v60  ;;  %v3196_v38 = vpop.eup %3195  ;;  %v2761_v24 = vld [vmem:[#allocation3] sm:$0x7] }
 0x2f8   : > { %v3039_v61 = vmul.f32 %v3194_v44, %v3038_v56  ;;  %v3045_v41 = vmul.f32 638.0, %v3196_v38  ;;  %vm3049_vm8 = vweird.f32 %v3196_v38 }
 0x2f9   : > { %v2242_v50 = vpop.permute.xlu1 %2241  ;;  %v2237_v47 = vpop.permute.xlu0 %2236 }
 0x2fa   : > { %v2480_v18 = vsel %vm7110_vm9, %v2237_v47, 0.0  ;;  %v2481_v54 = vsel %vm7111_vm3, %v2237_v47, 0.0  ;;  %v2482_v55 = vsel %vm7112_vm4, %v2237_v47, 0.0  ;;  %v2483_v4 = vsel %vm7114_vm0, %v2242_v50, 0.0 }
 0x2fb   : > { %v2838_v11 = vadd.f32 %v2837_v40, %v2480_v18  ;;  %v2923_v36 = vadd.f32 %v2922_v13, %v2481_v54  ;;  %v3008_v17 = vadd.f32 %v3007_v2, %v2482_v55  ;;  %v2484_v33 = vsel %vm1124_vm1, %v2242_v50, 0.0 }
 0x2fc   : > { %v2485_v20 = vsel %vm1125_vm15, %v2242_v50, 0.0  ;;  %v3040_v53 = vadd.f32 %v3194_v44, %v3039_v61  ;;  %v3046_v10 = vsub.f32 1.0, %v3045_v41  ;;  %vm3041_vm1 = vweird.f32 %v3194_v44 }
 0x2fd   : > { %v2839_v58 = vadd.f32 %v2838_v11, %v2483_v4  ;;  %v2924_v57 = vadd.f32 %v2923_v36, %v2484_v33  ;;  %v3009_v29 = vadd.f32 %v3008_v17, %v2485_v20  ;;  %v3032_v50 = vsub.f32 %v3031_v35, %v3030_v9 }
 0x2fe   : > { %v3042_v47 = vsel %vm3041_vm1, %v3194_v44, %v3040_v53  ;;  %v3047_v40 = vmul.f32 %v3196_v38, %v3046_v10  ;;  %v3034_v18 = vmul.f32 %v3030_v9, %v3030_v9 }
 0x2ff   : > { %v2840_v22 = vadd.f32 %v2839_v58, %v2486_v15  ;;  %v2925_v62 = vadd.f32 %v2924_v57, %v2487_v43  ;;  %v3010_v59 = vadd.f32 %v3009_v29, %v2488_v52  ;;  %v3043_v63 = vmul.f32 %v3042_v47, %v3032_v50 }
 0x300   : > { %v3048_v48 = vadd.f32 %v3196_v38, %v3047_v40 }
 0x301   : > { %v2841_v37 = vrot.slane %v2840_v22, 4  ;;  %v2926_v19 = vrot.slane %v2925_v62, 4  ;;  %v3011_v32 = vrot.slane %v3010_v59, 4  ;;  %v3052_v13 = vmul.f32 %v3043_v63, %v3043_v63 }
 0x302   : > { %v3050_v2 = vsel %vm3049_vm8, %v3196_v38, %v3048_v48 }
 0x303   : > { %v2842_v7 = vadd.f32 %v2841_v37, %v2840_v22  ;;  %v2927_v51 = vadd.f32 %v2926_v19, %v2925_v62  ;;  %v3012_v31 = vadd.f32 %v3011_v32, %v3010_v59  ;;  %v3053_v11 = vmul.f32 1.0015674, %v3052_v13 }
 0x305   : > { %v2843_v46 = vrot.slane %v2842_v7, 2  ;;  %v2928_v42 = vrot.slane %v2927_v51, 2  ;;  %v3013_v28 = vrot.slane %v3012_v31, 2 }
 0x307   : > { %v2844_v6 = vadd.f32 %v2843_v46, %v2842_v7  ;;  %v2929_v12 = vadd.f32 %v2928_v42, %v2927_v51  ;;  %v3014_v26 = vadd.f32 %v3013_v28, %v3012_v31 }
 0x309   : > { %v2845_v27 = vrot.slane %v2844_v6, 1  ;;  %v2930_v45 = vrot.slane %v2929_v12, 1  ;;  %v3015_v1 = vrot.slane %v3014_v26, 1 }
 0x30b   : > { %v2931_v21 = vadd.f32 %v2930_v45, %v2929_v12  ;;  %v3016_v14 = vadd.f32 %v3015_v1, %v3014_v26  ;;  %v2846_v39 = vadd.f32 %v2845_v27, %v2844_v6 }
 0x30d   : > { %v3020_v8 = vrot.slane %v2931_v21, 7  ;;  %v3021_v23 = vrot.slane %v3016_v14, 6 }
 0x30f   : > { %v3022_v5 = vsel %vm2750_vm10, %v2846_v39, %v3020_v8 }
 0x310   : > { %v3023_v0 = vsel %vm2752_vm2, %v3022_v5, %v3021_v23 }
 0x311   : > { %v3025_v60 = vadd.f32 %v3023_v0, %v2761_v24 }
 0x313   : > { %3026 = vst.msk [vmem:[#allocation3] sm:$0x7] %vm5326_vm13, %v3025_v60 }
 0x31a   : > { %v3033_v25 = vld [vmem:[#allocation3] sm:$0x7] }
 0x31b   : > { %v3035_v54 = vsub.f32 %v3033_v25, %v3034_v18 }
 0x31d   : > { %v3051_v55 = vmul.f32 %v3050_v2, %v3035_v54 }
 0x31f   : > { %v3054_v34 = vsub.f32 %v3051_v55, %v3053_v11 }
 0x321   : > { %v3055_v4 = vmul.f32 %v3054_v34, %v3042_v47 }
 0x323   : > { %v3056_v36 = vsub.f32 %v3052_v13, %v3055_v4 }
 0x325   : > { %3057 = vst.msk [vmem:[%s309_s23] sm:$0x7] %vm5326_vm13, %v3056_v36 }
 0x326 PF: > { %s14_s17 = sadd.s32 1, %s3299_s17   ;;  %s7116_s15 = smov %s3295_s16 }
 0x327   : > { %p11_p5 = scmp.ge.s32.totalorder %s14_s17, 4   ;;  %s7117_s16 = smov %s7119_s18 }
 0x329   :  { %13 = sbr.rel (!%p11_p5) target bundleno = 2 (0x2), region = 83 }

</bundles_post_ra>
